<compile_context>
chip_gen: v6e
topology: v6e:2x2x1
jax: 0.10.0
libtpu: 0.0.40
codegen_flags: <defaults>
</compile_context>

<pallas_src>
import functools

import jax
import jax.numpy as jnp
from jax.experimental import pallas as pl
from jax.experimental.pallas import tpu as pltpu

# Layer sizes from Net_purchase.__init__
DIMS = [600, 1024, 512, 256, 128, 100]
# Lane-aligned (multiple-of-128) padded sizes for the two ragged dims.
IN_PAD = 640    # 600 -> 640
OUT_PAD = 128   # 100 -> 128
PAD_DIMS = [IN_PAD, 1024, 512, 256, 128, OUT_PAD]


def _cdiv(a, b):
    return -(-a // b)


def _round_up(x, m):
    return _cdiv(x, m) * m


def _mlp_kernel(bf16_tanh,
                x_ref,
                w1_ref, b1_ref,
                w2_ref, b2_ref,
                w3_ref, b3_ref,
                w4_ref, b4_ref,
                w5_ref, b5_ref,
                o_ref):
    """Fully fused forward: 5 MXU matmuls (bf16 in, f32 acc) + tanh."""

    def layer(h, w_ref, b_ref, activate):
        y = jnp.dot(h, w_ref[...], preferred_element_type=jnp.float32) + b_ref[...]
        if not activate:
            return y                                   # final layer stays f32
        if bf16_tanh:
            # v6e/v7x: bf16-native EUP — cast once, tanh in bf16, feed MXU.
            return jnp.tanh(y.astype(jnp.bfloat16))
        # v5e/v4: fp32 EUP, then repack to bf16 for the next matmul.
        return jnp.tanh(y).astype(jnp.bfloat16)

    h = x_ref[...]                                     # (tile, 640) bf16
    h = layer(h, w1_ref, b1_ref, True)                 # (tile, 1024) bf16
    h = layer(h, w2_ref, b2_ref, True)                 # (tile, 512)  bf16
    h = layer(h, w3_ref, b3_ref, True)                 # (tile, 256)  bf16
    h = layer(h, w4_ref, b4_ref, True)                 # (tile, 128)  bf16
    o_ref[...] = layer(h, w5_ref, b5_ref, False)       # (tile, 128)  f32


def pack_params(params):
    """Pad weights/biases to lane multiples; weights -> bf16, biases stay f32.

    Call ONCE at model-load time (not per forward) and reuse the result.
    """
    packed = []
    for li, (w, b) in enumerate(params):
        fi, fo = DIMS[li], DIMS[li + 1]
        pi, po = PAD_DIMS[li], PAD_DIMS[li + 1]
        wp = jnp.zeros((pi, po), jnp.float32).at[:fi, :fo].set(w.astype(jnp.float32))
        bp = jnp.zeros((1, po), jnp.float32).at[:, :fo].set(
            b.reshape(1, fo).astype(jnp.float32))
        packed.append((wp.astype(jnp.bfloat16), bp))
    return tuple(packed)


def _choose_tiling(B, batch_tile):
    """Pick (tile, n_steps, padded_batch).

    - n_steps covers B at batch_tile granularity;
    - forced to >= 2 for B > 8 so both v7x TensorCores get a 'parallel' step
      (no-op cost on single-TC v5e/v6e);
    - tile = round_up(ceil(B / n_steps), 8) keeps row-padding waste < 8 rows
      per step instead of up to tile-1 rows.
    """
    n_steps = max(1, _cdiv(B, batch_tile))
    if B > 8:
        n_steps = max(n_steps, 2)
    tile = _round_up(_cdiv(B, n_steps), 8)
    Bp = n_steps * tile
    return tile, n_steps, Bp


@functools.partial(jax.jit, static_argnames=("batch_tile", "bf16_tanh"))
def net_purchase_forward(x, packed_params, *, batch_tile=1024, bf16_tanh=True):
    """x: (B, 600).  packed_params: output of pack_params(params)."""
    B = x.shape[0]
    assert x.shape[1] == DIMS[0]

    tile, n_steps, Bp = _choose_tiling(B, batch_tile)

    # Matches x.float() in the PyTorch forward; matmul inputs then go to bf16.
    # Under jit this pad+cast fuses into a single op.
    xp = jnp.zeros((Bp, IN_PAD), jnp.bfloat16)
    xp = xp.at[:B, :DIMS[0]].set(x.astype(jnp.float32).astype(jnp.bfloat16))

    flat_params = []
    in_specs = [pl.BlockSpec((tile, IN_PAD), lambda i: (i, 0))]
    for (w, b) in packed_params:
        flat_params.extend([w, b])
        # Whole-weight blocks, VMEM-resident across all batch tiles
        # (constant index_map -> no per-step re-DMA).
        in_specs.append(pl.BlockSpec(w.shape, lambda i: (0, 0)))
        in_specs.append(pl.BlockSpec(b.shape, lambda i: (0, 0)))

    out_spec = pl.BlockSpec((tile, OUT_PAD), lambda i: (i, 0))

    out = pl.pallas_call(
        functools.partial(_mlp_kernel, bf16_tanh),
        out_shape=jax.ShapeDtypeStruct((Bp, OUT_PAD), jnp.float32),
        grid_spec=pltpu.PrefetchScalarGridSpec(
            num_scalar_prefetch=0,
            grid=(n_steps,),
            in_specs=in_specs,
            out_specs=out_spec,
        ),
        compiler_params=pltpu.CompilerParams(
            dimension_semantics=("parallel",),
            # ~2.7 MB bf16 weights (double-buffered) + activation tiles; at
            # tile=1024 total is ~15 MB — cap well under v7x's 64 MiB VMEM.
            vmem_limit_bytes=48 << 20,
        ),
    )(xp, *flat_params)

    return out[:B, :DIMS[-1]]


def _default_bf16_tanh():
    """bf16 elementwise/tanh only helps on bf16-EUP generations (v6e/v7x)."""
    try:
        kind = jax.devices()[0].device_kind.lower()
    except Exception:
        return True
    return not ("v5" in kind or "v4" in kind or "v3" in kind or "v2" in kind)


def init_params(key):
    """PyTorch nn.Linear default init: U(-1/sqrt(fan_in), 1/sqrt(fan_in))."""
    params = []
    for fan_in, fan_out in zip(DIMS[:-1], DIMS[1:]):
        key, kw, kb = jax.random.split(key, 3)
        bound = 1.0 / (fan_in ** 0.5)
        w = jax.random.uniform(kw, (fan_in, fan_out), jnp.float32, -bound, bound)
        b = jax.random.uniform(kb, (1, fan_out), jnp.float32, -bound, bound)
        params.append((w, b))
    return params


def reference_forward_f32(x, params):
    """Pure fp32 reference (matches PyTorch semantics exactly)."""
    h = x.astype(jnp.float32)
    for i, (w, b) in enumerate(params):
        h = h @ w + b
        if i < len(params) - 1:
            h = jnp.tanh(h)
    return h


def reference_forward_kernel_path(x, params, bf16_tanh):
    """Reference emulating the kernel numerics (bf16 matmul / f32 acc / tanh mode)."""
    h = x.astype(jnp.float32).astype(jnp.bfloat16)
    for i, (w, b) in enumerate(params):
        y = jnp.dot(h, w.astype(jnp.bfloat16),
                    preferred_element_type=jnp.float32) + b.astype(jnp.float32)
        if i < len(params) - 1:
            h = jnp.tanh(y.astype(jnp.bfloat16)) if bf16_tanh \
                else jnp.tanh(y).astype(jnp.bfloat16)
        else:
            h = y
    return h


if __name__ == "__main__":
    key = jax.random.PRNGKey(0)
    kx, kp = jax.random.split(key)

    params = init_params(kp)
    packed = pack_params(params)          # hoisted: pack/pad/bf16 once
    bf16_tanh = _default_bf16_tanh()

    # Small batch: 2 grid steps of tile=8 (exercises the multi-step grid).
    B = 16
    x = jax.random.normal(kx, (B, DIMS[0]), dtype=jnp.float32)
    out = jax.block_until_ready(
        net_purchase_forward(x, packed, bf16_tanh=bf16_tanh))
    assert out.shape == (B, DIMS[-1])

    ref_k = reference_forward_kernel_path(x, params, bf16_tanh)
    ref_32 = reference_forward_f32(x, params)
    assert jnp.allclose(out, ref_k, atol=2e-2, rtol=2e-2), "mismatch vs kernel-path reference"
    assert jnp.allclose(out, ref_32, atol=8e-2, rtol=8e-2), "mismatch vs fp32 reference"

    # Ragged batch: 2 steps of tile=32, 14 padded rows sliced off.
    B2 = 50
    x2 = jax.random.normal(kx, (B2, DIMS[0]), dtype=jnp.float32)
    out2 = jax.block_until_ready(
        net_purchase_forward(x2, packed, bf16_tanh=bf16_tanh))
    assert out2.shape == (B2, DIMS[-1])
    ref2_k = reference_forward_kernel_path(x2, params, bf16_tanh)
    assert jnp.allclose(out2, ref2_k, atol=2e-2, rtol=2e-2), "ragged-batch mismatch"

    print("KERNEL_OK")
</pallas_src>

<mosaic_0001>
module attributes {stable_mosaic.version = 11 : i64} {
  func.func @_mlp_kernel(%arg0: i32, %arg1: memref<8x640xbf16, #tpu.memory_space<vmem>>, %arg2: memref<640x1024xbf16, #tpu.memory_space<vmem>>, %arg3: memref<1x1024xf32, #tpu.memory_space<vmem>>, %arg4: memref<1024x512xbf16, #tpu.memory_space<vmem>>, %arg5: memref<1x512xf32, #tpu.memory_space<vmem>>, %arg6: memref<512x256xbf16, #tpu.memory_space<vmem>>, %arg7: memref<1x256xf32, #tpu.memory_space<vmem>>, %arg8: memref<256x128xbf16, #tpu.memory_space<vmem>>, %arg9: memref<1x128xf32, #tpu.memory_space<vmem>>, %arg10: memref<128x128xbf16, #tpu.memory_space<vmem>>, %arg11: memref<1x128xf32, #tpu.memory_space<vmem>>, %arg12: memref<8x128xf32, #tpu.memory_space<vmem>>) attributes {dimension_semantics = [#tpu.dimension_semantics<parallel>], iteration_bounds = array<i64: 2>, scalar_prefetch = 0 : i64, scratch_operands = 0 : i64, tpu.core_type = #tpu.core_type<tc>, window_params = [{transform_indices = @transform_0, window_bounds = array<i64: 8, 640>}, {pipeline_mode = #tpu.pipeline_mode<synchronous>, transform_indices = @transform_1, window_bounds = array<i64: 640, 1024>}, {pipeline_mode = #tpu.pipeline_mode<synchronous>, transform_indices = @transform_2, window_bounds = array<i64: 1, 1024>}, {pipeline_mode = #tpu.pipeline_mode<synchronous>, transform_indices = @transform_3, window_bounds = array<i64: 1024, 512>}, {pipeline_mode = #tpu.pipeline_mode<synchronous>, transform_indices = @transform_4, window_bounds = array<i64: 1, 512>}, {pipeline_mode = #tpu.pipeline_mode<synchronous>, transform_indices = @transform_5, window_bounds = array<i64: 512, 256>}, {pipeline_mode = #tpu.pipeline_mode<synchronous>, transform_indices = @transform_6, window_bounds = array<i64: 1, 256>}, {pipeline_mode = #tpu.pipeline_mode<synchronous>, transform_indices = @transform_7, window_bounds = array<i64: 256, 128>}, {pipeline_mode = #tpu.pipeline_mode<synchronous>, transform_indices = @transform_8, window_bounds = array<i64: 1, 128>}, {pipeline_mode = #tpu.pipeline_mode<synchronous>, transform_indices = @transform_9, window_bounds = array<i64: 128, 128>}, {pipeline_mode = #tpu.pipeline_mode<synchronous>, transform_indices = @transform_10, window_bounds = array<i64: 1, 128>}, {transform_indices = @transform_11, window_bounds = array<i64: 8, 128>}]} {
    %c0 = arith.constant 0 : index
    %c0_0 = arith.constant 0 : index
    %0 = vector.load %arg1[%c0, %c0_0] : memref<8x640xbf16, #tpu.memory_space<vmem>>, vector<8x640xbf16>
    %c0_1 = arith.constant 0 : index
    %c0_2 = arith.constant 0 : index
    %1 = vector.load %arg2[%c0_1, %c0_2] : memref<640x1024xbf16, #tpu.memory_space<vmem>>, vector<640x1024xbf16>
    %cst = arith.constant dense<0.000000e+00> : vector<8x1024xf32>
    %2 = tpu.matmul %0, %1, %cst {dimension_numbers = #tpu.dot_dimension_numbers<[1], [0], [0], [1], [0, 0, 1, 1], [], []>} : vector<8x640xbf16>, vector<640x1024xbf16>, vector<8x1024xf32> -> vector<8x1024xf32>
    %c0_3 = arith.constant 0 : index
    %c0_4 = arith.constant 0 : index
    %3 = vector.load %arg3[%c0_3, %c0_4] : memref<1x1024xf32, #tpu.memory_space<vmem>>, vector<1x1024xf32>
    %4 = vector.broadcast %3 : vector<1x1024xf32> to vector<8x1024xf32>
    %5 = arith.addf %2, %4 : vector<8x1024xf32>
    %6 = arith.truncf %5 : vector<8x1024xf32> to vector<8x1024xbf16>
    %7 = math.tanh %6 : vector<8x1024xbf16>
    %c0_5 = arith.constant 0 : index
    %c0_6 = arith.constant 0 : index
    %8 = vector.load %arg4[%c0_5, %c0_6] : memref<1024x512xbf16, #tpu.memory_space<vmem>>, vector<1024x512xbf16>
    %cst_7 = arith.constant dense<0.000000e+00> : vector<8x512xf32>
    %9 = tpu.matmul %7, %8, %cst_7 {dimension_numbers = #tpu.dot_dimension_numbers<[1], [0], [0], [1], [0, 0, 1, 1], [], []>} : vector<8x1024xbf16>, vector<1024x512xbf16>, vector<8x512xf32> -> vector<8x512xf32>
    %c0_8 = arith.constant 0 : index
    %c0_9 = arith.constant 0 : index
    %10 = vector.load %arg5[%c0_8, %c0_9] : memref<1x512xf32, #tpu.memory_space<vmem>>, vector<1x512xf32>
    %11 = vector.broadcast %10 : vector<1x512xf32> to vector<8x512xf32>
    %12 = arith.addf %9, %11 : vector<8x512xf32>
    %13 = arith.truncf %12 : vector<8x512xf32> to vector<8x512xbf16>
    %14 = math.tanh %13 : vector<8x512xbf16>
    %c0_10 = arith.constant 0 : index
    %c0_11 = arith.constant 0 : index
    %15 = vector.load %arg6[%c0_10, %c0_11] : memref<512x256xbf16, #tpu.memory_space<vmem>>, vector<512x256xbf16>
    %cst_12 = arith.constant dense<0.000000e+00> : vector<8x256xf32>
    %16 = tpu.matmul %14, %15, %cst_12 {dimension_numbers = #tpu.dot_dimension_numbers<[1], [0], [0], [1], [0, 0, 1, 1], [], []>} : vector<8x512xbf16>, vector<512x256xbf16>, vector<8x256xf32> -> vector<8x256xf32>
    %c0_13 = arith.constant 0 : index
    %c0_14 = arith.constant 0 : index
    %17 = vector.load %arg7[%c0_13, %c0_14] : memref<1x256xf32, #tpu.memory_space<vmem>>, vector<1x256xf32>
    %18 = vector.broadcast %17 : vector<1x256xf32> to vector<8x256xf32>
    %19 = arith.addf %16, %18 : vector<8x256xf32>
    %20 = arith.truncf %19 : vector<8x256xf32> to vector<8x256xbf16>
    %21 = math.tanh %20 : vector<8x256xbf16>
    %c0_15 = arith.constant 0 : index
    %c0_16 = arith.constant 0 : index
    %22 = vector.load %arg8[%c0_15, %c0_16] : memref<256x128xbf16, #tpu.memory_space<vmem>>, vector<256x128xbf16>
    %cst_17 = arith.constant dense<0.000000e+00> : vector<8x128xf32>
    %23 = tpu.matmul %21, %22, %cst_17 {dimension_numbers = #tpu.dot_dimension_numbers<[1], [0], [0], [1], [0, 0, 1, 1], [], []>} : vector<8x256xbf16>, vector<256x128xbf16>, vector<8x128xf32> -> vector<8x128xf32>
    %c0_18 = arith.constant 0 : index
    %c0_19 = arith.constant 0 : index
    %24 = vector.load %arg9[%c0_18, %c0_19] : memref<1x128xf32, #tpu.memory_space<vmem>>, vector<1x128xf32>
    %25 = vector.broadcast %24 : vector<1x128xf32> to vector<8x128xf32>
    %26 = arith.addf %23, %25 : vector<8x128xf32>
    %27 = arith.truncf %26 : vector<8x128xf32> to vector<8x128xbf16>
    %28 = math.tanh %27 : vector<8x128xbf16>
    %c0_20 = arith.constant 0 : index
    %c0_21 = arith.constant 0 : index
    %29 = vector.load %arg10[%c0_20, %c0_21] : memref<128x128xbf16, #tpu.memory_space<vmem>>, vector<128x128xbf16>
    %cst_22 = arith.constant dense<0.000000e+00> : vector<8x128xf32>
    %30 = tpu.matmul %28, %29, %cst_22 {dimension_numbers = #tpu.dot_dimension_numbers<[1], [0], [0], [1], [0, 0, 1, 1], [], []>} : vector<8x128xbf16>, vector<128x128xbf16>, vector<8x128xf32> -> vector<8x128xf32>
    %c0_23 = arith.constant 0 : index
    %c0_24 = arith.constant 0 : index
    %31 = vector.load %arg11[%c0_23, %c0_24] : memref<1x128xf32, #tpu.memory_space<vmem>>, vector<1x128xf32>
    %32 = vector.broadcast %31 : vector<1x128xf32> to vector<8x128xf32>
    %33 = arith.addf %30, %32 : vector<8x128xf32>
    %c0_25 = arith.constant 0 : index
    %c0_26 = arith.constant 0 : index
    %34 = vector.load %arg12[%c0_25, %c0_26] : memref<8x128xf32, #tpu.memory_space<vmem>>, vector<8x128xf32>
    tpu.vector_store %arg12[%c0_25, %c0_26], %33 {strides = array<i32>} : memref<8x128xf32, #tpu.memory_space<vmem>>, vector<8x128xf32>,
    return
  }
  func.func @transform_0(%arg0: i32) -> (i32, i32) {
    %c0_i32 = arith.constant 0 : i32
    %c0_i32_0 = arith.constant 0 : i32
    return %arg0, %c0_i32 : i32, i32
  }
  func.func @transform_1(%arg0: i32) -> (i32, i32) {
    %c0_i32 = arith.constant 0 : i32
    %c0_i32_0 = arith.constant 0 : i32
    %c0_i32_1 = arith.constant 0 : i32
    return %c0_i32, %c0_i32_0 : i32, i32
  }
  func.func @transform_2(%arg0: i32) -> (i32, i32) {
    %c0_i32 = arith.constant 0 : i32
    %c0_i32_0 = arith.constant 0 : i32
    %c0_i32_1 = arith.constant 0 : i32
    return %c0_i32, %c0_i32_0 : i32, i32
  }
  func.func @transform_3(%arg0: i32) -> (i32, i32) {
    %c0_i32 = arith.constant 0 : i32
    %c0_i32_0 = arith.constant 0 : i32
    %c0_i32_1 = arith.constant 0 : i32
    return %c0_i32, %c0_i32_0 : i32, i32
  }
  func.func @transform_4(%arg0: i32) -> (i32, i32) {
    %c0_i32 = arith.constant 0 : i32
    %c0_i32_0 = arith.constant 0 : i32
    %c0_i32_1 = arith.constant 0 : i32
    return %c0_i32, %c0_i32_0 : i32, i32
  }
  func.func @transform_5(%arg0: i32) -> (i32, i32) {
    %c0_i32 = arith.constant 0 : i32
    %c0_i32_0 = arith.constant 0 : i32
    %c0_i32_1 = arith.constant 0 : i32
    return %c0_i32, %c0_i32_0 : i32, i32
  }
  func.func @transform_6(%arg0: i32) -> (i32, i32) {
    %c0_i32 = arith.constant 0 : i32
    %c0_i32_0 = arith.constant 0 : i32
    %c0_i32_1 = arith.constant 0 : i32
    return %c0_i32, %c0_i32_0 : i32, i32
  }
  func.func @transform_7(%arg0: i32) -> (i32, i32) {
    %c0_i32 = arith.constant 0 : i32
    %c0_i32_0 = arith.constant 0 : i32
    %c0_i32_1 = arith.constant 0 : i32
    return %c0_i32, %c0_i32_0 : i32, i32
  }
  func.func @transform_8(%arg0: i32) -> (i32, i32) {
    %c0_i32 = arith.constant 0 : i32
    %c0_i32_0 = arith.constant 0 : i32
    %c0_i32_1 = arith.constant 0 : i32
    return %c0_i32, %c0_i32_0 : i32, i32
  }
  func.func @transform_9(%arg0: i32) -> (i32, i32) {
    %c0_i32 = arith.constant 0 : i32
    %c0_i32_0 = arith.constant 0 : i32
    %c0_i32_1 = arith.constant 0 : i32
    return %c0_i32, %c0_i32_0 : i32, i32
  }
  func.func @transform_10(%arg0: i32) -> (i32, i32) {
    %c0_i32 = arith.constant 0 : i32
    %c0_i32_0 = arith.constant 0 : i32
    %c0_i32_1 = arith.constant 0 : i32
    return %c0_i32, %c0_i32_0 : i32, i32
  }
  func.func @transform_11(%arg0: i32) -> (i32, i32) {
    %c0_i32 = arith.constant 0 : i32
    %c0_i32_0 = arith.constant 0 : i32
    return %arg0, %c0_i32 : i32, i32
  }
}

</mosaic_0001>

<bundles_post_ra>
// kernel: net_purchase_forward.1
= control target key start
LH: loop header
LB: loop body
LE: loop exit
PB: predicated region body
PF: predicated region fallthrough
CT: control target
= control target key end

     0   :  { %s8112_s0 = inlined_call_operand.vmem [shape: bf16[16,640], index: 0, kind: input, shape index: {}]   ;;  %s8113_s1 = inlined_call_operand.hbm [shape: bf16[640,1024], index: 1, kind: input, shape index: {}]   ;;  %s8114_s2 = inlined_call_operand.hbm [shape: f32[1,1024], index: 2, kind: input, shape index: {}]   ;;  %s8115_s3 = inlined_call_operand.hbm [shape: bf16[1024,512], index: 3, kind: input, shape index: {}]   ;;  %s8116_s4 = inlined_call_operand.hbm [shape: f32[1,512], index: 4, kind: input, shape index: {}]   ;;  %s8117_s5 = inlined_call_operand.hbm [shape: bf16[512,256], index: 5, kind: input, shape index: {}]   ;;  %s8118_s6 = inlined_call_operand.hbm [shape: f32[1,256], index: 6, kind: input, shape index: {}]   ;;  %s8119_s7 = inlined_call_operand.hbm [shape: bf16[256,128], index: 7, kind: input, shape index: {}]   ;;  %s8120_s8 = inlined_call_operand.hbm [shape: f32[1,128], index: 8, kind: input, shape index: {}]   ;;  %s8121_s9 = inlined_call_operand.hbm [shape: bf16[128,128], index: 9, kind: input, shape index: {}]   ;;  %s8122_s10 = inlined_call_operand.hbm [shape: f32[1,128], index: 10, kind: input, shape index: {}]   ;;  %s8123_s11 = inlined_call_operand.hbm [shape: f32[16,128], index: 11, kind: output, shape index: {}]  }
   0x1   :  { %8127 = sst [smem:[#allocation28_spill]] %s8113_s1 }
   0x2   :  { %8128 = sst [smem:[#allocation29_spill]] %s8114_s2 }
   0x3   :  { %8129 = sst [smem:[#allocation30_spill]] %s8116_s4 }
   0x4   :  { %16 = vsyncpa [#allocation3], 0 }
   0x5   :  { %17 = vsyncpa [#allocation6], 0 }
   0x6   :  { %18 = vsyncpa [#allocation9], 0 }
   0x7   :  { %19 = vsyncpa [#allocation12], 0 }
   0x8   :  { %20 = vsyncpa [#allocation15], 0 }
   0x9   :  { %21 = vsyncpa [#allocation18], 0 }
   0xa   :  { %22 = vsyncpa [#allocation4], 0 }
   0xb   :  { %24 = vsyncpa [#allocation4 + $0x1], 0  ;;  %s7722_s17 = smov 0   ;;  %s7724_s18 = smov 0  }
   0xc   :  { %s7726_s19 = smov 0   ;;  %s7728_s20 = smov 0  }
   0xd LB: > { %s7743_s21 = sadd.s32 4294967295, %s7638_s20   ;;  %s5849_s22 = sadd.s32 4294967294, %s7638_s20   ;;  %s7638_s20 = sphi %s7728_s20, %s8158_s20   ;;  %s7634_s19 = sphi %s7726_s19, %s8157_s19   ;;  %s7630_s18 = sphi %s7724_s18, %s8156_s18   ;;  %s7626_s17 = sphi %s7722_s17, %s8155_s17  }
   0xe   : > { %s7747_s23 = sadd.s32 1, %s7638_s20   ;;  %s273_s24 = sadd.s32 1, %s7634_s19 }
   0xf   : > { %s270_s25 = ssub.s32 %s7638_s20, %s7747_s23  ;;  %p283_p0 = scmp.ne.s32.totalorder %s7634_s19, %s7630_s18 }
  0x10   : > { %p271_p1 = scmp.eq.s32.totalorder %s270_s25, 0  ;;  %p284_p2 = scmp.eq.s32.totalorder %s7743_s21, 1 }
  0x11   : > { %p289_p3 = scmp.ne.s32.totalorder %s7630_s18, %s7626_s17  ;;  %p290_p4 = scmp.eq.s32.totalorder %s5849_s22, 1 }
  0x12   : > { %s7758_s26 = scalar_select %p271_p1, %s7634_s19, %s273_s24  }
  0x13   : > { %p7760_p5 = por %p284_p2, %p283_p0  ;;  %p7764_p6 = por %p290_p4, %p289_p3 }
  0x14   : > { %8130 = sst [smem:[#allocation27_spill]] %s7758_s26  ;;  %p5850_p7 = scmp.ge.s32.totalorder %s7638_s20, 1 }
  0x15   : > { %s8131_s27 = scalar_select %p7760_p5, 1, 0 }
  0x16   : > { %s8132_s28 = scalar_select %p7764_p6, 1, 0 }
  0x17   : > { %p297_p8 = scmp.lt.s32.totalorder %s7638_s20, 3  ;;  %p8124_p9 = scmp.eq.s32.totalorder %s7743_s21, 0 }
  0x18   : > { %s7640_s30 = smov [#allocation5]   ;;  %s7641_s13 = smov [#allocation8]  }
  0x19   : > { %p7771_p10 = pnand %p5850_p7, %p297_p8  ;;  %s323_s12 = sshll.u32 %s7640_s30, 4  ;;  %s324_s12 = int_to_ptr.vmem [resolvable:$true] %s323_s12 }
  0x1a   : > { %s347_s14 = sshll.u32 %s7641_s13, 4  ;;  %s7642_s16 = smov [#allocation11]   ;;  %s348_s14 = int_to_ptr.vmem [resolvable:$true] %s347_s14 }
  0x1b   : > { %s8133_s29 = scalar_select %p7771_p10, 1, 0 }
  0x1c   : > { %p6644_p11 = pneg %p7771_p10  ;;  %s371_s22 = sshll.u32 %s7642_s16, 4  ;;  %s7783_s22 = int_to_ptr.vmem [resolvable:$true] %s371_s22 }
  0x1d   : > { %s7305_s25 = scalar_lea.vmem %s324_s12, 128  ;;  %p7313_p3 = scmp.lt.s32.totalorder %s324_s12, %s324_s12 }
  0x1e   : > { %p7779_p12 = pnand %p8124_p9, %p6644_p11  ;;  %p7306_p0 = scmp.ne.s32.totalorder %s324_s12, %s7305_s25 }
  0x1f   : > { %p7314_p4 = scmp.lt.s32.totalorder %s7305_s25, %s7305_s25 }
  0x20   : > { %p7787_p13 = pneg %p7779_p12 }
  0x21   : > { %p7315_p7 = por %p7314_p4, %p7313_p3 }
  0x22   : > { %p7308_p1 = pnand %p7306_p0, %p7787_p13 }
  0x24   : > { %p7309_p2 = pneg %p7308_p1 }
  0x26   : > { %p7316_p8 = pnand %p7315_p7, %p7309_p2 }
  0x28   : > { %7319 = shalt.err (!%p7316_p8)
}
  0x29   : > { %s8136_s2 = sld [smem:[#allocation29_spill]]  ;;  %s7331_s16 = scalar_lea.vmem %s348_s14, 64 }
  0x2a   : > { %p7332_p11 = scmp.ne.s32.totalorder %s348_s14, %s7331_s16  ;;  %p7339_p5 = scmp.lt.s32.totalorder %s348_s14, %s348_s14 }
  0x2b   : > { %p7340_p0 = scmp.lt.s32.totalorder %s7331_s16, %s7331_s16 }
  0x2c   : > { %p7334_p9 = pnand %p7332_p11, %p7787_p13 }
  0x2d   : > { %p7341_p1 = por %p7340_p0, %p7339_p5 }
  0x2e   : > { %p7335_p6 = pneg %p7334_p9 }
  0x2f   : > { %6650 = dma.hbm_to_vmem [thread:$0]  (!%p7779_p12), %s8136_s2, 128, %s324_s12, [#allocation6]  }
  0x30   : > { %p7342_p10 = pnand %p7341_p1, %p7335_p6 }
  0x32   : > { %7345 = shalt.err (!%p7342_p10)
}
  0x33   : > { %s8137_s4 = sld [smem:[#allocation30_spill]]  ;;  %s7357_s12 = scalar_lea.vmem %s7783_s22, 32 }
  0x34   : > { %p7358_p2 = scmp.ne.s32.totalorder %s7783_s22, %s7357_s12  ;;  %p7365_p4 = scmp.lt.s32.totalorder %s7783_s22, %s7783_s22 }
  0x35   : > { %p7366_p5 = scmp.lt.s32.totalorder %s7357_s12, %s7357_s12 }
  0x36   : > { %p7360_p3 = pnand %p7358_p2, %p7787_p13 }
  0x37   : > { %p7367_p6 = por %p7366_p5, %p7365_p4 }
  0x38   : > { %p7361_p9 = pneg %p7360_p3 }
  0x39   : > { %6656 = dma.hbm_to_vmem [thread:$0]  (!%p7779_p12), %s8137_s4, 64, %s348_s14, [#allocation9]  }
  0x3a   : > { %p7368_p10 = pnand %p7367_p6, %p7361_p9 }
  0x3c   : > { %7371 = shalt.err (!%p7368_p10)
}
  0x3d   : > { %6662 = dma.hbm_to_vmem [thread:$0]  (!%p7779_p12), %s8118_s6, 32, %s7783_s22, [#allocation12]  }
  0x3e   : > { %s7643_s14 = smov [#allocation14]   ;;  %s7644_s16 = smov [#allocation2]  }
  0x3f   : > { %s395_s13 = sshll.u32 %s7643_s14, 4  ;;  %s309_s25 = sshll.u32 %s7644_s16, 4  ;;  %s396_s13 = int_to_ptr.vmem [resolvable:$true] %s395_s13  ;;  %s310_s25 = int_to_ptr.vmem [resolvable:$true] %s309_s25 }
  0x40   : > { %s7383_s2 = scalar_lea.vmem %s396_s13, 16  ;;  %s7390_s12 = scalar_lea.vmem %s396_s13, 32 }
  0x41   : > { %p7384_p7 = scmp.ne.s32.totalorder %s396_s13, %s7383_s2  ;;  %p7391_p0 = scmp.lt.s32.totalorder %s396_s13, %s396_s13 }
  0x42   : > { %p7392_p1 = scmp.lt.s32.totalorder %s7390_s12, %s7383_s2 }
  0x43   : > { %p7386_p8 = pnand %p7384_p7, %p7787_p13 }
  0x44   : > { %p7393_p2 = por %p7392_p1, %p7391_p0 }
  0x45   : > { %p7387_p11 = pneg %p7386_p8 }
  0x47   : > { %p7394_p3 = pnand %p7393_p2, %p7387_p11 }
  0x49   : > { %7397 = shalt.err (!%p7394_p3)
}
  0x4a   : > { %6668 = dma.hbm_to_vmem [thread:$0]  (!%p7779_p12), %s8120_s8, 16, %s396_s13, [#allocation15]  }
  0x4b   : > { %s7409_s30 = scalar_lea.vmem %s310_s25, 40960  ;;  %p7417_p6 = scmp.lt.s32.totalorder %s310_s25, %s310_s25 }
  0x4c   : > { %p7410_p9 = scmp.ne.s32.totalorder %s310_s25, %s7409_s30  ;;  %p7418_p10 = scmp.lt.s32.totalorder %s7409_s30, %s7409_s30 }
  0x4e   : > { %p7412_p4 = pnand %p7410_p9, %p7787_p13  ;;  %p7419_p7 = por %p7418_p10, %p7417_p6 }
  0x50   : > { %p7413_p5 = pneg %p7412_p4 }
  0x52   : > { %p7420_p8 = pnand %p7419_p7, %p7413_p5 }
  0x54   : > { %7423 = shalt.err (!%p7420_p8)
}
  0x55   : > { %s7645_s2 = smov 512   ;;  %s7646_s14 = smov 32  }
  0x56   : > { %s8138_s1 = sld [smem:[#allocation28_spill]]  ;;  %s7647_s13 = smov [#allocation7]  }
  0x57   : > { %s333_s26 = sshll.u32 %s7647_s13, 4  ;;  %s334_s26 = int_to_ptr.vmem [resolvable:$true] %s333_s26 }
  0x58   : > { %s7435_s22 = scalar_lea.vmem %s334_s26, 32768  ;;  %p7443_p2 = scmp.lt.s32.totalorder %s334_s26, %s334_s26 }
  0x59   : > { %p7436_p11 = scmp.ne.s32.totalorder %s334_s26, %s7435_s22  ;;  %p7444_p3 = scmp.lt.s32.totalorder %s7435_s22, %s7435_s22 }
  0x5b   : > { %p7438_p0 = pnand %p7436_p11, %p7787_p13  ;;  %p7445_p9 = por %p7444_p3, %p7443_p2 }
  0x5c   : > { %6647 = dma.hbm_to_vmem [thread:$0]  (!%p7779_p12), %s8138_s1, 40960, %s310_s25, [#allocation3], %s7645_s2, %s7645_s2, %s7646_s14  }
  0x5d   : > { %p7439_p1 = pneg %p7438_p0 }
  0x5f   : > { %p7446_p4 = pnand %p7445_p9, %p7439_p1 }
  0x61   : > { %7449 = shalt.err (!%p7446_p4)
}
  0x62   : > { %s7648_s30 = smov 256   ;;  %s7649_s4 = smov 16  }
  0x63   : > { %6653 = dma.hbm_to_vmem [thread:$0]  (!%p7779_p12), %s8115_s3, 32768, %s334_s26, [#allocation6], %s7648_s30, %s7648_s30, %s7649_s4  }
  0x64   : > { %s7650_s2 = smov [#allocation10]  }
  0x65   : > { %s357_s14 = sshll.u32 %s7650_s2, 4  ;;  %s358_s14 = int_to_ptr.vmem [resolvable:$true] %s357_s14 }
  0x66   : > { %s7461_s12 = scalar_lea.vmem %s358_s14, 8192  ;;  %p7469_p7 = scmp.lt.s32.totalorder %s358_s14, %s358_s14 }
  0x67   : > { %p7462_p5 = scmp.ne.s32.totalorder %s358_s14, %s7461_s12  ;;  %p7470_p8 = scmp.lt.s32.totalorder %s7461_s12, %s7461_s12 }
  0x69   : > { %p7464_p6 = pnand %p7462_p5, %p7787_p13  ;;  %p7471_p11 = por %p7470_p8, %p7469_p7 }
  0x6b   : > { %p7465_p10 = pneg %p7464_p6 }
  0x6d   : > { %p7472_p0 = pnand %p7471_p11, %p7465_p10 }
  0x6f   : > { %7475 = shalt.err (!%p7472_p0)
}
  0x70   : > { %s7651_s13 = smov 128   ;;  %s7652_s22 = smov 8  }
  0x71   : > { %6659 = dma.hbm_to_vmem [thread:$0]  (!%p7779_p12), %s8117_s5, 8192, %s358_s14, [#allocation9], %s7651_s13, %s7651_s13, %s7652_s22  }
  0x72   : > { %s7653_s26 = smov [#allocation13]  }
  0x73   : > { %s381_s30 = sshll.u32 %s7653_s26, 4  ;;  %s382_s30 = int_to_ptr.vmem [resolvable:$true] %s381_s30 }
  0x74   : > { %s7487_s25 = scalar_lea.vmem %s382_s30, 2048  ;;  %p7495_p9 = scmp.lt.s32.totalorder %s382_s30, %s382_s30 }
  0x75   : > { %p7488_p1 = scmp.ne.s32.totalorder %s382_s30, %s7487_s25  ;;  %p7496_p4 = scmp.lt.s32.totalorder %s7487_s25, %s7487_s25 }
  0x77   : > { %p7490_p2 = pnand %p7488_p1, %p7787_p13  ;;  %p7497_p5 = por %p7496_p4, %p7495_p9 }
  0x79   : > { %p7491_p3 = pneg %p7490_p2 }
  0x7b   : > { %p7498_p6 = pnand %p7497_p5, %p7491_p3 }
  0x7d   : > { %7501 = shalt.err (!%p7498_p6)
}
  0x7e   : > { %s7654_s2 = smov 64   ;;  %s7655_s12 = smov 4  }
  0x7f   : > { %6665 = dma.hbm_to_vmem [thread:$0]  (!%p7779_p12), %s8119_s7, 2048, %s382_s30, [#allocation12], %s7654_s2, %s7654_s2, %s7655_s12  }
  0x80   : > { %s7656_s13 = smov [#allocation16]   ;;  %s7657_s4 = smov [#allocation17]  }
  0x81   : > { %s405_s22 = sshll.u32 %s7656_s13, 4  ;;  %s419_s26 = sshll.u32 %s7657_s4, 4  ;;  %s406_s22 = int_to_ptr.vmem [resolvable:$true] %s405_s22  ;;  %s420_s26 = int_to_ptr.vmem [resolvable:$true] %s419_s26 }
  0x82   : > { %s7513_s1 = scalar_lea.vmem %s406_s22, 1024  ;;  %p7521_p11 = scmp.lt.s32.totalorder %s406_s22, %s406_s22 }
  0x83   : > { %p7514_p10 = scmp.ne.s32.totalorder %s406_s22, %s7513_s1  ;;  %p7522_p0 = scmp.lt.s32.totalorder %s7513_s1, %s7513_s1 }
  0x85   : > { %p7516_p7 = pnand %p7514_p10, %p7787_p13  ;;  %p7523_p1 = por %p7522_p0, %p7521_p11 }
  0x87   : > { %p7517_p8 = pneg %p7516_p7 }
  0x89   : > { %p7524_p2 = pnand %p7523_p1, %p7517_p8 }
  0x8b   : > { %7527 = shalt.err (!%p7524_p2)
}
  0x8c   : > { %6671 = dma.hbm_to_vmem [thread:$0]  (!%p7779_p12), %s8121_s9, 1024, %s406_s22, [#allocation15], %s7654_s2, %s7654_s2, %s7655_s12  }
  0x8d   : > { %s7539_s16 = scalar_lea.vmem %s420_s26, 16  ;;  %s7546_s14 = scalar_lea.vmem %s420_s26, 32 }
  0x8e   : > { %p7540_p3 = scmp.ne.s32.totalorder %s420_s26, %s7539_s16  ;;  %p7547_p5 = scmp.lt.s32.totalorder %s420_s26, %s420_s26 }
  0x8f   : > { %p7548_p6 = scmp.lt.s32.totalorder %s7546_s14, %s7539_s16 }
  0x90   : > { %p7542_p9 = pnand %p7540_p3, %p7787_p13 }
  0x91   : > { %p7549_p10 = por %p7548_p6, %p7547_p5 }
  0x92   : > { %p7543_p4 = pneg %p7542_p9 }
  0x94   : > { %p7550_p7 = pnand %p7549_p10, %p7543_p4 }
  0x96   : > { %7553 = shalt.err (!%p7550_p7)
}
  0x97   : > { %6674 = dma.hbm_to_vmem [thread:$0]  (!%p7779_p12), %s8122_s10, 16, %s420_s26, [#allocation18]  }
  0x98   : > { %p8139_p8 = scmp.ne.s32.totalorder %s8133_s29, 0 }
  0x99   : > { %p8140_p11 = scmp.eq.s32.totalorder (!%p8139_p8), %s7743_s21, 0 }
  0x9a   : > { %440 = sbr.rel (%p8139_p8) target bundleno = 1702 (0x6a6), region = 64 }
  0x9f   : > { %7597 = dma.done.wait (%p8140_p11), [#allocation3], 40960   ;;  %p8141_p13 = pmov %p8140_p11 }
  0xa0   : > { %p8142_p0 = pmov %p8140_p11 }
  0xa1   : > { %7599 = vsyncadd (%p8141_p13), [#allocation3], 4294926336 }
  0xa2   : > { %7601 = dma.done.wait (%p8142_p0), [#allocation6], 32896   ;;  %p8143_p1 = pmov %p8142_p0 }
  0xa3   : > { %p8144_p2 = pmov %p8142_p0 }
  0xa4   : > { %7603 = vsyncadd (%p8143_p1), [#allocation6], 4294934400 }
  0xa5   : > { %7605 = dma.done.wait (%p8144_p2), [#allocation9], 8256   ;;  %p8145_p12 = pmov %p8142_p0 }
  0xa6   : > { %p8146_p3 = pmov %p8142_p0 }
  0xa7   : > { %7607 = vsyncadd (%p8145_p12), [#allocation9], 4294959040 }
  0xa8   : > { %7609 = dma.done.wait (%p8146_p3), [#allocation12], 2080   ;;  %p8147_p9 = pmov %p8142_p0 }
  0xa9   : > { %p8148_p4 = pmov %p8142_p0 }
  0xaa   : > { %7611 = vsyncadd (%p8147_p9), [#allocation12], 4294965216 }
  0xab   : > { %7613 = dma.done.wait (%p8148_p4), [#allocation15], 1040   ;;  %p8149_p5 = pmov %p8142_p0 }
  0xac   : > { %p8150_p6 = pmov %p8142_p0 }
  0xad   : > { %7615 = vsyncadd (%p8149_p5), [#allocation15], 4294966256 }
  0xae   : > { %7617 = dma.done.wait (%p8150_p6), [#allocation18], 16   ;;  %p8151_p10 = pmov %p8142_p0 }
  0xaf   : > { %v581_v0 = vld [vmem:[#allocation2 + $0x1c0] sm:$0xff]  ;;  %p516_p7 = scmp.lt.s32.totalorder %s7743_s21, 1  ;;  %vm7660_vm0 = vmmov 0   ;;  %s513_s22 = sand.u32 1, %s7630_s18  }
  0xb0   : > { %7619 = vsyncadd (%p8151_p10), [#allocation18], 4294967280  ;;  %v585_v1 = vld [vmem:[#allocation2 + $0x1e0] sm:$0xff]  ;;  %s5873_s4 = sshll.u32 %s513_s22, 3  ;;  %s6547_s26 = sshll.u32 %s7743_s21, 7 }
  0xb1   : > { %v709_v2 = vld [vmem:[#allocation2 + $0x5c0] sm:$0xff]  ;;  %v5937_v3 = vcombine.high %v581_v0, %v585_v1  ;;  %v5936_v5 = vcombine.low %v581_v0, %v585_v1  ;;  %s517_s29 = scalar_select %p516_p7, %s7743_s21, 1 }
  0xb2   : > { %v713_v4 = vld [vmem:[#allocation2 + $0x5e0] sm:$0xff]  ;;  %s515_s25 = scalar_lea.vmem [#allocation19], %s5873_s4  ;;  %s8071_s1 = scalar_lea.hbm %s8123_s11, %s6547_s26 }
  0xb3   : > { %v573_v6 = vld [vmem:[#allocation2 + $0x180] sm:$0xff]  ;;  %v6065_v8 = vcombine.high %v709_v2, %v713_v4  ;;  %v6064_v9 = vcombine.low %v709_v2, %v713_v4  ;;  %2505 = vmatprep.subr.bf16.mxu0 %v5937_v3  ;;  %s6601_s15 = smul.u32 20, %s517_s29  ;;  %s5692_s30 = sshll.u32 %s515_s25, 4  ;;  %s8073_s30 = int_to_ptr.vmem [resolvable:$true] %s5692_s30 }
  0xb4   : > { %v577_v7 = vld [vmem:[#allocation2 + $0x1a0] sm:$0xff]  ;;  %2506 = vmatpush1.bf16.msra.mxu0 %v5936_v5  ;;  %s5679_s13 = scalar_lea.sflag [#allocation4], %s513_s22  ;;  %s7554_s29 = scalar_lea.vmem %s8073_s30, 128 }
  0xb5   : > { %v5929_v10 = vcombine.high %v573_v6, %v577_v7  ;;  %v701_v11 = vld [vmem:[#allocation2 + $0x580] sm:$0xff]  ;;  %2546 = vmatprep.subr.bf16.mxu1 %v6065_v8  ;;  %v5928_v18 = vcombine.low %v573_v6, %v577_v7  ;;  %s7897_s12 = scalar_lea.vmem %s8112_s0, %s6601_s15  ;;  %p7555_p8 = scmp.ne.s32.totalorder %s8073_s30, %s7554_s29 }
  0xb6   : > { %v705_v12 = vld [vmem:[#allocation2 + $0x5a0] sm:$0xff]  ;;  %2547 = vmatpush1.bf16.msra.mxu1 %v6064_v9  ;;  %v7903_v54 = vld [vmem:[%s7897_s12 + $0x8] sm:$0xff]  ;;  %p8152_p11 = scmp.ne.s32.totalorder %s8131_s27, 0  ;;  %s7661_s21 = smov [#allocation19]  }
  0xb7   : > { %v565_v13 = vld [vmem:[#allocation2 + $0x140] sm:$0xff]  ;;  %v6057_v14 = vcombine.high %v701_v11, %v705_v12  ;;  %2507 = vmatprep.subr.bf16.mxu0 %v5929_v10  ;;  %v6056_v19 = vcombine.low %v701_v11, %v705_v12  ;;  %v7911_v59 = vcombine.high %v7903_v54, %v7903_v54  ;;  %s7558_s15 = sshll.u32 %s7661_s21, 4  ;;  %s7559_s15 = int_to_ptr.vmem [resolvable:$false] %s7558_s15 }
  0xb8   : > { %v569_v15 = vld [vmem:[#allocation2 + $0x160] sm:$0xff]  ;;  %2508 = vmatpush1.bf16.msra.mxu0 %v5928_v18  ;;  %p7556_p13 = pnand %p7555_p8, %p8152_p11  ;;  %s7560_s24 = scalar_lea.vmem %s7559_s15, 256 }
  0xb9   : > { %v693_v16 = vld [vmem:[#allocation2 + $0x540] sm:$0xff]  ;;  %v5921_v20 = vcombine.high %v565_v13, %v569_v15  ;;  %2548 = vmatprep.subr.bf16.mxu1 %v6057_v14  ;;  %v5920_v26 = vcombine.low %v565_v13, %v569_v15  ;;  %2578 = vmatprep.mubr.bf16.mxu1 %v7911_v59  ;;  %p7561_p1 = scmp.lt.s32.totalorder %s8073_s30, %s7559_s15  ;;  %p7562_p2 = scmp.lt.s32.totalorder %s7560_s24, %s7554_s29 }
  0xba   : > { %v697_v17 = vld [vmem:[#allocation2 + $0x560] sm:$0xff]  ;;  %2549 = vmatpush1.bf16.msra.mxu1 %v6056_v19  ;;  %p7557_p0 = pneg %p7556_p13 }
  0xbb   : > { %v6049_v21 = vcombine.high %v693_v16, %v697_v17  ;;  %v557_v22 = vld [vmem:[#allocation2 + $0x100] sm:$0xff]  ;;  %2509 = vmatprep.subr.bf16.mxu0 %v5921_v20  ;;  %v6048_v27 = vcombine.low %v693_v16, %v697_v17  ;;  %p7563_p12 = por %p7562_p2, %p7561_p1 }
  0xbc   : > { %v561_v23 = vld [vmem:[#allocation2 + $0x120] sm:$0xff]  ;;  %2510 = vmatpush1.bf16.msra.mxu0 %v5920_v26 }
  0xbd   : > { %v685_v24 = vld [vmem:[#allocation2 + $0x500] sm:$0xff]  ;;  %v5913_v28 = vcombine.high %v557_v22, %v561_v23  ;;  %2550 = vmatprep.subr.bf16.mxu1 %v6049_v21  ;;  %v5912_v34 = vcombine.low %v557_v22, %v561_v23  ;;  %p7564_p3 = pnand %p7563_p12, %p7557_p0 }
  0xbe   : > { %v689_v25 = vld [vmem:[#allocation2 + $0x520] sm:$0xff]  ;;  %2551 = vmatpush1.bf16.msra.mxu1 %v6048_v27 }
  0xbf   : > { %v6041_v29 = vcombine.high %v685_v24, %v689_v25  ;;  %v549_v30 = vld [vmem:[#allocation2 + $0xc0] sm:$0xff]  ;;  %2511 = vmatprep.subr.bf16.mxu0 %v5913_v28  ;;  %v6040_v35 = vcombine.low %v685_v24, %v689_v25 }
  0xc0   : > { %v553_v31 = vld [vmem:[#allocation2 + $0xe0] sm:$0xff]  ;;  %2512 = vmatpush1.bf16.msra.mxu0 %v5912_v34 }
  0xc1   : > { %v677_v32 = vld [vmem:[#allocation2 + $0x4c0] sm:$0xff]  ;;  %v5905_v36 = vcombine.high %v549_v30, %v553_v31  ;;  %2552 = vmatprep.subr.bf16.mxu1 %v6041_v29  ;;  %v5904_v42 = vcombine.low %v549_v30, %v553_v31 }
  0xc2   : > { %v681_v33 = vld [vmem:[#allocation2 + $0x4e0] sm:$0xff]  ;;  %2553 = vmatpush1.bf16.msra.mxu1 %v6040_v35 }
  0xc3   : > { %v6033_v37 = vcombine.high %v677_v32, %v681_v33  ;;  %v541_v38 = vld [vmem:[#allocation2 + $0x80] sm:$0xff]  ;;  %2513 = vmatprep.subr.bf16.mxu0 %v5905_v36  ;;  %v6032_v43 = vcombine.low %v677_v32, %v681_v33 }
  0xc4   : > { %v545_v39 = vld [vmem:[#allocation2 + $0xa0] sm:$0xff]  ;;  %2514 = vmatpush1.bf16.msra.mxu0 %v5904_v42 }
  0xc5   : > { %v669_v40 = vld [vmem:[#allocation2 + $0x480] sm:$0xff]  ;;  %v5897_v44 = vcombine.high %v541_v38, %v545_v39  ;;  %2554 = vmatprep.subr.bf16.mxu1 %v6033_v37  ;;  %v5896_v50 = vcombine.low %v541_v38, %v545_v39 }
  0xc6   : > { %v673_v41 = vld [vmem:[#allocation2 + $0x4a0] sm:$0xff]  ;;  %2555 = vmatpush1.bf16.msra.mxu1 %v6032_v43 }
  0xc7   : > { %v6025_v45 = vcombine.high %v669_v40, %v673_v41  ;;  %v533_v46 = vld [vmem:[#allocation2 + $0x40] sm:$0xff]  ;;  %2515 = vmatprep.subr.bf16.mxu0 %v5897_v44  ;;  %v6024_v51 = vcombine.low %v669_v40, %v673_v41 }
  0xc8   : > { %v537_v47 = vld [vmem:[#allocation2 + $0x60] sm:$0xff]  ;;  %2516 = vmatpush1.bf16.msra.mxu0 %v5896_v50 }
  0xc9   : > { %v661_v48 = vld [vmem:[#allocation2 + $0x440] sm:$0xff]  ;;  %v5889_v52 = vcombine.high %v533_v46, %v537_v47  ;;  %2556 = vmatprep.subr.bf16.mxu1 %v6025_v45  ;;  %v5888_v62 = vcombine.low %v533_v46, %v537_v47 }
  0xca   : > { %v665_v49 = vld [vmem:[#allocation2 + $0x460] sm:$0xff]  ;;  %2557 = vmatpush1.bf16.msra.mxu1 %v6024_v51 }
  0xcb   : > { %v7900_v53 = vld [vmem:[%s7897_s12] sm:$0xff]  ;;  %v6017_v55 = vcombine.high %v661_v48, %v665_v49  ;;  %2517 = vmatprep.subr.bf16.mxu0 %v5889_v52  ;;  %v6016_v63 = vcombine.low %v661_v48, %v665_v49 }
  0xcc   : > { %v525_v56 = vld [vmem:[#allocation2] sm:$0xff]  ;;  %v7907_v58 = vcombine.high %v7900_v53, %v7900_v53  ;;  %2518 = vmatpush1.bf16.msra.mxu0 %v5888_v62 }
  0xcd   : > { %v529_v57 = vld [vmem:[#allocation2 + $0x20] sm:$0xff]  ;;  %2558 = vmatprep.subr.bf16.mxu1 %v6017_v55 }
  0xce   : > { %v653_v60 = vld [vmem:[#allocation2 + $0x400] sm:$0xff]  ;;  %2537 = vmatprep.mubr.bf16.mxu0 %v7907_v58  ;;  %v5881_v0 = vcombine.high %v525_v56, %v529_v57  ;;  %v5880_v6 = vcombine.low %v525_v56, %v529_v57  ;;  %2559 = vmatpush1.bf16.msra.mxu1 %v6016_v63 }
  0xcf   : > { %v657_v61 = vld [vmem:[#allocation2 + $0x420] sm:$0xff] }
  0xd0   : > { %v6009_v1 = vcombine.high %v653_v60, %v657_v61  ;;  %v645_v2 = vld [vmem:[#allocation2 + $0x3c0] sm:$0xff]  ;;  %2519 = vmatprep.subr.bf16.mxu0 %v5881_v0  ;;  %v6008_v7 = vcombine.low %v653_v60, %v657_v61 }
  0xd1   : > { %v649_v3 = vld [vmem:[#allocation2 + $0x3e0] sm:$0xff]  ;;  %2520 = vmatpush1.bf16.msra.mxu0 %v5880_v6 }
  0xd2   : > { %v773_v4 = vld [vmem:[#allocation2 + $0x7c0] sm:$0xff]  ;;  %v6001_v8 = vcombine.high %v645_v2, %v649_v3  ;;  %2560 = vmatprep.subr.bf16.mxu1 %v6009_v1  ;;  %v6000_v14 = vcombine.low %v645_v2, %v649_v3 }
  0xd3   : > { %v777_v5 = vld [vmem:[#allocation2 + $0x7e0] sm:$0xff]  ;;  %2561 = vmatpush1.bf16.msra.mxu1 %v6008_v7 }
  0xd4   : > { %v6129_v9 = vcombine.high %v773_v4, %v777_v5  ;;  %v637_v10 = vld [vmem:[#allocation2 + $0x380] sm:$0xff]  ;;  %2521 = vmatprep.subr.bf16.mxu0 %v6001_v8  ;;  %v6128_v15 = vcombine.low %v773_v4, %v777_v5  ;;  %v582_v8 = vld [vmem:[#allocation2 + $0x1c8] sm:$0xff] }
  0xd5   : > { %v641_v11 = vld [vmem:[#allocation2 + $0x3a0] sm:$0xff]  ;;  %2522 = vmatpush2.bf16.msra.mxu0 %v6000_v14 }
  0xd6   : > { %v765_v12 = vld [vmem:[#allocation2 + $0x780] sm:$0xff]  ;;  %v5993_v16 = vcombine.high %v637_v10, %v641_v11  ;;  %2562 = vmatprep.subr.bf16.mxu1 %v6129_v9  ;;  %v5992_v22 = vcombine.low %v637_v10, %v641_v11  ;;  %v586_v9 = vld [vmem:[#allocation2 + $0x1e8] sm:$0xff] }
  0xd7   : > { %v769_v13 = vld [vmem:[#allocation2 + $0x7a0] sm:$0xff]  ;;  %2563 = vmatpush2.bf16.msra.mxu1 %v6128_v15 }
  0xd8   : > { %v6121_v17 = vcombine.high %v765_v12, %v769_v13  ;;  %v629_v18 = vld [vmem:[#allocation2 + $0x340] sm:$0xff]  ;;  %2523 = vmatprep.subr.bf16.mxu0 %v5993_v16  ;;  %v6120_v23 = vcombine.low %v765_v12, %v769_v13  ;;  %v5939_v13 = vcombine.high %v582_v8, %v586_v9  ;;  %v7917_v16 = vcombine.low %v7900_v53, %v7900_v53 }
  0xd9   : > { %v633_v19 = vld [vmem:[#allocation2 + $0x360] sm:$0xff]  ;;  %2524 = vmatpush2.bf16.msra.mxu0 %v5992_v22 }
  0xda   : > { %v757_v20 = vld [vmem:[#allocation2 + $0x740] sm:$0xff]  ;;  %v5985_v24 = vcombine.high %v629_v18, %v633_v19  ;;  %2564 = vmatprep.subr.bf16.mxu1 %v6121_v17  ;;  %v5984_v30 = vcombine.low %v629_v18, %v633_v19  ;;  %v574_v17 = vld [vmem:[#allocation2 + $0x188] sm:$0xff]  ;;  %v7921_v19 = vcombine.low %v7903_v54, %v7903_v54 }
  0xdb   : > { %v761_v21 = vld [vmem:[#allocation2 + $0x760] sm:$0xff]  ;;  %2565 = vmatpush2.bf16.msra.mxu1 %v6120_v23  ;;  %v578_v18 = vld [vmem:[#allocation2 + $0x1a8] sm:$0xff] }
  0xdc   : > { %v6113_v25 = vcombine.high %v757_v20, %v761_v21  ;;  %v621_v26 = vld [vmem:[#allocation2 + $0x300] sm:$0xff]  ;;  %2525 = vmatprep.subr.bf16.mxu0 %v5985_v24  ;;  %v6112_v31 = vcombine.low %v757_v20, %v761_v21  ;;  %v5938_v21 = vcombine.low %v582_v8, %v586_v9  ;;  %v5930_v54 = vcombine.low %v574_v17, %v578_v18 }
  0xdd   : > { %v625_v27 = vld [vmem:[#allocation2 + $0x320] sm:$0xff]  ;;  %2526 = vmatpush2.bf16.msra.mxu0 %v5984_v30 }
  0xde   : > { %v749_v28 = vld [vmem:[#allocation2 + $0x700] sm:$0xff]  ;;  %v5977_v32 = vcombine.high %v621_v26, %v625_v27  ;;  %2566 = vmatprep.subr.bf16.mxu1 %v6113_v25  ;;  %v5976_v38 = vcombine.low %v621_v26, %v625_v27  ;;  %v5931_v25 = vcombine.high %v574_v17, %v578_v18  ;;  %v566_v26 = vld [vmem:[#allocation2 + $0x148] sm:$0xff]  ;;  %v7928_v18 = vld [vmem:[%s7897_s12 + $0x10] ss:$0 sps:$4 sm:$0xff]  }
  0xdf   : > { %v753_v29 = vld [vmem:[#allocation2 + $0x720] sm:$0xff]  ;;  %2567 = vmatpush2.bf16.msra.mxu1 %v6112_v31  ;;  %v570_v27 = vld [vmem:[#allocation2 + $0x168] sm:$0xff] }
  0xe0   : > { %v6105_v33 = vcombine.high %v749_v28, %v753_v29  ;;  %v613_v34 = vld [vmem:[#allocation2 + $0x2c0] sm:$0xff]  ;;  %2527 = vmatprep.subr.bf16.mxu0 %v5977_v32  ;;  %v6104_v39 = vcombine.low %v749_v28, %v753_v29  ;;  %v558_v31 = vld [vmem:[#allocation2 + $0x108] sm:$0xff]  ;;  %v5923_v32 = vcombine.high %v566_v26, %v570_v27 }
  0xe1   : > { %v617_v35 = vld [vmem:[#allocation2 + $0x2e0] sm:$0xff]  ;;  %2528 = vmatpush2.bf16.msra.mxu0 %v5976_v38 }
  0xe2   : > { %v741_v36 = vld [vmem:[#allocation2 + $0x6c0] sm:$0xff]  ;;  %v5969_v40 = vcombine.high %v613_v34, %v617_v35  ;;  %2568 = vmatprep.subr.bf16.mxu1 %v6105_v33  ;;  %v5968_v46 = vcombine.low %v613_v34, %v617_v35  ;;  %v562_v33 = vld [vmem:[#allocation2 + $0x128] sm:$0xff]  ;;  %v7658_v34 = vmov 0  }
  0xe3   : > { %v745_v37 = vld [vmem:[#allocation2 + $0x6e0] sm:$0xff]  ;;  %2569 = vmatpush2.bf16.msra.mxu1 %v6104_v39 }
  0xe4   : > { %v6097_v41 = vcombine.high %v741_v36, %v745_v37  ;;  %v605_v42 = vld [vmem:[#allocation2 + $0x280] sm:$0xff]  ;;  %2529 = vmatprep.subr.bf16.mxu0 %v5969_v40  ;;  %v6096_v47 = vcombine.low %v741_v36, %v745_v37  ;;  %v5922_v36 = vcombine.low %v566_v26, %v570_v27  ;;  %v550_v40 = vld [vmem:[#allocation2 + $0xc8] sm:$0xff] }
  0xe5   : > { %v609_v43 = vld [vmem:[#allocation2 + $0x2a0] sm:$0xff]  ;;  %2530 = vmatpush2.bf16.msra.mxu0 %v5968_v46 }
  0xe6   : > { %v733_v44 = vld [vmem:[#allocation2 + $0x680] sm:$0xff]  ;;  %v5961_v48 = vcombine.high %v605_v42, %v609_v43  ;;  %2570 = vmatprep.subr.bf16.mxu1 %v6097_v41  ;;  %v5960_v56 = vcombine.low %v605_v42, %v609_v43  ;;  %v5915_v41 = vcombine.high %v558_v31, %v562_v33  ;;  %v554_v42 = vld [vmem:[#allocation2 + $0xe8] sm:$0xff] }
  0xe7   : > { %v737_v45 = vld [vmem:[#allocation2 + $0x6a0] sm:$0xff]  ;;  %2571 = vmatpush2.bf16.msra.mxu1 %v6096_v47 }
  0xe8   : > { %v6089_v49 = vcombine.high %v733_v44, %v737_v45  ;;  %v597_v50 = vld [vmem:[#allocation2 + $0x240] sm:$0xff]  ;;  %2531 = vmatprep.subr.bf16.mxu0 %v5961_v48  ;;  %v6088_v57 = vcombine.low %v733_v44, %v737_v45  ;;  %v5914_v44 = vcombine.low %v558_v31, %v562_v33  ;;  %v542_v48 = vld [vmem:[#allocation2 + $0x88] sm:$0xff] }
  0xe9   : > { %v601_v51 = vld [vmem:[#allocation2 + $0x260] sm:$0xff]  ;;  %2532 = vmatpush2.bf16.msra.mxu0 %v5960_v56  ;;  %v698_v31 = vld [vmem:[#allocation2 + $0x568] sm:$0xff] }
  0xea   : > { %v725_v52 = vld [vmem:[#allocation2 + $0x640] sm:$0xff]  ;;  %v5953_v60 = vcombine.high %v597_v50, %v601_v51  ;;  %2572 = vmatprep.subr.bf16.mxu1 %v6089_v49  ;;  %v5952_v2 = vcombine.low %v597_v50, %v601_v51  ;;  %v5907_v49 = vcombine.high %v550_v40, %v554_v42  ;;  %v546_v50 = vld [vmem:[#allocation2 + $0xa8] sm:$0xff] }
  0xeb   : > { %v729_v55 = vld [vmem:[#allocation2 + $0x660] sm:$0xff]  ;;  %2573 = vmatpush2.bf16.msra.mxu1 %v6088_v57 }
  0xec   : > { %v6081_v61 = vcombine.high %v725_v52, %v729_v55  ;;  %v589_v62 = vld [vmem:[#allocation2 + $0x200] sm:$0xff]  ;;  %2533 = vmatprep.subr.bf16.mxu0 %v5953_v60  ;;  %v6080_v3 = vcombine.low %v725_v52, %v729_v55  ;;  %v5906_v52 = vcombine.low %v550_v40, %v554_v42  ;;  %v534_v60 = vld [vmem:[#allocation2 + $0x48] sm:$0xff] }
  0xed   : > { %v593_v63 = vld [vmem:[#allocation2 + $0x220] sm:$0xff]  ;;  %2534 = vmatpush2.bf16.msra.mxu0 %v5952_v2  ;;  %v690_v40 = vld [vmem:[#allocation2 + $0x528] sm:$0xff] }
  0xee   : > { %v717_v0 = vld [vmem:[#allocation2 + $0x600] sm:$0xff]  ;;  %v5945_v4 = vcombine.high %v589_v62, %v593_v63  ;;  %2574 = vmatprep.subr.bf16.mxu1 %v6081_v61  ;;  %v5944_v10 = vcombine.low %v589_v62, %v593_v63  ;;  %v5899_v61 = vcombine.high %v542_v48, %v546_v50  ;;  %v538_v62 = vld [vmem:[#allocation2 + $0x68] sm:$0xff] }
  0xef   : > { %v721_v1 = vld [vmem:[#allocation2 + $0x620] sm:$0xff]  ;;  %2575 = vmatpush2.bf16.msra.mxu1 %v6080_v3  ;;  %v5890_v8 = vcombine.low %v534_v60, %v538_v62 }
  0xf0   : > { %v6073_v5 = vcombine.high %v717_v0, %v721_v1  ;;  %v837_v6 = vld [vmem:[#allocation2 + $0x9c0] sm:$0xff]  ;;  %2535 = vmatprep.subr.bf16.mxu0 %v5945_v4  ;;  %v6072_v11 = vcombine.low %v717_v0, %v721_v1  ;;  %v5898_v0 = vcombine.low %v542_v48, %v546_v50  ;;  %v526_v4 = vld [vmem:[#allocation2 + $0x8] sm:$0xff] }
  0xf1   : > { %v841_v7 = vld [vmem:[#allocation2 + $0x9e0] sm:$0xff]  ;;  %2536 = vmatpush2.bf16.msra.mxu0 %v5944_v10  ;;  %v646_v10 = vld [vmem:[#allocation2 + $0x3c8] sm:$0xff] }
  0xf2   : > { %v6193_v12 = vcombine.high %v837_v6, %v841_v7  ;;  %2576 = vmatprep.subr.bf16.mxu1 %v6073_v5  ;;  %v829_v14 = vld [vmem:[#allocation2 + $0x980] sm:$0xff]  ;;  %v6192_v20 = vcombine.low %v837_v6, %v841_v7  ;;  %v5891_v5 = vcombine.high %v534_v60, %v538_v62  ;;  %v530_v6 = vld [vmem:[#allocation2 + $0x28] sm:$0xff] }
  0xf3   : > { %v833_v15 = vld [vmem:[#allocation2 + $0x9a0] sm:$0xff]  ;;  %2577 = vmatpush2.bf16.msra.mxu1 %v6072_v11  ;;  %v650_v11 = vld [vmem:[#allocation2 + $0x3e8] sm:$0xff]  ;;  %v5882_v17 = vcombine.low %v526_v4, %v530_v6 }
  0xf4   : > { %2587 = vmatprep.subr.bf16.mxu0 %v6193_v12  ;;  %v6185_v22 = vcombine.high %v829_v14, %v833_v15  ;;  %v821_v23 = vld [vmem:[#allocation2 + $0x940] sm:$0xff]  ;;  %2628 = vmatprep.subr.bf16.mxu1 %v5939_v13  ;;  %v6184_v53 = vcombine.low %v829_v14, %v833_v15  ;;  %v710_v12 = vld [vmem:[#allocation2 + $0x5c8] sm:$0xff]  ;;  %v5883_v13 = vcombine.high %v526_v4, %v530_v6 }
  0xf5   : > { %v825_v24 = vld [vmem:[#allocation2 + $0x960] sm:$0xff]  ;;  %2538 = vmatmul.mubr.bf16.vlgmr.msra.gmra.mxu0 %v7917_v16  ;;  %v714_v14 = vld [vmem:[#allocation2 + $0x5e8] sm:$0xff]  ;;  %v6002_v27 = vcombine.low %v646_v10, %v650_v11 }
  0xf6   : > { %2579 = vmatmul.mubr.bf16.vlgmr.msra.gmra.mxu1 %v7921_v19  ;;  %2588 = vmatpush1.bf16.msra.mxu0 %v6192_v20  ;;  %v6177_v28 = vcombine.high %v821_v23, %v825_v24  ;;  %v813_v29 = vld [vmem:[#allocation2 + $0x900] sm:$0xff]  ;;  %v6176_v35 = vcombine.low %v821_v23, %v825_v24  ;;  %v6067_v20 = vcombine.high %v710_v12, %v714_v14  ;;  %v702_v23 = vld [vmem:[#allocation2 + $0x588] sm:$0xff] }
  0xf7   : > { %2629 = vmatpush1.bf16.msra.mxu1 %v5938_v21  ;;  %2589 = vmatprep.subr.bf16.mxu0 %v6185_v22  ;;  %v817_v30 = vld [vmem:[#allocation2 + $0x920] sm:$0xff]  ;;  %v638_v21 = vld [vmem:[#allocation2 + $0x388] sm:$0xff]  ;;  %v6003_v24 = vcombine.high %v646_v10, %v650_v11  ;;  %v6066_v26 = vcombine.low %v710_v12, %v714_v14 }
  0xf8   : > { %2630 = vmatprep.subr.bf16.mxu1 %v5931_v25  ;;  %2619 = vmatprep.mubr.bf16.mxu0 %v7658_v34  ;;  %v6169_v37 = vcombine.high %v813_v29, %v817_v30  ;;  %v805_v38 = vld [vmem:[#allocation2 + $0x8c0] sm:$0xff]  ;;  %v6168_v43 = vcombine.low %v813_v29, %v817_v30  ;;  %v642_v22 = vld [vmem:[#allocation2 + $0x3a8] sm:$0xff] }
  0xf9   : > { %2660 = vmatprep.mubr.bf16.mxu1 %v7907_v58  ;;  %v809_v39 = vld [vmem:[#allocation2 + $0x8e0] sm:$0xff]  ;;  %v706_v25 = vld [vmem:[#allocation2 + $0x5a8] sm:$0xff]  ;;  %v5995_v30 = vcombine.high %v638_v21, %v642_v22  ;;  %v5994_v33 = vcombine.low %v638_v21, %v642_v22 }
  0xfa   : > { %2590 = vmatpush1.bf16.msra.mxu0 %v6184_v53  ;;  %v6161_v45 = vcombine.high %v805_v38, %v809_v39  ;;  %v797_v46 = vld [vmem:[#allocation2 + $0x880] sm:$0xff]  ;;  %v6160_v51 = vcombine.low %v805_v38, %v809_v39  ;;  %v6059_v53 = vcombine.high %v702_v23, %v706_v25  ;;  %v694_v29 = vld [vmem:[#allocation2 + $0x548] sm:$0xff] }
  0xfb   : > { %2631 = vmatpush1.bf16.msra.mxu1 %v5930_v54  ;;  %2591 = vmatprep.subr.bf16.mxu0 %v6177_v28  ;;  %v801_v47 = vld [vmem:[#allocation2 + $0x8a0] sm:$0xff]  ;;  %v630_v54 = vld [vmem:[#allocation2 + $0x348] sm:$0xff] }
  0xfc   : > { %2632 = vmatprep.subr.bf16.mxu1 %v5923_v32  ;;  %v6153_v55 = vcombine.high %v797_v46, %v801_v47  ;;  %v789_v56 = vld [vmem:[#allocation2 + $0x840] sm:$0xff]  ;;  %v6152_v63 = vcombine.low %v797_v46, %v801_v47  ;;  %v634_v28 = vld [vmem:[#allocation2 + $0x368] sm:$0xff]  ;;  %v6058_v32 = vcombine.low %v702_v23, %v706_v25 }
  0xfd   : > { %v793_v57 = vld [vmem:[#allocation2 + $0x860] sm:$0xff]  ;;  %v686_v38 = vld [vmem:[#allocation2 + $0x508] sm:$0xff]  ;;  %v5987_v39 = vcombine.high %v630_v54, %v634_v28  ;;  %v5986_v42 = vcombine.low %v630_v54, %v634_v28 }
  0xfe   : > { %2592 = vmatpush1.bf16.msra.mxu0 %v6176_v35  ;;  %v6145_v1 = vcombine.high %v789_v56, %v793_v57  ;;  %v781_v2 = vld [vmem:[#allocation2 + $0x800] sm:$0xff]  ;;  %v6144_v7 = vcombine.low %v789_v56, %v793_v57  ;;  %v6051_v35 = vcombine.high %v694_v29, %v698_v31  ;;  %v678_v46 = vld [vmem:[#allocation2 + $0x4c8] sm:$0xff] }
  0xff   : > { %2633 = vmatpush1.bf16.msra.mxu1 %v5922_v36  ;;  %2593 = vmatprep.subr.bf16.mxu0 %v6169_v37  ;;  %v785_v3 = vld [vmem:[#allocation2 + $0x820] sm:$0xff]  ;;  %v622_v36 = vld [vmem:[#allocation2 + $0x308] sm:$0xff] }
 0x100   : > { %2634 = vmatprep.subr.bf16.mxu1 %v5915_v41  ;;  %v6137_v9 = vcombine.high %v781_v2, %v785_v3  ;;  %v6136_v15 = vcombine.low %v781_v2, %v785_v3  ;;  %v626_v37 = vld [vmem:[#allocation2 + $0x328] sm:$0xff]  ;;  %v6050_v41 = vcombine.low %v694_v29, %v698_v31 }
 0x101   : > { %v5979_v47 = vcombine.high %v622_v36, %v626_v37  ;;  %v682_v48 = vld [vmem:[#allocation2 + $0x4e8] sm:$0xff]  ;;  %v5978_v50 = vcombine.low %v622_v36, %v626_v37 }
 0x102   : > { %2594 = vmatpush1.bf16.msra.mxu0 %v6168_v43  ;;  %v6043_v43 = vcombine.high %v686_v38, %v690_v40  ;;  %v670_v56 = vld [vmem:[#allocation2 + $0x488] sm:$0xff] }
 0x103   : > { %2635 = vmatpush1.bf16.msra.mxu1 %v5914_v44  ;;  %2595 = vmatprep.subr.bf16.mxu0 %v6161_v45  ;;  %v614_v44 = vld [vmem:[#allocation2 + $0x2c8] sm:$0xff] }
 0x104   : > { %2636 = vmatprep.subr.bf16.mxu1 %v5907_v49  ;;  %v618_v45 = vld [vmem:[#allocation2 + $0x2e8] sm:$0xff]  ;;  %v6042_v49 = vcombine.low %v686_v38, %v690_v40 }
 0x105   : > { %v5971_v57 = vcombine.high %v614_v44, %v618_v45  ;;  %v674_v60 = vld [vmem:[#allocation2 + $0x4a8] sm:$0xff]  ;;  %v5970_v62 = vcombine.low %v614_v44, %v618_v45 }
 0x106   : > { %2596 = vmatpush1.bf16.msra.mxu0 %v6160_v51  ;;  %v6035_v51 = vcombine.high %v678_v46, %v682_v48  ;;  %v662_v2 = vld [vmem:[#allocation2 + $0x448] sm:$0xff] }
 0x107   : > { %2637 = vmatpush1.bf16.msra.mxu1 %v5906_v52  ;;  %2597 = vmatprep.subr.bf16.mxu0 %v6153_v55  ;;  %v606_v52 = vld [vmem:[#allocation2 + $0x288] sm:$0xff] }
 0x108   : > { %2638 = vmatprep.subr.bf16.mxu1 %v5899_v61  ;;  %v610_v55 = vld [vmem:[#allocation2 + $0x2a8] sm:$0xff]  ;;  %v6034_v61 = vcombine.low %v678_v46, %v682_v48 }
 0x109   : > { %v5963_v3 = vcombine.high %v606_v52, %v610_v55  ;;  %v666_v4 = vld [vmem:[#allocation2 + $0x468] sm:$0xff]  ;;  %v5962_v6 = vcombine.low %v606_v52, %v610_v55 }
 0x10a   : > { %2598 = vmatpush1.bf16.msra.mxu0 %v6152_v63  ;;  %v6027_v63 = vcombine.high %v670_v56, %v674_v60  ;;  %v654_v10 = vld [vmem:[#allocation2 + $0x408] sm:$0xff] }
 0x10b   : > { %2639 = vmatpush1.bf16.msra.mxu1 %v5898_v0  ;;  %2599 = vmatprep.subr.bf16.mxu0 %v6145_v1  ;;  %v598_v0 = vld [vmem:[#allocation2 + $0x248] sm:$0xff] }
 0x10c   : > { %2640 = vmatprep.subr.bf16.mxu1 %v5891_v5  ;;  %v602_v1 = vld [vmem:[#allocation2 + $0x268] sm:$0xff]  ;;  %v6026_v5 = vcombine.low %v670_v56, %v674_v60 }
 0x10d   : > { %v5955_v11 = vcombine.high %v598_v0, %v602_v1  ;;  %v658_v12 = vld [vmem:[#allocation2 + $0x428] sm:$0xff]  ;;  %v5954_v14 = vcombine.low %v598_v0, %v602_v1 }
 0x10e   : > { %2600 = vmatpush1.bf16.msra.mxu0 %v6144_v7  ;;  %v6019_v7 = vcombine.high %v662_v2, %v666_v4  ;;  %v838_v21 = vld [vmem:[#allocation2 + $0x9c8] sm:$0xff] }
 0x10f   : > { %2641 = vmatpush1.bf16.msra.mxu1 %v5890_v8  ;;  %2601 = vmatprep.subr.bf16.mxu0 %v6137_v9  ;;  %v590_v8 = vld [vmem:[#allocation2 + $0x208] sm:$0xff] }
 0x110   : > { %2642 = vmatprep.subr.bf16.mxu1 %v5883_v13  ;;  %v594_v9 = vld [vmem:[#allocation2 + $0x228] sm:$0xff]  ;;  %v6018_v13 = vcombine.low %v662_v2, %v666_v4 }
 0x111   : > { %v5947_v22 = vcombine.high %v590_v8, %v594_v9  ;;  %v842_v23 = vld [vmem:[#allocation2 + $0x9e8] sm:$0xff]  ;;  %v5946_v25 = vcombine.low %v590_v8, %v594_v9 }
 0x112   : > { %2602 = vmatpush1.bf16.msra.mxu0 %v6136_v15  ;;  %v6011_v15 = vcombine.high %v654_v10, %v658_v12  ;;  %v830_v54 = vld [vmem:[#allocation2 + $0x988] sm:$0xff]  ;;  %v6195_v28 = vcombine.high %v838_v21, %v842_v23  ;;  %v6194_v31 = vcombine.low %v838_v21, %v842_v23 }
 0x113   : > { %2643 = vmatpush1.bf16.msra.mxu1 %v5882_v17  ;;  %2669 = vmatprep.subr.bf16.mxu0 %v6067_v20  ;;  %v774_v17 = vld [vmem:[#allocation2 + $0x7c8] sm:$0xff] }
 0x114   : > { %2644 = vmatprep.subr.bf16.mxu1 %v6003_v24  ;;  %v778_v20 = vld [vmem:[#allocation2 + $0x7e8] sm:$0xff]  ;;  %v6010_v24 = vcombine.low %v654_v10, %v658_v12 }
 0x115   : > { %2620 = vmatmul.mubr.bf16.vlgmr.msra.gmra.mxu0 %v7928_v18  ;;  %v834_v29 = vld [vmem:[#allocation2 + $0x9a8] sm:$0xff] }
 0x116   : > { %2670 = vmatpush1.bf16.msra.mxu0 %v6066_v26  ;;  %2701 = vmatprep.mubr.bf16.mxu0 %v7911_v59  ;;  %v6131_v26 = vcombine.high %v774_v17, %v778_v20  ;;  %v6187_v36 = vcombine.high %v830_v54, %v834_v29  ;;  %v822_v37 = vld [vmem:[#allocation2 + $0x948] sm:$0xff]  ;;  %v6186_v40 = vcombine.low %v830_v54, %v834_v29  ;;  %v715_v54 = vld [vmem:[#allocation2 + $0x5f0] sm:$0xff] }
 0x117   : > { %2645 = vmatpush2.bf16.msra.mxu1 %v6002_v27  ;;  %2671 = vmatprep.subr.bf16.mxu0 %v6059_v53  ;;  %v766_v27 = vld [vmem:[#allocation2 + $0x788] sm:$0xff] }
 0x118   : > { %2646 = vmatprep.subr.bf16.mxu1 %v5995_v30  ;;  %v770_v53 = vld [vmem:[#allocation2 + $0x7a8] sm:$0xff]  ;;  %v6130_v30 = vcombine.low %v774_v17, %v778_v20 }
 0x119   : > { %v826_v38 = vld [vmem:[#allocation2 + $0x968] sm:$0xff] }
 0x11a   : > { %2672 = vmatpush1.bf16.msra.mxu0 %v6058_v32  ;;  %v6123_v32 = vcombine.high %v766_v27, %v770_v53  ;;  %v814_v44 = vld [vmem:[#allocation2 + $0x908] sm:$0xff]  ;;  %v6179_v45 = vcombine.high %v822_v37, %v826_v38  ;;  %v6178_v48 = vcombine.low %v822_v37, %v826_v38 }
 0x11b   : > { %2647 = vmatpush2.bf16.msra.mxu1 %v5994_v33  ;;  %2673 = vmatprep.subr.bf16.mxu0 %v6051_v35  ;;  %v758_v33 = vld [vmem:[#allocation2 + $0x748] sm:$0xff] }
 0x11c   : > { %2648 = vmatprep.subr.bf16.mxu1 %v5987_v39  ;;  %v762_v35 = vld [vmem:[#allocation2 + $0x768] sm:$0xff]  ;;  %v6122_v39 = vcombine.low %v766_v27, %v770_v53  ;;  %v711_v27 = vld [vmem:[#allocation2 + $0x5d0] sm:$0xff] }
 0x11d   : > { %v818_v46 = vld [vmem:[#allocation2 + $0x928] sm:$0xff]  ;;  %v6068_v38 = vcombine.low %v711_v27, %v715_v54 }
 0x11e   : > { %2674 = vmatpush1.bf16.msra.mxu0 %v6050_v41  ;;  %v6115_v41 = vcombine.high %v758_v33, %v762_v35  ;;  %v806_v52 = vld [vmem:[#allocation2 + $0x8c8] sm:$0xff]  ;;  %v6171_v55 = vcombine.high %v814_v44, %v818_v46  ;;  %v6170_v60 = vcombine.low %v814_v44, %v818_v46  ;;  %v699_v44 = vld [vmem:[#allocation2 + $0x570] sm:$0xff] }
 0x11f   : > { %2649 = vmatpush2.bf16.msra.mxu1 %v5986_v42  ;;  %2675 = vmatprep.subr.bf16.mxu0 %v6043_v43  ;;  %v750_v42 = vld [vmem:[#allocation2 + $0x708] sm:$0xff] }
 0x120   : > { %2650 = vmatprep.subr.bf16.mxu1 %v5979_v47  ;;  %v754_v43 = vld [vmem:[#allocation2 + $0x728] sm:$0xff]  ;;  %v6114_v47 = vcombine.low %v758_v33, %v762_v35  ;;  %v703_v33 = vld [vmem:[#allocation2 + $0x590] sm:$0xff]  ;;  %v6069_v35 = vcombine.high %v711_v27, %v715_v54 }
 0x121   : > { %v810_v56 = vld [vmem:[#allocation2 + $0x8e8] sm:$0xff] }
 0x122   : > { %2676 = vmatpush1.bf16.msra.mxu0 %v6042_v49  ;;  %v6107_v49 = vcombine.high %v750_v42, %v754_v43  ;;  %v798_v0 = vld [vmem:[#allocation2 + $0x888] sm:$0xff]  ;;  %v6163_v1 = vcombine.high %v806_v52, %v810_v56  ;;  %v6162_v4 = vcombine.low %v806_v52, %v810_v56  ;;  %v691_v52 = vld [vmem:[#allocation2 + $0x530] sm:$0xff] }
 0x123   : > { %2651 = vmatpush2.bf16.msra.mxu1 %v5978_v50  ;;  %2677 = vmatprep.subr.bf16.mxu0 %v6035_v51  ;;  %v742_v50 = vld [vmem:[#allocation2 + $0x6c8] sm:$0xff] }
 0x124   : > { %2652 = vmatprep.subr.bf16.mxu1 %v5971_v57  ;;  %v746_v51 = vld [vmem:[#allocation2 + $0x6e8] sm:$0xff]  ;;  %v6106_v57 = vcombine.low %v750_v42, %v754_v43  ;;  %v695_v42 = vld [vmem:[#allocation2 + $0x550] sm:$0xff] }
 0x125   : > { %v802_v2 = vld [vmem:[#allocation2 + $0x8a8] sm:$0xff] }
 0x126   : > { %2678 = vmatpush1.bf16.msra.mxu0 %v6034_v61  ;;  %v6099_v61 = vcombine.high %v742_v50, %v746_v51  ;;  %v790_v8 = vld [vmem:[#allocation2 + $0x848] sm:$0xff]  ;;  %v6155_v9 = vcombine.high %v798_v0, %v802_v2  ;;  %v6154_v12 = vcombine.low %v798_v0, %v802_v2 }
 0x127   : > { %2653 = vmatpush2.bf16.msra.mxu1 %v5970_v62  ;;  %2679 = vmatprep.subr.bf16.mxu0 %v6027_v63  ;;  %v734_v62 = vld [vmem:[#allocation2 + $0x688] sm:$0xff] }
 0x128   : > { %2654 = vmatprep.subr.bf16.mxu1 %v5963_v3  ;;  %v738_v63 = vld [vmem:[#allocation2 + $0x6a8] sm:$0xff]  ;;  %v6098_v3 = vcombine.low %v742_v50, %v746_v51  ;;  %v687_v50 = vld [vmem:[#allocation2 + $0x510] sm:$0xff]  ;;  %v6053_v51 = vcombine.high %v695_v42, %v699_v44 }
 0x129   : > { %v794_v10 = vld [vmem:[#allocation2 + $0x868] sm:$0xff] }
 0x12a   : > { %2680 = vmatpush1.bf16.msra.mxu0 %v6026_v5  ;;  %v6091_v5 = vcombine.high %v734_v62, %v738_v63  ;;  %v782_v17 = vld [vmem:[#allocation2 + $0x808] sm:$0xff]  ;;  %v6147_v20 = vcombine.high %v790_v8, %v794_v10  ;;  %v6146_v23 = vcombine.low %v790_v8, %v794_v10 }
 0x12b   : > { %2655 = vmatpush2.bf16.msra.mxu1 %v5962_v6  ;;  %2681 = vmatprep.subr.bf16.mxu0 %v6019_v7  ;;  %v726_v6 = vld [vmem:[#allocation2 + $0x648] sm:$0xff] }
 0x12c   : > { %2656 = vmatprep.subr.bf16.mxu1 %v5955_v11  ;;  %v730_v7 = vld [vmem:[#allocation2 + $0x668] sm:$0xff]  ;;  %v6090_v11 = vcombine.low %v734_v62, %v738_v63  ;;  %v6045_v62 = vcombine.high %v687_v50, %v691_v52  ;;  %v683_v63 = vld [vmem:[#allocation2 + $0x4f0] sm:$0xff] }
 0x12d   : > { %v786_v21 = vld [vmem:[#allocation2 + $0x828] sm:$0xff] }
 0x12e   : > { %2682 = vmatpush1.bf16.msra.mxu0 %v6018_v13  ;;  %v6083_v13 = vcombine.high %v726_v6, %v730_v7  ;;  %v6139_v53 = vcombine.high %v782_v17, %v786_v21  ;;  %v6138_v29 = vcombine.low %v782_v17, %v786_v21 }
 0x12f   : > { %2657 = vmatpush2.bf16.msra.mxu1 %v5954_v14  ;;  %2683 = vmatprep.subr.bf16.mxu0 %v6011_v15  ;;  %v718_v14 = vld [vmem:[#allocation2 + $0x608] sm:$0xff] }
 0x130   : > { %2658 = vmatprep.subr.bf16.mxu1 %v5947_v22  ;;  %v722_v15 = vld [vmem:[#allocation2 + $0x628] sm:$0xff]  ;;  %v6082_v22 = vcombine.low %v726_v6, %v730_v7  ;;  %v675_v7 = vld [vmem:[#allocation2 + $0x4b0] sm:$0xff] }
 0x132   : > { %2684 = vmatpush1.bf16.msra.mxu0 %v6010_v24  ;;  %v6075_v24 = vcombine.high %v718_v14, %v722_v15 }
 0x133   : > { %2659 = vmatpush2.bf16.msra.mxu1 %v5946_v25  ;;  %2685 = vmatprep.subr.bf16.mxu0 %v6131_v26  ;;  %v583_v25 = vld [vmem:[#allocation2 + $0x1d0] sm:$0xff] }
 0x134   : > { %2710 = vmatprep.subr.bf16.mxu1 %v6195_v28  ;;  %v587_v26 = vld [vmem:[#allocation2 + $0x1f0] sm:$0xff]  ;;  %v6074_v28 = vcombine.low %v718_v14, %v722_v15 }
 0x135   : > { %v5940_v37 = vcombine.low %v583_v25, %v587_v26  ;;  %v667_v15 = vld [vmem:[#allocation2 + $0x470] sm:$0xff] }
 0x136   : > { %2661 = vmatmul.mubr.bf16.vlgmr.msra.gmra.mxu1 %v7917_v16  ;;  %2686 = vmatpush2.bf16.msra.mxu0 %v6130_v30  ;;  %v5941_v30 = vcombine.high %v583_v25, %v587_v26  ;;  %v659_v26 = vld [vmem:[#allocation2 + $0x430] sm:$0xff] }
 0x137   : > { %2711 = vmatpush1.bf16.msra.mxu1 %v6194_v31  ;;  %2687 = vmatprep.subr.bf16.mxu0 %v6123_v32  ;;  %v575_v31 = vld [vmem:[#allocation2 + $0x190] sm:$0xff] }
 0x138   : > { %2712 = vmatprep.subr.bf16.mxu1 %v6187_v36  ;;  %2742 = vmatprep.mubr.bf16.mxu1 %v7658_v34  ;;  %v579_v32 = vld [vmem:[#allocation2 + $0x1b0] sm:$0xff] }
 0x139   : > { %v707_v36 = vld [vmem:[#allocation2 + $0x5b0] sm:$0xff] }
 0x13a   : > { %2688 = vmatpush2.bf16.msra.mxu0 %v6122_v39  ;;  %v5933_v39 = vcombine.high %v575_v31, %v579_v32  ;;  %v6061_v43 = vcombine.high %v703_v33, %v707_v36  ;;  %v6060_v46 = vcombine.low %v703_v33, %v707_v36 }
 0x13b   : > { %2713 = vmatpush1.bf16.msra.mxu1 %v6186_v40  ;;  %2689 = vmatprep.subr.bf16.mxu0 %v6115_v41  ;;  %v567_v40 = vld [vmem:[#allocation2 + $0x150] sm:$0xff] }
 0x13c   : > { %2714 = vmatprep.subr.bf16.mxu1 %v6179_v45  ;;  %v571_v41 = vld [vmem:[#allocation2 + $0x170] sm:$0xff]  ;;  %v5932_v45 = vcombine.low %v575_v31, %v579_v32 }
 0x13d   : > { %v779_v32 = vld [vmem:[#allocation2 + $0x7f0] sm:$0xff] }
 0x13e   : > { %2690 = vmatpush2.bf16.msra.mxu0 %v6114_v47  ;;  %v5925_v47 = vcombine.high %v567_v40, %v571_v41 }
 0x13f   : > { %2715 = vmatpush1.bf16.msra.mxu1 %v6178_v48  ;;  %2691 = vmatprep.subr.bf16.mxu0 %v6107_v49  ;;  %v559_v48 = vld [vmem:[#allocation2 + $0x110] sm:$0xff] }
 0x140   : > { %2716 = vmatprep.subr.bf16.mxu1 %v6171_v55  ;;  %v563_v49 = vld [vmem:[#allocation2 + $0x130] sm:$0xff]  ;;  %v5924_v55 = vcombine.low %v567_v40, %v571_v41 }
 0x141   : > { %v5917_v56 = vcombine.high %v559_v48, %v563_v49  ;;  %v5916_v0 = vcombine.low %v559_v48, %v563_v49  ;;  %v771_v41 = vld [vmem:[#allocation2 + $0x7b0] sm:$0xff] }
 0x142   : > { %2692 = vmatpush2.bf16.msra.mxu0 %v6106_v57  ;;  %v551_v57 = vld [vmem:[#allocation2 + $0xd0] sm:$0xff] }
 0x143   : > { %2717 = vmatpush1.bf16.msra.mxu1 %v6170_v60  ;;  %2693 = vmatprep.subr.bf16.mxu0 %v6099_v61  ;;  %v555_v60 = vld [vmem:[#allocation2 + $0xf0] sm:$0xff] }
 0x144   : > { %2718 = vmatprep.subr.bf16.mxu1 %v6163_v1  ;;  %v679_v61 = vld [vmem:[#allocation2 + $0x4d0] sm:$0xff]  ;;  %v6044_v1 = vcombine.low %v687_v50, %v691_v52  ;;  %v5909_v2 = vcombine.high %v551_v57, %v555_v60  ;;  %v5908_v8 = vcombine.low %v551_v57, %v555_v60 }
 0x145   : > { %v6037_v6 = vcombine.high %v679_v61, %v683_v63  ;;  %v759_v48 = vld [vmem:[#allocation2 + $0x750] sm:$0xff] }
 0x146   : > { %2694 = vmatpush2.bf16.msra.mxu0 %v6098_v3  ;;  %v543_v3 = vld [vmem:[#allocation2 + $0x90] sm:$0xff] }
 0x147   : > { %2719 = vmatpush1.bf16.msra.mxu1 %v6162_v4  ;;  %2695 = vmatprep.subr.bf16.mxu0 %v6091_v5  ;;  %v547_v4 = vld [vmem:[#allocation2 + $0xb0] sm:$0xff] }
 0x148   : > { %2720 = vmatprep.subr.bf16.mxu1 %v6155_v9  ;;  %v671_v5 = vld [vmem:[#allocation2 + $0x490] sm:$0xff]  ;;  %v6036_v9 = vcombine.low %v679_v61, %v683_v63  ;;  %v5901_v10 = vcombine.high %v543_v3, %v547_v4  ;;  %v5900_v17 = vcombine.low %v543_v3, %v547_v4 }
 0x149   : > { %v6029_v14 = vcombine.high %v671_v5, %v675_v7  ;;  %v763_v49 = vld [vmem:[#allocation2 + $0x770] sm:$0xff] }
 0x14a   : > { %2696 = vmatpush2.bf16.msra.mxu0 %v6090_v11  ;;  %v535_v11 = vld [vmem:[#allocation2 + $0x50] sm:$0xff] }
 0x14b   : > { %2721 = vmatpush1.bf16.msra.mxu1 %v6154_v12  ;;  %2697 = vmatprep.subr.bf16.mxu0 %v6083_v13  ;;  %v539_v12 = vld [vmem:[#allocation2 + $0x70] sm:$0xff] }
 0x14c   : > { %2722 = vmatprep.subr.bf16.mxu1 %v6147_v20  ;;  %v663_v13 = vld [vmem:[#allocation2 + $0x450] sm:$0xff]  ;;  %v6028_v20 = vcombine.low %v671_v5, %v675_v7  ;;  %v5893_v21 = vcombine.high %v535_v11, %v539_v12  ;;  %v5892_v27 = vcombine.low %v535_v11, %v539_v12 }
 0x14d   : > { %v6021_v25 = vcombine.high %v663_v13, %v667_v15  ;;  %v751_v57 = vld [vmem:[#allocation2 + $0x710] sm:$0xff] }
 0x14e   : > { %2698 = vmatpush2.bf16.msra.mxu0 %v6082_v22  ;;  %v527_v22 = vld [vmem:[#allocation2 + $0x10] sm:$0xff] }
 0x14f   : > { %2723 = vmatpush1.bf16.msra.mxu1 %v6146_v23  ;;  %2699 = vmatprep.subr.bf16.mxu0 %v6075_v24  ;;  %v531_v23 = vld [vmem:[#allocation2 + $0x30] sm:$0xff] }
 0x150   : > { %2724 = vmatprep.subr.bf16.mxu1 %v6139_v53  ;;  %v655_v24 = vld [vmem:[#allocation2 + $0x410] sm:$0xff]  ;;  %v6020_v53 = vcombine.low %v663_v13, %v667_v15  ;;  %v5885_v54 = vcombine.high %v527_v22, %v531_v23  ;;  %v5884_v33 = vcombine.low %v527_v22, %v531_v23 }
 0x151   : > { %v6013_v31 = vcombine.high %v655_v24, %v659_v26  ;;  %v755_v60 = vld [vmem:[#allocation2 + $0x730] sm:$0xff] }
 0x152   : > { %2700 = vmatpush2.bf16.msra.mxu0 %v6074_v28  ;;  %v647_v28 = vld [vmem:[#allocation2 + $0x3d0] sm:$0xff] }
 0x153   : > { %2725 = vmatpush1.bf16.msra.mxu1 %v6138_v29  ;;  %2751 = vmatprep.subr.bf16.mxu0 %v5941_v30  ;;  %v651_v29 = vld [vmem:[#allocation2 + $0x3f0] sm:$0xff] }
 0x154   : > { %2792 = vmatprep.subr.bf16.mxu1 %v6069_v35  ;;  %v775_v30 = vld [vmem:[#allocation2 + $0x7d0] sm:$0xff]  ;;  %v6012_v35 = vcombine.low %v655_v24, %v659_v26  ;;  %v6005_v36 = vcombine.high %v647_v28, %v651_v29 }
 0x155   : > { %2702 = vmatmul.mubr.bf16.vlgmr.msra.gmra.mxu0 %v7921_v19  ;;  %v6133_v40 = vcombine.high %v775_v30, %v779_v32  ;;  %v743_v3 = vld [vmem:[#allocation2 + $0x6d0] sm:$0xff] }
 0x156   : > { %2743 = vmatmul.mubr.bf16.vlgmr.msra.gmra.mxu1 %v7928_v18  ;;  %2752 = vmatpush1.bf16.msra.mxu0 %v5940_v37  ;;  %v6052_v18 = vcombine.low %v695_v42, %v699_v44  ;;  %v639_v37 = vld [vmem:[#allocation2 + $0x390] sm:$0xff]  ;;  %v6004_v42 = vcombine.low %v647_v28, %v651_v29 }
 0x157   : > { %2793 = vmatpush1.bf16.msra.mxu1 %v6068_v38  ;;  %2753 = vmatprep.subr.bf16.mxu0 %v5933_v39  ;;  %v643_v38 = vld [vmem:[#allocation2 + $0x3b0] sm:$0xff] }
 0x158   : > { %2794 = vmatprep.subr.bf16.mxu1 %v6061_v43  ;;  %2783 = vmatprep.mubr.bf16.mxu0 %v7907_v58  ;;  %v767_v39 = vld [vmem:[#allocation2 + $0x790] sm:$0xff]  ;;  %v6132_v43 = vcombine.low %v775_v30, %v779_v32  ;;  %v5997_v44 = vcombine.high %v639_v37, %v643_v38  ;;  %v5996_v50 = vcombine.low %v639_v37, %v643_v38  ;;  %v588_v38 = vld [vmem:[#allocation2 + $0x1f8] sm:$0xff] }
 0x159   : > { %2824 = vmatprep.mubr.bf16.mxu1 %v7911_v59  ;;  %v747_v4 = vld [vmem:[#allocation2 + $0x6f0] sm:$0xff] }
 0x15a   : > { %2754 = vmatpush1.bf16.msra.mxu0 %v5932_v45  ;;  %v6125_v45 = vcombine.high %v767_v39, %v771_v41  ;;  %v6101_v11 = vcombine.high %v743_v3, %v747_v4  ;;  %v739_v12 = vld [vmem:[#allocation2 + $0x6b0] sm:$0xff] }
 0x15b   : > { %2795 = vmatpush1.bf16.msra.mxu1 %v6060_v46  ;;  %2755 = vmatprep.subr.bf16.mxu0 %v5925_v47  ;;  %v631_v46 = vld [vmem:[#allocation2 + $0x350] sm:$0xff] }
 0x15c   : > { %2796 = vmatprep.subr.bf16.mxu1 %v6053_v51  ;;  %v635_v47 = vld [vmem:[#allocation2 + $0x370] sm:$0xff]  ;;  %v6124_v51 = vcombine.low %v767_v39, %v771_v41 }
 0x15d   : > { %v5989_v52 = vcombine.high %v631_v46, %v635_v47  ;;  %v5988_v61 = vcombine.low %v631_v46, %v635_v47  ;;  %v731_v23 = vld [vmem:[#allocation2 + $0x670] sm:$0xff]  ;;  %v580_v46 = vld [vmem:[#allocation2 + $0x1b8] sm:$0xff] }
 0x15e   : > { %2756 = vmatpush1.bf16.msra.mxu0 %v5924_v55  ;;  %v6117_v55 = vcombine.high %v759_v48, %v763_v49  ;;  %v723_v29 = vld [vmem:[#allocation2 + $0x630] sm:$0xff] }
 0x15f   : > { %2797 = vmatpush1.bf16.msra.mxu1 %v6052_v18  ;;  %2757 = vmatprep.subr.bf16.mxu0 %v5917_v56  ;;  %v623_v18 = vld [vmem:[#allocation2 + $0x310] sm:$0xff] }
 0x160   : > { %2798 = vmatprep.subr.bf16.mxu1 %v6045_v62  ;;  %v627_v56 = vld [vmem:[#allocation2 + $0x330] sm:$0xff]  ;;  %v6116_v62 = vcombine.low %v759_v48, %v763_v49 }
 0x161   : > { %v5981_v63 = vcombine.high %v623_v18, %v627_v56  ;;  %v5980_v5 = vcombine.low %v623_v18, %v627_v56  ;;  %v572_v18 = vld [vmem:[#allocation2 + $0x178] sm:$0xff] }
 0x162   : > { %2758 = vmatpush1.bf16.msra.mxu0 %v5916_v0  ;;  %v6109_v0 = vcombine.high %v751_v57, %v755_v60 }
 0x163   : > { %2799 = vmatpush1.bf16.msra.mxu1 %v6044_v1  ;;  %2759 = vmatprep.subr.bf16.mxu0 %v5909_v2  ;;  %v615_v1 = vld [vmem:[#allocation2 + $0x2d0] sm:$0xff] }
 0x164   : > { %2800 = vmatprep.subr.bf16.mxu1 %v6037_v6  ;;  %v619_v2 = vld [vmem:[#allocation2 + $0x2f0] sm:$0xff]  ;;  %v6108_v6 = vcombine.low %v751_v57, %v755_v60 }
 0x165   : > { %v5973_v7 = vcombine.high %v615_v1, %v619_v2  ;;  %v5972_v13 = vcombine.low %v615_v1, %v619_v2  ;;  %v564_v1 = vld [vmem:[#allocation2 + $0x138] sm:$0xff] }
 0x166   : > { %2760 = vmatpush1.bf16.msra.mxu0 %v5908_v8  ;;  %v607_v8 = vld [vmem:[#allocation2 + $0x290] sm:$0xff] }
 0x167   : > { %2801 = vmatpush1.bf16.msra.mxu1 %v6036_v9  ;;  %2761 = vmatprep.subr.bf16.mxu0 %v5901_v10  ;;  %v611_v9 = vld [vmem:[#allocation2 + $0x2b0] sm:$0xff] }
 0x168   : > { %2802 = vmatprep.subr.bf16.mxu1 %v6029_v14  ;;  %v735_v10 = vld [vmem:[#allocation2 + $0x690] sm:$0xff]  ;;  %v6100_v14 = vcombine.low %v743_v3, %v747_v4  ;;  %v5965_v15 = vcombine.high %v607_v8, %v611_v9  ;;  %v5964_v24 = vcombine.low %v607_v8, %v611_v9  ;;  %v552_v8 = vld [vmem:[#allocation2 + $0xd8] sm:$0xff] }
 0x169   : > { %v6093_v22 = vcombine.high %v735_v10, %v739_v12  ;;  %v556_v9 = vld [vmem:[#allocation2 + $0xf8] sm:$0xff] }
 0x16a   : > { %2762 = vmatpush1.bf16.msra.mxu0 %v5900_v17  ;;  %v599_v17 = vld [vmem:[#allocation2 + $0x250] sm:$0xff] }
 0x16b   : > { %2803 = vmatpush1.bf16.msra.mxu1 %v6028_v20  ;;  %2763 = vmatprep.subr.bf16.mxu0 %v5893_v21  ;;  %v603_v20 = vld [vmem:[#allocation2 + $0x270] sm:$0xff] }
 0x16c   : > { %2804 = vmatprep.subr.bf16.mxu1 %v6021_v25  ;;  %v727_v21 = vld [vmem:[#allocation2 + $0x650] sm:$0xff]  ;;  %v6092_v25 = vcombine.low %v735_v10, %v739_v12  ;;  %v5957_v26 = vcombine.high %v599_v17, %v603_v20  ;;  %v5956_v30 = vcombine.low %v599_v17, %v603_v20  ;;  %v548_v17 = vld [vmem:[#allocation2 + $0xb8] sm:$0xff] }
 0x16d   : > { %v6085_v28 = vcombine.high %v727_v21, %v731_v23 }
 0x16e   : > { %2764 = vmatpush1.bf16.msra.mxu0 %v5892_v27  ;;  %v591_v27 = vld [vmem:[#allocation2 + $0x210] sm:$0xff] }
 0x16f   : > { %2805 = vmatpush1.bf16.msra.mxu1 %v6020_v53  ;;  %2765 = vmatprep.subr.bf16.mxu0 %v5885_v54  ;;  %v595_v53 = vld [vmem:[#allocation2 + $0x230] sm:$0xff] }
 0x170   : > { %2806 = vmatprep.subr.bf16.mxu1 %v6013_v31  ;;  %v719_v54 = vld [vmem:[#allocation2 + $0x610] sm:$0xff]  ;;  %v6084_v31 = vcombine.low %v727_v21, %v731_v23  ;;  %v5949_v32 = vcombine.high %v591_v27, %v595_v53  ;;  %v5948_v39 = vcombine.low %v591_v27, %v595_v53  ;;  %v5910_v21 = vcombine.low %v552_v8, %v556_v9  ;;  %v540_v27 = vld [vmem:[#allocation2 + $0x78] sm:$0xff] }
 0x171   : > { %v6077_v37 = vcombine.high %v719_v54, %v723_v29  ;;  %v791_v23 = vld [vmem:[#allocation2 + $0x850] sm:$0xff]  ;;  %v847_v53 = vlaneseq }
 0x172   : > { %2766 = vmatpush1.bf16.msra.mxu0 %v5884_v33  ;;  %v839_v33 = vld [vmem:[#allocation2 + $0x9d0] sm:$0xff] }
 0x173   : > { %2807 = vmatpush1.bf16.msra.mxu1 %v6012_v35  ;;  %2767 = vmatprep.subr.bf16.mxu0 %v6005_v36  ;;  %v843_v35 = vld [vmem:[#allocation2 + $0x9f0] sm:$0xff]  ;;  %v584_v36 = vld [vmem:[#allocation2 + $0x1d8] sm:$0xff] }
 0x174   : > { %2808 = vmatprep.subr.bf16.mxu1 %v6133_v40  ;;  %v6076_v40 = vcombine.low %v719_v54, %v723_v29  ;;  %v6197_v41 = vcombine.high %v839_v33, %v843_v35  ;;  %v6196_v47 = vcombine.low %v839_v33, %v843_v35  ;;  %v5942_v48 = vcombine.low %v584_v36, %v588_v38  ;;  %v532_v35 = vld [vmem:[#allocation2 + $0x38] sm:$0xff] }
 0x176   : > { %2768 = vmatpush2.bf16.msra.mxu0 %v6004_v42  ;;  %v831_v42 = vld [vmem:[#allocation2 + $0x990] sm:$0xff] }
 0x177   : > { %2809 = vmatpush2.bf16.msra.mxu1 %v6132_v43  ;;  %2769 = vmatprep.subr.bf16.mxu0 %v5997_v44  ;;  %v835_v43 = vld [vmem:[#allocation2 + $0x9b0] sm:$0xff]  ;;  %v576_v44 = vld [vmem:[#allocation2 + $0x198] sm:$0xff] }
 0x178   : > { %2810 = vmatprep.subr.bf16.mxu1 %v6125_v45  ;;  %v5943_v45 = vcombine.high %v584_v36, %v588_v38  ;;  %v6189_v49 = vcombine.high %v831_v42, %v835_v43  ;;  %v6188_v56 = vcombine.low %v831_v42, %v835_v43  ;;  %v5934_v57 = vcombine.low %v576_v44, %v580_v46  ;;  %v716_v42 = vld [vmem:[#allocation2 + $0x5f8] sm:$0xff] }
 0x179   : > { %v7942_v36 = vshrl.u32 %v847_v53, 7  ;;  %v648_v43 = vld [vmem:[#allocation2 + $0x3d8] sm:$0xff] }
 0x17a   : > { %2770 = vmatpush2.bf16.msra.mxu0 %v5996_v50  ;;  %v5935_v50 = vcombine.high %v576_v44, %v580_v46  ;;  %v652_v44 = vld [vmem:[#allocation2 + $0x3f8] sm:$0xff] }
 0x17b   : > { %2811 = vmatpush2.bf16.msra.mxu1 %v6124_v51  ;;  %2771 = vmatprep.subr.bf16.mxu0 %v5989_v52  ;;  %v823_v51 = vld [vmem:[#allocation2 + $0x950] sm:$0xff]  ;;  %v7945_v46 = vsub.s32 0, %v7942_v36  ;;  %v684_v53 = vld [vmem:[#allocation2 + $0x4f8] sm:$0xff] }
 0x17c   : > { %2812 = vmatprep.subr.bf16.mxu1 %v6117_v55  ;;  %v827_v52 = vld [vmem:[#allocation2 + $0x970] sm:$0xff]  ;;  %v568_v55 = vld [vmem:[#allocation2 + $0x158] sm:$0xff] }
 0x17d   : > { %v6181_v60 = vcombine.high %v823_v51, %v827_v52  ;;  %v6180_v2 = vcombine.low %v823_v51, %v827_v52  ;;  %v5926_v3 = vcombine.low %v568_v55, %v572_v18  ;;  %v704_v51 = vld [vmem:[#allocation2 + $0x598] sm:$0xff] }
 0x17e   : > { %2772 = vmatpush2.bf16.msra.mxu0 %v5988_v61  ;;  %v5927_v61 = vcombine.high %v568_v55, %v572_v18  ;;  %v708_v52 = vld [vmem:[#allocation2 + $0x5b8] sm:$0xff] }
 0x17f   : > { %2813 = vmatpush2.bf16.msra.mxu1 %v6116_v62  ;;  %2773 = vmatprep.subr.bf16.mxu0 %v5981_v63  ;;  %v815_v62 = vld [vmem:[#allocation2 + $0x910] sm:$0xff]  ;;  %v640_v55 = vld [vmem:[#allocation2 + $0x398] sm:$0xff] }
 0x180   : > { %2814 = vmatprep.subr.bf16.mxu1 %v6109_v0  ;;  %v819_v63 = vld [vmem:[#allocation2 + $0x930] sm:$0xff]  ;;  %v560_v0 = vld [vmem:[#allocation2 + $0x118] sm:$0xff] }
 0x181   : > { %v6173_v4 = vcombine.high %v815_v62, %v819_v63  ;;  %v6172_v10 = vcombine.low %v815_v62, %v819_v63  ;;  %v644_v18 = vld [vmem:[#allocation2 + $0x3b8] sm:$0xff] }
 0x182   : > { %2774 = vmatpush2.bf16.msra.mxu0 %v5980_v5  ;;  %v5919_v5 = vcombine.high %v560_v0, %v564_v1  ;;  %v5999_v62 = vcombine.high %v640_v55, %v644_v18  ;;  %v696_v63 = vld [vmem:[#allocation2 + $0x558] sm:$0xff] }
 0x183   : > { %2815 = vmatpush2.bf16.msra.mxu1 %v6108_v6  ;;  %2775 = vmatprep.subr.bf16.mxu0 %v5973_v7  ;;  %v807_v6 = vld [vmem:[#allocation2 + $0x8d0] sm:$0xff] }
 0x184   : > { %2816 = vmatprep.subr.bf16.mxu1 %v6101_v11  ;;  %v811_v7 = vld [vmem:[#allocation2 + $0x8f0] sm:$0xff]  ;;  %v5918_v11 = vcombine.low %v560_v0, %v564_v1  ;;  %v700_v0 = vld [vmem:[#allocation2 + $0x578] sm:$0xff] }
 0x185   : > { %v6165_v12 = vcombine.high %v807_v6, %v811_v7  ;;  %v6164_v20 = vcombine.low %v807_v6, %v811_v7  ;;  %v6062_v7 = vcombine.low %v704_v51, %v708_v52 }
 0x186   : > { %2776 = vmatpush2.bf16.msra.mxu0 %v5972_v13  ;;  %v799_v13 = vld [vmem:[#allocation2 + $0x890] sm:$0xff] }
 0x187   : > { %2817 = vmatpush2.bf16.msra.mxu1 %v6100_v14  ;;  %2777 = vmatprep.subr.bf16.mxu0 %v5965_v15  ;;  %v544_v14 = vld [vmem:[#allocation2 + $0x98] sm:$0xff]  ;;  %v5911_v15 = vcombine.high %v552_v8, %v556_v9  ;;  %v5998_v9 = vcombine.low %v640_v55, %v644_v18 }
 0x188   : > { %2818 = vmatprep.subr.bf16.mxu1 %v6093_v22  ;;  %v656_v55 = vld [vmem:[#allocation2 + $0x418] sm:$0xff] }
 0x189   : > { %v660_v18 = vld [vmem:[#allocation2 + $0x438] sm:$0xff] }
 0x18a   : > { %2778 = vmatpush2.bf16.msra.mxu0 %v5964_v24  ;;  %v795_v24 = vld [vmem:[#allocation2 + $0x870] sm:$0xff] }
 0x18b   : > { %2819 = vmatpush2.bf16.msra.mxu1 %v6092_v25  ;;  %2779 = vmatprep.subr.bf16.mxu0 %v5957_v26  ;;  %v536_v25 = vld [vmem:[#allocation2 + $0x58] sm:$0xff]  ;;  %v5903_v26 = vcombine.high %v544_v14, %v548_v17  ;;  %v6149_v29 = vcombine.high %v791_v23, %v795_v24 }
 0x18c   : > { %2820 = vmatprep.subr.bf16.mxu1 %v6085_v28  ;;  %v5902_v28 = vcombine.low %v544_v14, %v548_v17  ;;  %v5895_v33 = vcombine.high %v536_v25, %v540_v27  ;;  %v5894_v38 = vcombine.low %v536_v25, %v540_v27  ;;  %v692_v14 = vld [vmem:[#allocation2 + $0x538] sm:$0xff] }
 0x18d   : > { %v624_v17 = vld [vmem:[#allocation2 + $0x318] sm:$0xff] }
 0x18e   : > { %2780 = vmatpush2.bf16.msra.mxu0 %v5956_v30  ;;  %v783_v30 = vld [vmem:[#allocation2 + $0x810] sm:$0xff]  ;;  %v680_v27 = vld [vmem:[#allocation2 + $0x4d8] sm:$0xff] }
 0x18f   : > { %2821 = vmatpush2.bf16.msra.mxu1 %v6084_v31  ;;  %2781 = vmatprep.subr.bf16.mxu0 %v5949_v32  ;;  %v787_v31 = vld [vmem:[#allocation2 + $0x830] sm:$0xff]  ;;  %v528_v32 = vld [vmem:[#allocation2 + $0x18] sm:$0xff] }
 0x190   : > { %2822 = vmatprep.subr.bf16.mxu1 %v6077_v37  ;;  %v6148_v37 = vcombine.low %v791_v23, %v795_v24 }
 0x192   : > { %2782 = vmatpush2.bf16.msra.mxu0 %v5948_v39  ;;  %v6141_v39 = vcombine.high %v783_v30, %v787_v31 }
 0x193   : > { %2823 = vmatpush2.bf16.msra.mxu1 %v6076_v40  ;;  %2833 = vmatprep.subr.bf16.mxu0 %v6197_v41  ;;  %v712_v40 = vld [vmem:[#allocation2 + $0x5d8] sm:$0xff]  ;;  %v5887_v41 = vcombine.high %v528_v32, %v532_v35 }
 0x194   : > { %2874 = vmatprep.subr.bf16.mxu1 %v5943_v45  ;;  %v6140_v45 = vcombine.low %v783_v30, %v787_v31  ;;  %v6039_v31 = vcombine.high %v680_v27, %v684_v53 }
 0x195   : > { %2784 = vmatmul.mubr.bf16.vlgmr.msra.gmra.mxu0 %v7917_v16 }
 0x196   : > { %2825 = vmatmul.mubr.bf16.vlgmr.msra.gmra.mxu1 %v7921_v19  ;;  %2834 = vmatpush1.bf16.msra.mxu0 %v6196_v47  ;;  %v5886_v47 = vcombine.low %v528_v32, %v532_v35  ;;  %v676_v35 = vld [vmem:[#allocation2 + $0x4b8] sm:$0xff] }
 0x197   : > { %2875 = vmatpush1.bf16.msra.mxu1 %v5942_v48  ;;  %2835 = vmatprep.subr.bf16.mxu0 %v6189_v49  ;;  %v7947_v48 = vld [vmem:[#allocation5] sm:$0xff]  ;;  %v6071_v49 = vcombine.high %v712_v40, %v716_v42 }
 0x198   : > { %2876 = vmatprep.subr.bf16.mxu1 %v5935_v50  ;;  %2865 = vmatprep.mubr.bf16.mxu0 %v7658_v34  ;;  %v6007_v50 = vcombine.high %v648_v43, %v652_v44 }
 0x199   : > { %2906 = vmatprep.mubr.bf16.mxu1 %v7907_v58  ;;  %v803_v58 = vld [vmem:[#allocation2 + $0x8b0] sm:$0xff] }
 0x19a   : > { %2836 = vmatpush1.bf16.msra.mxu0 %v6188_v56  ;;  %v6157_v22 = vcombine.high %v799_v13, %v803_v58  ;;  %v6156_v54 = vcombine.low %v799_v13, %v803_v58  ;;  %v850_v56 = vrot.slane %v7947_v48, %v7945_v46  ;;  %v688_v58 = vld [vmem:[#allocation2 + $0x518] sm:$0xff] }
 0x19b   : > { %2877 = vmatpush1.bf16.msra.mxu1 %v5934_v57  ;;  %2837 = vmatprep.subr.bf16.mxu0 %v6181_v60  ;;  %v6070_v57 = vcombine.low %v712_v40, %v716_v42  ;;  %v6006_v60 = vcombine.low %v648_v43, %v652_v44  ;;  %v6047_v24 = vcombine.high %v688_v58, %v692_v14  ;;  %v664_v43 = vld [vmem:[#allocation2 + $0x458] sm:$0xff] }
 0x19c   : > { %2878 = vmatprep.subr.bf16.mxu1 %v5927_v61  ;;  %v6063_v61 = vcombine.high %v704_v51, %v708_v52  ;;  %v668_v44 = vld [vmem:[#allocation2 + $0x478] sm:$0xff] }
 0x19d   : > { %v6023_v51 = vcombine.high %v664_v43, %v668_v44 }
 0x19e   : > { %2838 = vmatpush1.bf16.msra.mxu0 %v6180_v2  ;;  %v7952_v2 = vld [vmem:[%s7897_s12 + $0x10] ss:$0 sps:$4 sm:$0xff]  }
 0x19f   : > { %2879 = vmatpush1.bf16.msra.mxu1 %v5926_v3  ;;  %2839 = vmatprep.subr.bf16.mxu0 %v6173_v4  ;;  %v632_v3 = vld [vmem:[#allocation2 + $0x358] sm:$0xff] }
 0x1a0   : > { %2880 = vmatprep.subr.bf16.mxu1 %v5919_v5  ;;  %v636_v4 = vld [vmem:[#allocation2 + $0x378] sm:$0xff] }
 0x1a1   : > { %v5991_v13 = vcombine.high %v632_v3, %v636_v4  ;;  %v5990_v23 = vcombine.low %v632_v3, %v636_v4  ;;  %v840_v3 = vld [vmem:[#allocation2 + $0x9d8] sm:$0xff] }
 0x1a2   : > { %2840 = vmatpush1.bf16.msra.mxu0 %v6172_v10  ;;  %v6055_v10 = vcombine.high %v696_v63, %v700_v0  ;;  %v844_v4 = vld [vmem:[#allocation2 + $0x9f8] sm:$0xff] }
 0x1a3   : > { %2881 = vmatpush1.bf16.msra.mxu1 %v5918_v11  ;;  %2841 = vmatprep.subr.bf16.mxu0 %v6165_v12 }
 0x1a4   : > { %2882 = vmatprep.subr.bf16.mxu1 %v5911_v15 }
 0x1a6   : > { %2842 = vmatpush1.bf16.msra.mxu0 %v6164_v20  ;;  %v628_v20 = vld [vmem:[#allocation2 + $0x338] sm:$0xff] }
 0x1a7   : > { %2883 = vmatpush1.bf16.msra.mxu1 %v5910_v21  ;;  %2843 = vmatprep.subr.bf16.mxu0 %v6157_v22  ;;  %v5982_v30 = vcombine.low %v624_v17, %v628_v20 }
 0x1a8   : > { %2884 = vmatprep.subr.bf16.mxu1 %v5903_v26  ;;  %v5983_v26 = vcombine.high %v624_v17, %v628_v20  ;;  %v6198_v20 = vcombine.low %v840_v3, %v844_v4 }
 0x1aa   : > { %2844 = vmatpush1.bf16.msra.mxu0 %v6156_v54  ;;  %v616_v54 = vld [vmem:[#allocation2 + $0x2d8] sm:$0xff] }
 0x1ab   : > { %2885 = vmatpush1.bf16.msra.mxu1 %v5902_v28  ;;  %2845 = vmatprep.subr.bf16.mxu0 %v6149_v29  ;;  %v620_v28 = vld [vmem:[#allocation2 + $0x2f8] sm:$0xff]  ;;  %v6046_v29 = vcombine.low %v688_v58, %v692_v14 }
 0x1ac   : > { %2886 = vmatprep.subr.bf16.mxu1 %v5895_v33  ;;  %v5975_v32 = vcombine.high %v616_v54, %v620_v28  ;;  %v672_v33 = vld [vmem:[#allocation2 + $0x498] sm:$0xff]  ;;  %v5974_v40 = vcombine.low %v616_v54, %v620_v28 }
 0x1ad   : > { %v832_v58 = vld [vmem:[#allocation2 + $0x998] sm:$0xff] }
 0x1ae   : > { %2846 = vmatpush1.bf16.msra.mxu0 %v6148_v37  ;;  %v608_v37 = vld [vmem:[#allocation2 + $0x298] sm:$0xff] }
 0x1af   : > { %2887 = vmatpush1.bf16.msra.mxu1 %v5894_v38  ;;  %2847 = vmatprep.subr.bf16.mxu0 %v6141_v39  ;;  %v612_v38 = vld [vmem:[#allocation2 + $0x2b8] sm:$0xff]  ;;  %v6038_v39 = vcombine.low %v680_v27, %v684_v53 }
 0x1b0   : > { %2888 = vmatprep.subr.bf16.mxu1 %v5887_v41  ;;  %v6031_v41 = vcombine.high %v672_v33, %v676_v35  ;;  %v5967_v42 = vcombine.high %v608_v37, %v612_v38  ;;  %v836_v14 = vld [vmem:[#allocation2 + $0x9b8] sm:$0xff] }
 0x1b2   : > { %2848 = vmatpush1.bf16.msra.mxu0 %v6140_v45  ;;  %v600_v45 = vld [vmem:[#allocation2 + $0x258] sm:$0xff] }
 0x1b3   : > { %2889 = vmatpush1.bf16.msra.mxu1 %v5886_v47  ;;  %2915 = vmatprep.subr.bf16.mxu0 %v6071_v49  ;;  %v604_v47 = vld [vmem:[#allocation2 + $0x278] sm:$0xff]  ;;  %v6030_v49 = vcombine.low %v672_v33, %v676_v35 }
 0x1b4   : > { %2890 = vmatprep.subr.bf16.mxu1 %v6007_v50  ;;  %v5966_v50 = vcombine.low %v608_v37, %v612_v38  ;;  %v5959_v52 = vcombine.high %v600_v45, %v604_v47  ;;  %v756_v33 = vld [vmem:[#allocation2 + $0x738] sm:$0xff] }
 0x1b5   : > { %v2539_v1 = vpop.f32.mrf.mxu0  ;;  %2866 = vmatmul.mubr.bf16.vlgmr.msra.gmra.mxu0 %v7952_v2  ;;  %v816_v37 = vld [vmem:[#allocation2 + $0x918] sm:$0xff] }
 0x1b6   : > { %v2540_v5 = vadd.f32 %v2539_v1, %v850_v56  ;;  %v2580_v6 = vpop.f32.mrf.mxu1  ;;  %2916 = vmatpush1.bf16.msra.mxu0 %v6070_v57  ;;  %2947 = vmatprep.mubr.bf16.mxu0 %v7911_v59  ;;  %v6054_v59 = vcombine.low %v696_v63, %v700_v0  ;;  %v592_v56 = vld [vmem:[#allocation2 + $0x218] sm:$0xff] }
 0x1b7   : > { %2891 = vmatpush2.bf16.msra.mxu1 %v6006_v60  ;;  %v7956_v8 = vpop.f32.mrf.mxu0  ;;  %2917 = vmatprep.subr.bf16.mxu0 %v6063_v61  ;;  %v596_v57 = vld [vmem:[#allocation2 + $0x238] sm:$0xff]  ;;  %v6022_v60 = vcombine.low %v664_v43, %v668_v44  ;;  %v5958_v61 = vcombine.low %v600_v45, %v604_v47 }
 0x1b8   : > { %v7958_v11 = vadd.f32 %v2580_v6, %v2540_v5  ;;  %v7960_v12 = vpop.f32.mrf.mxu1  ;;  %2892 = vmatprep.subr.bf16.mxu1 %v5999_v62  ;;  %v6015_v62 = vcombine.high %v656_v55, %v660_v18  ;;  %v5951_v63 = vcombine.high %v592_v56, %v596_v57  ;;  %v776_v0 = vld [vmem:[#allocation2 + $0x7d8] sm:$0xff]  ;;  %v6014_v5 = vcombine.low %v656_v55, %v660_v18 }
 0x1b9   : > { %v2543_v15 = vpop.f32.mrf.mxu0  ;;  %v780_v1 = vld [vmem:[#allocation2 + $0x7f8] sm:$0xff]  ;;  %v5950_v6 = vcombine.low %v592_v56, %v596_v57 }
 0x1ba   : > { %v2584_v21 = vpop.f32.mrf.mxu1  ;;  %2918 = vmatpush1.bf16.msra.mxu0 %v6062_v7  ;;  %v6135_v7 = vcombine.high %v776_v0, %v780_v1  ;;  %v7963_v15 = vsub.s32 1, %v7942_v36  ;;  %v6134_v17 = vcombine.low %v776_v0, %v780_v1  ;;  %v820_v38 = vld [vmem:[#allocation2 + $0x938] sm:$0xff] }
 0x1bb   : > { %2893 = vmatpush2.bf16.msra.mxu1 %v5998_v9  ;;  %v2544_v22 = vpop.f32.mrf.mxu0  ;;  %2919 = vmatprep.subr.bf16.mxu0 %v6055_v10  ;;  %v6199_v9 = vcombine.high %v840_v3, %v844_v4  ;;  %v768_v10 = vld [vmem:[#allocation2 + $0x798] sm:$0xff] }
 0x1bc   : > { %v2585_v25 = vpop.f32.mrf.mxu1  ;;  %2894 = vmatprep.subr.bf16.mxu1 %v5991_v13  ;;  %v772_v13 = vld [vmem:[#allocation2 + $0x7b8] sm:$0xff]  ;;  %v854_v27 = vrot.slane %v7947_v48, %v7963_v15 }
 0x1bd   : > { %v6127_v21 = vcombine.high %v768_v10, %v772_v13  ;;  %v760_v22 = vld [vmem:[#allocation2 + $0x758] sm:$0xff]  ;;  %v6126_v54 = vcombine.low %v768_v10, %v772_v13 }
 0x1be   : > { %2920 = vmatpush1.bf16.msra.mxu0 %v6054_v59  ;;  %v6191_v59 = vcombine.high %v832_v58, %v836_v14  ;;  %v824_v25 = vld [vmem:[#allocation2 + $0x958] sm:$0xff] }
 0x1bf   : > { %2895 = vmatpush2.bf16.msra.mxu1 %v5990_v23  ;;  %2921 = vmatprep.subr.bf16.mxu0 %v6047_v24  ;;  %v764_v23 = vld [vmem:[#allocation2 + $0x778] sm:$0xff] }
 0x1c0   : > { %2896 = vmatprep.subr.bf16.mxu1 %v5983_v26  ;;  %v828_v26 = vld [vmem:[#allocation2 + $0x978] sm:$0xff] }
 0x1c1   : > { %v744_v43 = vld [vmem:[#allocation2 + $0x6d8] sm:$0xff] }
 0x1c2   : > { %2922 = vmatpush1.bf16.msra.mxu0 %v6046_v29  ;;  %v6190_v29 = vcombine.low %v832_v58, %v836_v14  ;;  %v748_v44 = vld [vmem:[#allocation2 + $0x6f8] sm:$0xff] }
 0x1c3   : > { %2897 = vmatpush2.bf16.msra.mxu1 %v5982_v30  ;;  %2923 = vmatprep.subr.bf16.mxu0 %v6039_v31  ;;  %v6119_v30 = vcombine.high %v760_v22, %v764_v23  ;;  %v6183_v31 = vcombine.high %v824_v25, %v828_v26  ;;  %v808_v45 = vld [vmem:[#allocation2 + $0x8d8] sm:$0xff] }
 0x1c4   : > { %2898 = vmatprep.subr.bf16.mxu1 %v5975_v32  ;;  %v752_v32 = vld [vmem:[#allocation2 + $0x718] sm:$0xff] }
 0x1c5   : > { %v812_v47 = vld [vmem:[#allocation2 + $0x8f8] sm:$0xff] }
 0x1c6   : > { %2924 = vmatpush1.bf16.msra.mxu0 %v6038_v39  ;;  %v736_v55 = vld [vmem:[#allocation2 + $0x698] sm:$0xff] }
 0x1c7   : > { %2899 = vmatpush2.bf16.msra.mxu1 %v5974_v40  ;;  %2925 = vmatprep.subr.bf16.mxu0 %v6031_v41  ;;  %v6182_v40 = vcombine.low %v824_v25, %v828_v26  ;;  %v6111_v41 = vcombine.high %v752_v32, %v756_v33  ;;  %v740_v18 = vld [vmem:[#allocation2 + $0x6b8] sm:$0xff] }
 0x1c8   : > { %2900 = vmatprep.subr.bf16.mxu1 %v5967_v42  ;;  %v6175_v42 = vcombine.high %v816_v37, %v820_v38  ;;  %v800_v56 = vld [vmem:[#allocation2 + $0x898] sm:$0xff] }
 0x1c9   : > { %v804_v57 = vld [vmem:[#allocation2 + $0x8b8] sm:$0xff] }
 0x1ca   : > { %2926 = vmatpush1.bf16.msra.mxu0 %v6030_v49  ;;  %v6110_v49 = vcombine.low %v752_v32, %v756_v33  ;;  %v728_v0 = vld [vmem:[#allocation2 + $0x658] sm:$0xff] }
 0x1cb   : > { %2901 = vmatpush2.bf16.msra.mxu1 %v5966_v50  ;;  %2927 = vmatprep.subr.bf16.mxu0 %v6023_v51  ;;  %v6103_v50 = vcombine.high %v744_v43, %v748_v44  ;;  %v732_v1 = vld [vmem:[#allocation2 + $0x678] sm:$0xff] }
 0x1cc   : > { %2902 = vmatprep.subr.bf16.mxu1 %v5959_v52  ;;  %v6167_v52 = vcombine.high %v808_v45, %v812_v47  ;;  %v792_v3 = vld [vmem:[#allocation2 + $0x858] sm:$0xff] }
 0x1cd   : > { %v796_v4 = vld [vmem:[#allocation2 + $0x878] sm:$0xff] }
 0x1ce   : > { %2928 = vmatpush1.bf16.msra.mxu0 %v6022_v60  ;;  %v6102_v60 = vcombine.low %v744_v43, %v748_v44  ;;  %v720_v10 = vld [vmem:[#allocation2 + $0x618] sm:$0xff] }
 0x1cf   : > { %2903 = vmatpush2.bf16.msra.mxu1 %v5958_v61  ;;  %2929 = vmatprep.subr.bf16.mxu0 %v6015_v62  ;;  %v6166_v61 = vcombine.low %v808_v45, %v812_v47  ;;  %v6095_v62 = vcombine.high %v736_v55, %v740_v18  ;;  %v724_v13 = vld [vmem:[#allocation2 + $0x638] sm:$0xff] }
 0x1d0   : > { %2904 = vmatprep.subr.bf16.mxu1 %v5951_v63  ;;  %v6159_v63 = vcombine.high %v800_v56, %v804_v57  ;;  %v784_v58 = vld [vmem:[#allocation2 + $0x818] sm:$0xff] }
 0x1d1   : > { %v788_v14 = vld [vmem:[#allocation2 + $0x838] sm:$0xff] }
 0x1d2   : > { %2930 = vmatpush1.bf16.msra.mxu0 %v6014_v5  ;;  %v6094_v5 = vcombine.low %v736_v55, %v740_v18  ;;  %v6763_v25 = vld [vmem:[#allocation7 + $0x2e4] ss:$16 sps:$4 sm:$0xff]   ;;  %v6758_v26 = vld [vmem:[#allocation7 + $0xe0] ss:$16 sps:$4 sm:$0xff]  }
 0x1d3   : > { %2905 = vmatpush2.bf16.msra.mxu1 %v5950_v6  ;;  %2931 = vmatprep.subr.bf16.mxu0 %v6135_v7  ;;  %v6158_v6 = vcombine.low %v800_v56, %v804_v57  ;;  %v6087_v7 = vcombine.high %v728_v0, %v732_v1  ;;  %v6767_v32 = vld [vmem:[#allocation7 + $0x2c0] ss:$16 sps:$4 sm:$0xff]   ;;  %v6772_v33 = vld [vmem:[#allocation7 + $0xa4] ss:$16 sps:$4 sm:$0xff]   ;;  %v861_v57 = vsub.s32 3, %v7942_v36 }
 0x1d4   : > { %2956 = vmatprep.subr.bf16.mxu1 %v6199_v9  ;;  %v6151_v9 = vcombine.high %v792_v3, %v796_v4  ;;  %v6787_v43 = vld [vmem:[#allocation7 + $0x264] ss:$16 sps:$4 sm:$0xff]   ;;  %v6782_v44 = vld [vmem:[#allocation7 + $0x60] ss:$16 sps:$4 sm:$0xff]  }
 0x1d5   : > { %v2621_v24 = vpop.f32.mrf.mxu0  ;;  %v6785_v45 = vld [vmem:[#allocation7 + $0x260] ss:$16 sps:$4 sm:$0xff]   ;;  %v6790_v47 = vld [vmem:[#allocation7 + $0x44] ss:$16 sps:$4 sm:$0xff]  }
 0x1d6   : > { %v7968_v53 = vadd.f32 %v2621_v24, %v7958_v11  ;;  %2907 = vmatmul.mubr.bf16.vlgmr.msra.gmra.mxu1 %v7917_v16  ;;  %2932 = vmatpush2.bf16.msra.mxu0 %v6134_v17  ;;  %v2542_v11 = vadd.f32 %v7956_v8, %v854_v27  ;;  %v6118_v16 = vcombine.low %v760_v22, %v764_v23  ;;  %v6760_v24 = vld [vmem:[#allocation7 + $0xe4] ss:$16 sps:$4 sm:$0xff]   ;;  %v6761_v27 = vld [vmem:[#allocation7 + $0x2e0] ss:$16 sps:$4 sm:$0xff]  }
 0x1d7   : > { %2957 = vmatpush1.bf16.msra.mxu1 %v6198_v20  ;;  %v2623_v28 = vpop.f32.mrf.mxu0  ;;  %2933 = vmatprep.subr.bf16.mxu0 %v6127_v21  ;;  %v6174_v8 = vcombine.low %v816_v37, %v820_v38  ;;  %v6086_v17 = vcombine.low %v728_v0, %v732_v1  ;;  %v6150_v20 = vcombine.low %v792_v3, %v796_v4  ;;  %v6775_v37 = vld [vmem:[#allocation7 + $0x2a4] ss:$16 sps:$4 sm:$0xff]   ;;  %v6797_v55 = vld [vmem:[#allocation7 + $0x220] ss:$16 sps:$4 sm:$0xff]  }
 0x1d8   : > { %2958 = vmatprep.subr.bf16.mxu1 %v6191_v59  ;;  %2988 = vmatprep.mubr.bf16.mxu1 %v7658_v34  ;;  %v2583_v34 = vadd.f32 %v7960_v12, %v2542_v11  ;;  %v6079_v21 = vcombine.high %v720_v10, %v724_v13  ;;  %v6143_v59 = vcombine.high %v784_v58, %v788_v14  ;;  %v6773_v11 = vld [vmem:[#allocation7 + $0x2a0] ss:$16 sps:$4 sm:$0xff]   ;;  %v6802_v18 = vld [vmem:[#allocation7 + $0x4] ss:$16 sps:$4 sm:$0xff]  }
 0x1d9   : > { %v2625_v35 = vpop.f32.mrf.mxu0  ;;  %v6078_v22 = vcombine.low %v720_v10, %v724_v13  ;;  %v6142_v23 = vcombine.low %v784_v58, %v788_v14  ;;  %v6805_v56 = vld [vmem:[#allocation7 + $0x204] ss:$16 sps:$4 sm:$0xff]   ;;  %v862_v0 = vrot.slane %v7947_v48, %v861_v57  ;;  %v6806_v1 = vld [vmem:[#allocation7 + $0x1e0] ss:$16 sps:$4 sm:$0xff]  }
 0x1da   : > { %2934 = vmatpush2.bf16.msra.mxu0 %v6126_v54  ;;  %v2624_v51 = vadd.f32 %v2623_v28, %v2583_v34  ;;  %v6766_v54 = vld [vmem:[#allocation7 + $0xc4] ss:$16 sps:$4 sm:$0xff]   ;;  %v6809_v3 = vld [vmem:[#allocation7 + $0x3e0] ss:$16 sps:$4 sm:$0xff]  }
 0x1db   : > { %2959 = vmatpush1.bf16.msra.mxu1 %v6190_v29  ;;  %v2626_v39 = vpop.f32.mrf.mxu0  ;;  %2935 = vmatprep.subr.bf16.mxu0 %v6119_v30  ;;  %v6769_v28 = vld [vmem:[#allocation7 + $0x2c4] ss:$16 sps:$4 sm:$0xff]   ;;  %v6812_v13 = vld [vmem:[#allocation7 + $0x1c0] ss:$16 sps:$4 sm:$0xff]  }
 0x1dc   : > { %2960 = vmatprep.subr.bf16.mxu1 %v6183_v31  ;;  %v2998_v12 = vpack.c.bf16 %v2624_v51, %v2624_v51  ;;  %v6764_v31 = vld [vmem:[#allocation7 + $0xc0] ss:$16 sps:$4 sm:$0xff]   ;;  %v6781_v39 = vld [vmem:[#allocation7 + $0x284] ss:$16 sps:$4 sm:$0xff]  }
 0x1dd   : > { %v6793_v34 = vld [vmem:[#allocation7 + $0x244] ss:$16 sps:$4 sm:$0xff]   ;;  %v6815_v14 = vld [vmem:[#allocation7 + $0x3c0] ss:$16 sps:$4 sm:$0xff]  }
 0x1de   : > { %2936 = vmatpush2.bf16.msra.mxu0 %v6118_v16  ;;  %7262 = vtanh.bf16 %v2998_v12  ;;  %v6778_v16 = vld [vmem:[#allocation7 + $0x84] ss:$16 sps:$4 sm:$0xff]  }
 0x1df   : > { %2961 = vmatpush1.bf16.msra.mxu1 %v6182_v40  ;;  %2937 = vmatprep.subr.bf16.mxu0 %v6111_v41  ;;  %v6776_v40 = vld [vmem:[#allocation7 + $0x80] ss:$16 sps:$4 sm:$0xff]   ;;  %v6799_v51 = vld [vmem:[#allocation7 + $0x224] ss:$16 sps:$4 sm:$0xff]  }
 0x1e0   : > { %2962 = vmatprep.subr.bf16.mxu1 %v6175_v42  ;;  %v6779_v41 = vld [vmem:[#allocation7 + $0x280] ss:$16 sps:$4 sm:$0xff]   ;;  %v6784_v42 = vld [vmem:[#allocation7 + $0x64] ss:$16 sps:$4 sm:$0xff]  }
 0x1e1   : > { %v6811_v12 = vld [vmem:[#allocation7 + $0x3e4] ss:$16 sps:$4 sm:$0xff]  }
 0x1e2   : > { %2938 = vmatpush2.bf16.msra.mxu0 %v6110_v49  ;;  %v6788_v49 = vld [vmem:[#allocation7 + $0x40] ss:$16 sps:$4 sm:$0xff]   ;;  %v6814_v4 = vld [vmem:[#allocation7 + $0x1c4] ss:$16 sps:$4 sm:$0xff]  }
 0x1e3   : > { %2963 = vmatpush1.bf16.msra.mxu1 %v6174_v8  ;;  %2939 = vmatprep.subr.bf16.mxu0 %v6103_v50  ;;  %v6791_v8 = vld [vmem:[#allocation7 + $0x240] ss:$16 sps:$4 sm:$0xff]   ;;  %v6796_v50 = vld [vmem:[#allocation7 + $0x24] ss:$16 sps:$4 sm:$0xff]  }
 0x1e4   : > { %2964 = vmatprep.subr.bf16.mxu1 %v6167_v52  ;;  %v6794_v52 = vld [vmem:[#allocation7 + $0x20] ss:$16 sps:$4 sm:$0xff]  }
 0x1e6   : > { %2940 = vmatpush2.bf16.msra.mxu0 %v6102_v60  ;;  %v6800_v60 = vld [vmem:[#allocation7] ss:$16 sps:$4 sm:$0xff]  }
 0x1e7   : > { %2965 = vmatpush1.bf16.msra.mxu1 %v6166_v61  ;;  %2941 = vmatprep.subr.bf16.mxu0 %v6095_v62  ;;  %v6803_v61 = vld [vmem:[#allocation7 + $0x200] ss:$16 sps:$4 sm:$0xff]   ;;  %v6808_v62 = vld [vmem:[#allocation7 + $0x1e4] ss:$16 sps:$4 sm:$0xff]  }
 0x1e8   : > { %2966 = vmatprep.subr.bf16.mxu1 %v6159_v63  ;;  %v857_v63 = vsub.s32 2, %v7942_v36 }
 0x1ea   : > { %2942 = vmatpush2.bf16.msra.mxu0 %v6094_v5  ;;  %v6817_v5 = vld [vmem:[#allocation7 + $0x3c4] ss:$16 sps:$4 sm:$0xff]  }
 0x1eb   : > { %2967 = vmatpush1.bf16.msra.mxu1 %v6158_v6  ;;  %2943 = vmatprep.subr.bf16.mxu0 %v6087_v7  ;;  %v858_v6 = vrot.slane %v7947_v48, %v857_v63 }
 0x1ec   : > { %2968 = vmatprep.subr.bf16.mxu1 %v6151_v9  ;;  %v7975_v29 = vpop.eup %7262 }
 0x1ee   : > { %2944 = vmatpush2.bf16.msra.mxu0 %v6086_v17  ;;  %v6820_v17 = vld [vmem:[#allocation7 + $0x1a4] ss:$16 sps:$4 sm:$0xff]  }
 0x1ef   : > { %2969 = vmatpush1.bf16.msra.mxu1 %v6150_v20  ;;  %2945 = vmatprep.subr.bf16.mxu0 %v6079_v21 }
 0x1f0   : > { %2970 = vmatprep.subr.bf16.mxu1 %v6143_v59  ;;  %v6823_v59 = vld [vmem:[#allocation7 + $0x3a4] ss:$16 sps:$4 sm:$0xff]  }
 0x1f2   : > { %2946 = vmatpush2.bf16.msra.mxu0 %v6078_v22 }
 0x1f3   : > { %2971 = vmatpush1.bf16.msra.mxu1 %v6142_v23  ;;  %4571 = vmatprep.subr.bf16.mxu0 %v6760_v24 }
 0x1f4   : > { %4612 = vmatprep.subr.bf16.mxu1 %v6763_v25  ;;  %v6818_v25 = vld [vmem:[#allocation7 + $0x1a0] ss:$16 sps:$4 sm:$0xff]  }
 0x1f5   : > { %2948 = vmatmul.mubr.bf16.vlgmr.msra.gmra.mxu0 %v7921_v19  ;;  %v6770_v19 = vld [vmem:[#allocation7 + $0xa0] ss:$16 sps:$4 sm:$0xff]  }
 0x1f6   : > { %v7977_v30 = vpop.f32.mrf.mxu1  ;;  %2989 = vmatmul.mubr.bf16.vlgmr.msra.gmra.mxu1 %v7952_v2  ;;  %4572 = vmatpush1.bf16.msra.mxu0 %v6758_v26 }
 0x1f7   : > { %4603 = vmatprep.mubr.bf16.mxu0 %v7975_v29  ;;  %4613 = vmatpush1.bf16.msra.mxu1 %v6761_v27  ;;  %v2663_v22 = vadd.f32 %v7977_v30, %v858_v6  ;;  %v6827_v30 = vld [vmem:[#allocation7 + $0x380] ss:$16 sps:$4 sm:$0xff]   ;;  %v6865_v6 = vld [vmem:[#allocation7 + $0x484] ss:$16 sps:$4 sm:$0xff]  }
 0x1f8   : > { %v7981_v35 = vpop.f32.mrf.mxu1  ;;  %4573 = vmatprep.subr.bf16.mxu0 %v6766_v54  ;;  %4614 = vmatprep.subr.bf16.mxu1 %v6769_v28  ;;  %v6821_v54 = vld [vmem:[#allocation7 + $0x3a0] ss:$16 sps:$4 sm:$0xff]   ;;  %v6826_v28 = vld [vmem:[#allocation7 + $0x184] ss:$16 sps:$4 sm:$0xff]  }
 0x1f9   : > { %v2665_v9 = vadd.f32 %v7981_v35, %v862_v0  ;;  %v6824_v35 = vld [vmem:[#allocation7 + $0x180] ss:$16 sps:$4 sm:$0xff]  }
 0x1fa   : > { %v2666_v38 = vpop.f32.mrf.mxu1  ;;  %4574 = vmatpush1.bf16.msra.mxu0 %v6764_v31  ;;  %v6857_v0 = vld [vmem:[#allocation7 + $0x4c0] ss:$16 sps:$4 sm:$0xff]  }
 0x1fb   : > { %4615 = vmatpush1.bf16.msra.mxu1 %v6767_v32  ;;  %4575 = vmatprep.subr.bf16.mxu0 %v6772_v33  ;;  %v6829_v33 = vld [vmem:[#allocation7 + $0x384] ss:$16 sps:$4 sm:$0xff]  }
 0x1fc   : > { %v2667_v2 = vpop.f32.mrf.mxu1  ;;  %4616 = vmatprep.subr.bf16.mxu1 %v6775_v37  ;;  %v6832_v38 = vld [vmem:[#allocation7 + $0x164] ss:$16 sps:$4 sm:$0xff]  }
 0x1fe   : > { %4576 = vmatpush1.bf16.msra.mxu0 %v6770_v19  ;;  %v6835_v19 = vld [vmem:[#allocation7 + $0x364] ss:$16 sps:$4 sm:$0xff]  }
 0x1ff   : > { %4617 = vmatpush1.bf16.msra.mxu1 %v6773_v11  ;;  %4577 = vmatprep.subr.bf16.mxu0 %v6778_v16  ;;  %v2997_v11 = vpack.c.bf16 %v7968_v53, %v7968_v53  ;;  %v6830_v16 = vld [vmem:[#allocation7 + $0x160] ss:$16 sps:$4 sm:$0xff]  }
 0x200   : > { %4618 = vmatprep.subr.bf16.mxu1 %v6781_v39  ;;  %v6833_v39 = vld [vmem:[#allocation7 + $0x360] ss:$16 sps:$4 sm:$0xff]  }
 0x201   : > { %v6842_v53 = vld [vmem:[#allocation7 + $0x120] ss:$16 sps:$4 sm:$0xff]  }
 0x202   : > { %4578 = vmatpush1.bf16.msra.mxu0 %v6776_v40  ;;  %v6838_v40 = vld [vmem:[#allocation7 + $0x144] ss:$16 sps:$4 sm:$0xff]  }
 0x203   : > { %4619 = vmatpush1.bf16.msra.mxu1 %v6779_v41  ;;  %4579 = vmatprep.subr.bf16.mxu0 %v6784_v42  ;;  %v6841_v41 = vld [vmem:[#allocation7 + $0x344] ss:$16 sps:$4 sm:$0xff]   ;;  %v6836_v42 = vld [vmem:[#allocation7 + $0x140] ss:$16 sps:$4 sm:$0xff]  }
 0x204   : > { %4620 = vmatprep.subr.bf16.mxu1 %v6787_v43  ;;  %v6839_v43 = vld [vmem:[#allocation7 + $0x340] ss:$16 sps:$4 sm:$0xff]  }
 0x206   : > { %4580 = vmatpush1.bf16.msra.mxu0 %v6782_v44  ;;  %v6844_v44 = vld [vmem:[#allocation7 + $0x124] ss:$16 sps:$4 sm:$0xff]  }
 0x207   : > { %4621 = vmatpush1.bf16.msra.mxu1 %v6785_v45  ;;  %4581 = vmatprep.subr.bf16.mxu0 %v6790_v47  ;;  %v6847_v45 = vld [vmem:[#allocation7 + $0x324] ss:$16 sps:$4 sm:$0xff]   ;;  %v6845_v47 = vld [vmem:[#allocation7 + $0x320] ss:$16 sps:$4 sm:$0xff]  }
 0x208   : > { %4622 = vmatprep.subr.bf16.mxu1 %v6793_v34  ;;  %v6850_v34 = vld [vmem:[#allocation7 + $0x104] ss:$16 sps:$4 sm:$0xff]  }
 0x20a   : > { %4582 = vmatpush1.bf16.msra.mxu0 %v6788_v49 }
 0x20b   : > { %4623 = vmatpush1.bf16.msra.mxu1 %v6791_v8  ;;  %4583 = vmatprep.subr.bf16.mxu0 %v6796_v50  ;;  %v6853_v8 = vld [vmem:[#allocation7 + $0x304] ss:$16 sps:$4 sm:$0xff]   ;;  %v6848_v50 = vld [vmem:[#allocation7 + $0x100] ss:$16 sps:$4 sm:$0xff]  }
 0x20c   : > { %4624 = vmatprep.subr.bf16.mxu1 %v6799_v51  ;;  %v6851_v51 = vld [vmem:[#allocation7 + $0x300] ss:$16 sps:$4 sm:$0xff]  }
 0x20e   : > { %4584 = vmatpush1.bf16.msra.mxu0 %v6794_v52  ;;  %v6856_v52 = vld [vmem:[#allocation7 + $0x4e4] ss:$16 sps:$4 sm:$0xff]  }
 0x20f   : > { %4625 = vmatpush1.bf16.msra.mxu1 %v6797_v55  ;;  %4585 = vmatprep.subr.bf16.mxu0 %v6802_v18  ;;  %v6907_v55 = vld [vmem:[#allocation7 + $0x6e4] ss:$16 sps:$4 sm:$0xff]   ;;  %v6854_v18 = vld [vmem:[#allocation7 + $0x4e0] ss:$16 sps:$4 sm:$0xff]  }
 0x210   : > { %4626 = vmatprep.subr.bf16.mxu1 %v6805_v56  ;;  %v6859_v56 = vld [vmem:[#allocation7 + $0x4c4] ss:$16 sps:$4 sm:$0xff]  }
 0x212   : > { %4586 = vmatpush1.bf16.msra.mxu0 %v6800_v60  ;;  %v6905_v60 = vld [vmem:[#allocation7 + $0x6e0] ss:$16 sps:$4 sm:$0xff]  }
 0x213   : > { %4627 = vmatpush1.bf16.msra.mxu1 %v6803_v61  ;;  %4587 = vmatprep.subr.bf16.mxu0 %v6808_v62  ;;  %v6913_v62 = vld [vmem:[#allocation7 + $0x6c4] ss:$16 sps:$4 sm:$0xff]  }
 0x214   : > { %4628 = vmatprep.subr.bf16.mxu1 %v6811_v12 }
 0x215   : > { %v2703_v7 = vpop.f32.mrf.mxu0 }
 0x216   : > { %v2744_v10 = vpop.f32.mrf.mxu1  ;;  %4588 = vmatpush2.bf16.msra.mxu0 %v6806_v1  ;;  %v2704_v26 = vadd.f32 %v2703_v7, %v2663_v22  ;;  %v6862_v1 = vld [vmem:[#allocation7 + $0x4a4] ss:$16 sps:$4 sm:$0xff]   ;;  %v6917_v7 = vld [vmem:[#allocation7 + $0x6a0] ss:$16 sps:$4 sm:$0xff]  }
 0x217   : > { %4629 = vmatpush2.bf16.msra.mxu1 %v6809_v3  ;;  %v2705_v58 = vpop.f32.mrf.mxu0  ;;  %4589 = vmatprep.subr.bf16.mxu0 %v6814_v4  ;;  %v6911_v3 = vld [vmem:[#allocation7 + $0x6c0] ss:$16 sps:$4 sm:$0xff]   ;;  %v6919_v4 = vld [vmem:[#allocation7 + $0x6a4] ss:$16 sps:$4 sm:$0xff]  }
 0x218   : > { %v2706_v20 = vadd.f32 %v2705_v58, %v2665_v9  ;;  %v2746_v21 = vpop.f32.mrf.mxu1  ;;  %4630 = vmatprep.subr.bf16.mxu1 %v6817_v5  ;;  %v2745_v37 = vadd.f32 %v2744_v10, %v2704_v26  ;;  %v6860_v5 = vld [vmem:[#allocation7 + $0x4a0] ss:$16 sps:$4 sm:$0xff]   ;;  %v6925_v9 = vld [vmem:[#allocation7 + $0x684] ss:$16 sps:$4 sm:$0xff]  }
 0x219   : > { %v2707_v23 = vpop.f32.mrf.mxu0  ;;  %v6863_v10 = vld [vmem:[#allocation7 + $0x480] ss:$16 sps:$4 sm:$0xff]   ;;  %v6877_v26 = vld [vmem:[#allocation7 + $0x404] ss:$16 sps:$4 sm:$0xff]  }
 0x21a   : > { %v2747_v24 = vadd.f32 %v2746_v21, %v2706_v20  ;;  %v2748_v48 = vpop.f32.mrf.mxu1  ;;  %4590 = vmatpush2.bf16.msra.mxu0 %v6812_v13  ;;  %v2999_v2 = vpack.c.bf16 %v2745_v37, %v2745_v37  ;;  %v6868_v13 = vld [vmem:[#allocation7 + $0x464] ss:$16 sps:$4 sm:$0xff]   ;;  %v6923_v58 = vld [vmem:[#allocation7 + $0x680] ss:$16 sps:$4 sm:$0xff]  }
 0x21b   : > { %4631 = vmatpush2.bf16.msra.mxu1 %v6815_v14  ;;  %v2708_v27 = vpop.f32.mrf.mxu0  ;;  %4591 = vmatprep.subr.bf16.mxu0 %v6820_v17  ;;  %v6931_v14 = vld [vmem:[#allocation7 + $0x664] ss:$16 sps:$4 sm:$0xff]   ;;  %v6866_v17 = vld [vmem:[#allocation7 + $0x460] ss:$16 sps:$4 sm:$0xff]  }
 0x21c   : > { %v3000_v31 = vpack.c.bf16 %v2747_v24, %v2747_v24  ;;  %v2749_v32 = vpop.f32.mrf.mxu1  ;;  %4632 = vmatprep.subr.bf16.mxu1 %v6823_v59  ;;  %v6871_v20 = vld [vmem:[#allocation7 + $0x444] ss:$16 sps:$4 sm:$0xff]   ;;  %v6929_v21 = vld [vmem:[#allocation7 + $0x660] ss:$16 sps:$4 sm:$0xff]  }
 0x21d   : > { %v6937_v59 = vld [vmem:[#allocation7 + $0x644] ss:$16 sps:$4 sm:$0xff]   ;;  %v6869_v22 = vld [vmem:[#allocation7 + $0x440] ss:$16 sps:$4 sm:$0xff]  }
 0x21e   : > { %7264 = vtanh.bf16 %v3000_v31  ;;  %4592 = vmatpush2.bf16.msra.mxu0 %v6818_v25  ;;  %v6874_v23 = vld [vmem:[#allocation7 + $0x424] ss:$16 sps:$4 sm:$0xff]   ;;  %v6935_v24 = vld [vmem:[#allocation7 + $0x640] ss:$16 sps:$4 sm:$0xff]  }
 0x21f   : > { %4633 = vmatpush2.bf16.msra.mxu1 %v6821_v54  ;;  %4593 = vmatprep.subr.bf16.mxu0 %v6826_v28  ;;  %7266 = vtanh.bf16 %v2997_v11  ;;  %v6943_v48 = vld [vmem:[#allocation7 + $0x624] ss:$16 sps:$4 sm:$0xff]   ;;  %v6872_v25 = vld [vmem:[#allocation7 + $0x420] ss:$16 sps:$4 sm:$0xff]  }
 0x220   : > { %4634 = vmatprep.subr.bf16.mxu1 %v6829_v33  ;;  %7268 = vtanh.bf16 %v2999_v2  ;;  %v6941_v27 = vld [vmem:[#allocation7 + $0x620] ss:$16 sps:$4 sm:$0xff]   ;;  %v6949_v54 = vld [vmem:[#allocation7 + $0x604] ss:$16 sps:$4 sm:$0xff]  }
 0x221   : > { %v6875_v28 = vld [vmem:[#allocation7 + $0x400] ss:$16 sps:$4 sm:$0xff]   ;;  %v6880_v31 = vld [vmem:[#allocation7 + $0x5e4] ss:$16 sps:$4 sm:$0xff]  }
 0x222   : > { %4594 = vmatpush2.bf16.msra.mxu0 %v6824_v35  ;;  %v6947_v32 = vld [vmem:[#allocation7 + $0x600] ss:$16 sps:$4 sm:$0xff]   ;;  %v6955_v33 = vld [vmem:[#allocation7 + $0x7e4] ss:$16 sps:$4 sm:$0xff]  }
 0x223   : > { %4635 = vmatpush2.bf16.msra.mxu1 %v6827_v30  ;;  %4595 = vmatprep.subr.bf16.mxu0 %v6832_v38  ;;  %v6878_v35 = vld [vmem:[#allocation7 + $0x5e0] ss:$16 sps:$4 sm:$0xff]   ;;  %v6883_v37 = vld [vmem:[#allocation7 + $0x5c4] ss:$16 sps:$4 sm:$0xff]  }
 0x224   : > { %4636 = vmatprep.subr.bf16.mxu1 %v6835_v19  ;;  %v6953_v30 = vld [vmem:[#allocation7 + $0x7e0] ss:$16 sps:$4 sm:$0xff]   ;;  %v6961_v38 = vld [vmem:[#allocation7 + $0x7c4] ss:$16 sps:$4 sm:$0xff]  }
 0x226   : > { %4596 = vmatpush2.bf16.msra.mxu0 %v6830_v16  ;;  %v6881_v16 = vld [vmem:[#allocation7 + $0x5c0] ss:$16 sps:$4 sm:$0xff]  }
 0x227   : > { %4637 = vmatpush2.bf16.msra.mxu1 %v6833_v39  ;;  %4597 = vmatprep.subr.bf16.mxu0 %v6838_v40  ;;  %v6886_v39 = vld [vmem:[#allocation7 + $0x5a4] ss:$16 sps:$4 sm:$0xff]   ;;  %v6959_v40 = vld [vmem:[#allocation7 + $0x7c0] ss:$16 sps:$4 sm:$0xff]  }
 0x228   : > { %4638 = vmatprep.subr.bf16.mxu1 %v6841_v41 }
 0x22a   : > { %4598 = vmatpush2.bf16.msra.mxu0 %v6836_v42  ;;  %v6967_v42 = vld [vmem:[#allocation7 + $0x7a4] ss:$16 sps:$4 sm:$0xff]  }
 0x22b   : > { %4639 = vmatpush2.bf16.msra.mxu1 %v6839_v43  ;;  %4599 = vmatprep.subr.bf16.mxu0 %v6844_v44 }
 0x22c   : > { %v7995_v49 = vpop.eup %7264  ;;  %4640 = vmatprep.subr.bf16.mxu1 %v6847_v45  ;;  %v6884_v45 = vld [vmem:[#allocation7 + $0x5a0] ss:$16 sps:$4 sm:$0xff]  }
 0x22d   : > { %4644 = vmatprep.mubr.bf16.mxu1 %v7995_v49  ;;  %v7998_v61 = vpop.eup %7266 }
 0x22e   : > { %4600 = vmatpush2.bf16.msra.mxu0 %v6842_v53  ;;  %v8000_v12 = vpop.eup %7268 }
 0x22f   : > { %4641 = vmatpush2.bf16.msra.mxu1 %v6845_v47  ;;  %4601 = vmatprep.subr.bf16.mxu0 %v6850_v34  ;;  %v6889_v47 = vld [vmem:[#allocation7 + $0x584] ss:$16 sps:$4 sm:$0xff]   ;;  %v6965_v34 = vld [vmem:[#allocation7 + $0x7a0] ss:$16 sps:$4 sm:$0xff]  }
 0x230   : > { %4642 = vmatprep.subr.bf16.mxu1 %v6853_v8 }
 0x232   : > { %4602 = vmatpush2.bf16.msra.mxu0 %v6848_v50  ;;  %v6973_v50 = vld [vmem:[#allocation7 + $0x784] ss:$16 sps:$4 sm:$0xff]  }
 0x233   : > { %4643 = vmatpush2.bf16.msra.mxu1 %v6851_v51  ;;  %4653 = vmatprep.subr.bf16.mxu0 %v6856_v52  ;;  %v6887_v51 = vld [vmem:[#allocation7 + $0x580] ss:$16 sps:$4 sm:$0xff]   ;;  %v6892_v52 = vld [vmem:[#allocation7 + $0x564] ss:$16 sps:$4 sm:$0xff]  }
 0x234   : > { %4694 = vmatprep.subr.bf16.mxu1 %v6907_v55  ;;  %v6971_v55 = vld [vmem:[#allocation7 + $0x780] ss:$16 sps:$4 sm:$0xff]  }
 0x235   : > { %4604 = vmatmul.mubr.bf16.vlgmr.msra.gmra.mxu0 %v7998_v61 }
 0x236   : > { %4645 = vmatmul.mubr.bf16.vlgmr.msra.gmra.mxu1 %v8000_v12  ;;  %4654 = vmatpush1.bf16.msra.mxu0 %v6854_v18  ;;  %v6979_v18 = vld [vmem:[#allocation7 + $0x764] ss:$16 sps:$4 sm:$0xff]  }
 0x237   : > { %4655 = vmatprep.subr.bf16.mxu0 %v6859_v56  ;;  %4695 = vmatpush1.bf16.msra.mxu1 %v6905_v60  ;;  %v6890_v56 = vld [vmem:[#allocation7 + $0x560] ss:$16 sps:$4 sm:$0xff]   ;;  %v6895_v60 = vld [vmem:[#allocation7 + $0x544] ss:$16 sps:$4 sm:$0xff]  }
 0x238   : > { %4696 = vmatprep.subr.bf16.mxu1 %v6913_v62  ;;  %v6977_v62 = vld [vmem:[#allocation7 + $0x760] ss:$16 sps:$4 sm:$0xff]  }
 0x23a   : > { %4656 = vmatpush1.bf16.msra.mxu0 %v6857_v0  ;;  %v6985_v0 = vld [vmem:[#allocation7 + $0x744] ss:$16 sps:$4 sm:$0xff]  }
 0x23b   : > { %4657 = vmatprep.subr.bf16.mxu0 %v6862_v1  ;;  %4697 = vmatpush1.bf16.msra.mxu1 %v6911_v3  ;;  %v6893_v1 = vld [vmem:[#allocation7 + $0x540] ss:$16 sps:$4 sm:$0xff]   ;;  %v6898_v3 = vld [vmem:[#allocation7 + $0x524] ss:$16 sps:$4 sm:$0xff]  }
 0x23c   : > { %4698 = vmatprep.subr.bf16.mxu1 %v6919_v4  ;;  %v6983_v4 = vld [vmem:[#allocation7 + $0x740] ss:$16 sps:$4 sm:$0xff]  }
 0x23e   : > { %4658 = vmatpush1.bf16.msra.mxu0 %v6860_v5  ;;  %v865_v5 = vsub.s32 4, %v7942_v36 }
 0x23f   : > { %4659 = vmatprep.subr.bf16.mxu0 %v6865_v6  ;;  %4699 = vmatpush1.bf16.msra.mxu1 %v6917_v7  ;;  %v6991_v6 = vld [vmem:[#allocation7 + $0x724] ss:$16 sps:$4 sm:$0xff]   ;;  %v869_v7 = vsub.s32 5, %v7942_v36 }
 0x240   : > { %4700 = vmatprep.subr.bf16.mxu1 %v6925_v9  ;;  %v6896_v9 = vld [vmem:[#allocation7 + $0x520] ss:$16 sps:$4 sm:$0xff]  }
 0x242   : > { %4660 = vmatpush1.bf16.msra.mxu0 %v6863_v10  ;;  %v6901_v10 = vld [vmem:[#allocation7 + $0x504] ss:$16 sps:$4 sm:$0xff]  }
 0x243   : > { %4661 = vmatprep.subr.bf16.mxu0 %v6868_v13  ;;  %4701 = vmatpush1.bf16.msra.mxu1 %v6923_v58  ;;  %v6989_v13 = vld [vmem:[#allocation7 + $0x720] ss:$16 sps:$4 sm:$0xff]   ;;  %v8014_v58 = vld [vmem:[#allocation5] sm:$0xff] }
 0x244   : > { %4702 = vmatprep.subr.bf16.mxu1 %v6931_v14  ;;  %v866_v14 = vrot.slane %v8014_v58, %v865_v5 }
 0x246   : > { %4662 = vmatpush1.bf16.msra.mxu0 %v6866_v17  ;;  %v6997_v17 = vld [vmem:[#allocation7 + $0x704] ss:$16 sps:$4 sm:$0xff]  }
 0x247   : > { %4663 = vmatprep.subr.bf16.mxu0 %v6871_v20  ;;  %4703 = vmatpush1.bf16.msra.mxu1 %v6929_v21  ;;  %v870_v20 = vrot.slane %v8014_v58, %v869_v7  ;;  %v6899_v21 = vld [vmem:[#allocation7 + $0x500] ss:$16 sps:$4 sm:$0xff]  }
 0x248   : > { %4704 = vmatprep.subr.bf16.mxu1 %v6937_v59  ;;  %v6904_v59 = vld [vmem:[#allocation7 + $0xec] ss:$16 sps:$4 sm:$0xff]  }
 0x24a   : > { %4664 = vmatpush1.bf16.msra.mxu0 %v6869_v22  ;;  %v6995_v22 = vld [vmem:[#allocation7 + $0x700] ss:$16 sps:$4 sm:$0xff]  }
 0x24b   : > { %4665 = vmatprep.subr.bf16.mxu0 %v6874_v23  ;;  %4705 = vmatpush1.bf16.msra.mxu1 %v6935_v24  ;;  %v7003_v24 = vld [vmem:[#allocation7 + $0x2ec] ss:$16 sps:$4 sm:$0xff]  }
 0x24c   : > { %4706 = vmatprep.subr.bf16.mxu1 %v6943_v48 }
 0x24e   : > { %4666 = vmatpush1.bf16.msra.mxu0 %v6872_v25 }
 0x24f   : > { %4667 = vmatprep.subr.bf16.mxu0 %v6877_v26  ;;  %4707 = vmatpush1.bf16.msra.mxu1 %v6941_v27 }
 0x250   : > { %4708 = vmatprep.subr.bf16.mxu1 %v6949_v54 }
 0x252   : > { %4668 = vmatpush1.bf16.msra.mxu0 %v6875_v28 }
 0x253   : > { %4669 = vmatprep.subr.bf16.mxu0 %v6880_v31  ;;  %4709 = vmatpush1.bf16.msra.mxu1 %v6947_v32 }
 0x254   : > { %4710 = vmatprep.subr.bf16.mxu1 %v6955_v33 }
 0x255   : > { %v8004_v19 = vpop.f32.mrf.mxu0 }
 0x256   : > { %v8006_v11 = vpop.f32.mrf.mxu1  ;;  %4670 = vmatpush2.bf16.msra.mxu0 %v6878_v35  ;;  %v2786_v23 = vadd.f32 %v8004_v19, %v866_v14  ;;  %v6910_v19 = vld [vmem:[#allocation7 + $0xcc] ss:$16 sps:$4 sm:$0xff]  }
 0x257   : > { %v8008_v2 = vpop.f32.mrf.mxu0  ;;  %4671 = vmatprep.subr.bf16.mxu0 %v6883_v37  ;;  %4711 = vmatpush2.bf16.msra.mxu1 %v6953_v30  ;;  %v6902_v30 = vld [vmem:[#allocation7 + $0xe8] ss:$16 sps:$4 sm:$0xff]  }
 0x258   : > { %v8010_v41 = vpop.f32.mrf.mxu1  ;;  %4712 = vmatprep.subr.bf16.mxu1 %v6961_v38  ;;  %v2788_v48 = vadd.f32 %v8008_v2, %v870_v20  ;;  %v2827_v25 = vadd.f32 %v8006_v11, %v2786_v23  ;;  %v6908_v11 = vld [vmem:[#allocation7 + $0xc8] ss:$16 sps:$4 sm:$0xff]   ;;  %v6916_v2 = vld [vmem:[#allocation7 + $0xac] ss:$16 sps:$4 sm:$0xff]  }
 0x259   : > { %v2789_v43 = vpop.f32.mrf.mxu0  ;;  %v6976_v20 = vld [vmem:[#allocation7 + $0x16c] ss:$16 sps:$4 sm:$0xff]  }
 0x25a   : > { %v2830_v44 = vpop.f32.mrf.mxu1  ;;  %4672 = vmatpush2.bf16.msra.mxu0 %v6881_v16  ;;  %v2829_v27 = vadd.f32 %v8010_v41, %v2788_v48  ;;  %v6920_v41 = vld [vmem:[#allocation7 + $0x88] ss:$16 sps:$4 sm:$0xff]   ;;  %v6928_v43 = vld [vmem:[#allocation7 + $0x6c] ss:$16 sps:$4 sm:$0xff]  }
 0x25b   : > { %v2790_v53 = vpop.f32.mrf.mxu0  ;;  %4673 = vmatprep.subr.bf16.mxu0 %v6886_v39  ;;  %4713 = vmatpush2.bf16.msra.mxu1 %v6959_v40  ;;  %v6914_v39 = vld [vmem:[#allocation7 + $0xa8] ss:$16 sps:$4 sm:$0xff]   ;;  %v6922_v40 = vld [vmem:[#allocation7 + $0x8c] ss:$16 sps:$4 sm:$0xff]  }
 0x25c   : > { %v2831_v8 = vpop.f32.mrf.mxu1  ;;  %4714 = vmatprep.subr.bf16.mxu1 %v6967_v42  ;;  %v6974_v48 = vld [vmem:[#allocation7 + $0x168] ss:$16 sps:$4 sm:$0xff]  }
 0x25d   : > { %v6940_v8 = vld [vmem:[#allocation7 + $0x2c] ss:$16 sps:$4 sm:$0xff]  }
 0x25e   : > { %4674 = vmatpush2.bf16.msra.mxu0 %v6884_v45  ;;  %v6926_v45 = vld [vmem:[#allocation7 + $0x68] ss:$16 sps:$4 sm:$0xff]  }
 0x25f   : > { %4675 = vmatprep.subr.bf16.mxu0 %v6889_v47  ;;  %4715 = vmatpush2.bf16.msra.mxu1 %v6965_v34  ;;  %v6934_v47 = vld [vmem:[#allocation7 + $0x4c] ss:$16 sps:$4 sm:$0xff]  }
 0x260   : > { %4716 = vmatprep.subr.bf16.mxu1 %v6973_v50  ;;  %v6938_v50 = vld [vmem:[#allocation7 + $0x28] ss:$16 sps:$4 sm:$0xff]  }
 0x262   : > { %4676 = vmatpush2.bf16.msra.mxu0 %v6887_v51  ;;  %v6946_v51 = vld [vmem:[#allocation7 + $0xc] ss:$16 sps:$4 sm:$0xff]  }
 0x263   : > { %4677 = vmatprep.subr.bf16.mxu0 %v6892_v52  ;;  %4717 = vmatpush2.bf16.msra.mxu1 %v6971_v55  ;;  %v6944_v52 = vld [vmem:[#allocation7 + $0x8] ss:$16 sps:$4 sm:$0xff]   ;;  %v6952_v55 = vld [vmem:[#allocation7 + $0x1ec] ss:$16 sps:$4 sm:$0xff]  }
 0x264   : > { %4718 = vmatprep.subr.bf16.mxu1 %v6979_v18  ;;  %v6950_v18 = vld [vmem:[#allocation7 + $0x1e8] ss:$16 sps:$4 sm:$0xff]  }
 0x266   : > { %4678 = vmatpush2.bf16.msra.mxu0 %v6890_v56  ;;  %v6958_v56 = vld [vmem:[#allocation7 + $0x1cc] ss:$16 sps:$4 sm:$0xff]  }
 0x267   : > { %4679 = vmatprep.subr.bf16.mxu0 %v6895_v60  ;;  %4719 = vmatpush2.bf16.msra.mxu1 %v6977_v62  ;;  %v873_v60 = vsub.s32 6, %v7942_v36  ;;  %v6956_v62 = vld [vmem:[#allocation7 + $0x1c8] ss:$16 sps:$4 sm:$0xff]  }
 0x268   : > { %4720 = vmatprep.subr.bf16.mxu1 %v6985_v0  ;;  %v877_v0 = vsub.s32 7, %v7942_v36  ;;  %v7241_v36 = vld [vmem:[#allocation13 + $0x30] sm:$0xff]  }
 0x26a   : > { %4680 = vmatpush2.bf16.msra.mxu0 %v6893_v1  ;;  %v6964_v1 = vld [vmem:[#allocation7 + $0x1ac] ss:$16 sps:$4 sm:$0xff]   ;;  %v878_v5 = vrot.slane %v8014_v58, %v877_v0  ;;  %v7034_v0 = vld [vmem:[#allocation7 + $0x428] ss:$16 sps:$4 sm:$0xff]  }
 0x26b   : > { %4681 = vmatprep.subr.bf16.mxu0 %v6898_v3  ;;  %4721 = vmatpush2.bf16.msra.mxu1 %v6983_v4  ;;  %v874_v3 = vrot.slane %v8014_v58, %v873_v60  ;;  %v6962_v4 = vld [vmem:[#allocation7 + $0x1a8] ss:$16 sps:$4 sm:$0xff]   ;;  %v7036_v60 = vld [vmem:[#allocation7 + $0x42c] ss:$16 sps:$4 sm:$0xff]  }
 0x26c   : > { %4722 = vmatprep.subr.bf16.mxu1 %v6991_v6  ;;  %v6970_v6 = vld [vmem:[#allocation7 + $0x18c] ss:$16 sps:$4 sm:$0xff]  }
 0x26e   : > { %4682 = vmatpush2.bf16.msra.mxu0 %v6896_v9 }
 0x26f   : > { %4683 = vmatprep.subr.bf16.mxu0 %v6901_v10  ;;  %4723 = vmatpush2.bf16.msra.mxu1 %v6989_v13  ;;  %v6968_v10 = vld [vmem:[#allocation7 + $0x188] ss:$16 sps:$4 sm:$0xff]  }
 0x270   : > { %4724 = vmatprep.subr.bf16.mxu1 %v6997_v17 }
 0x272   : > { %4684 = vmatpush2.bf16.msra.mxu0 %v6899_v21 }
 0x273   : > { %4735 = vmatprep.subr.bf16.mxu0 %v6904_v59  ;;  %4725 = vmatpush2.bf16.msra.mxu1 %v6995_v22 }
 0x274   : > { %4776 = vmatprep.subr.bf16.mxu1 %v7003_v24 }
 0x275   : > { %v2867_v26 = vpop.f32.mrf.mxu0 }
 0x276   : > { %v2868_v54 = vadd.f32 %v2867_v26, %v2827_v25  ;;  %v6982_v26 = vld [vmem:[#allocation7 + $0x14c] ss:$16 sps:$4 sm:$0xff]  }
 0x277   : > { %v2869_v28 = vpop.f32.mrf.mxu0 }
 0x278   : > { %v2870_v31 = vadd.f32 %v2869_v28, %v2829_v27  ;;  %v3001_v32 = vpack.c.bf16 %v2868_v54, %v2868_v54 }
 0x279   : > { %v2871_v33 = vpop.f32.mrf.mxu0 }
 0x27a   : > { %v3002_v35 = vpack.c.bf16 %v2870_v31, %v2870_v31  ;;  %v6988_v33 = vld [vmem:[#allocation7 + $0x12c] ss:$16 sps:$4 sm:$0xff]  }
 0x27b   : > { %v2872_v37 = vpop.f32.mrf.mxu0 }
 0x27c   : > { %7270 = vtanh.bf16 %v3002_v35  ;;  %v6986_v35 = vld [vmem:[#allocation7 + $0x128] ss:$16 sps:$4 sm:$0xff]   ;;  %v6994_v37 = vld [vmem:[#allocation7 + $0x10c] ss:$16 sps:$4 sm:$0xff]  }
 0x27d   : > { %7272 = vtanh.bf16 %v3001_v32  ;;  %v6980_v32 = vld [vmem:[#allocation7 + $0x148] ss:$16 sps:$4 sm:$0xff]  }
 0x28a   : > { %v8022_v38 = vpop.eup %7270 }
 0x28b   : > { %v8024_v16 = vpop.eup %7272  ;;  %4685 = vmatprep.mubr.bf16.mxu0 %v8022_v38 }
 0x28c   : > { %4686 = vmatmul.mubr.bf16.vlgmr.msra.gmra.mxu0 %v8024_v16 }
 0x28d   : > { %4736 = vmatpush1.bf16.msra.mxu0 %v6902_v30  ;;  %4767 = vmatprep.mubr.bf16.mxu0 %v7975_v29  ;;  %v6932_v29 = vld [vmem:[#allocation7 + $0x48] ss:$16 sps:$4 sm:$0xff]  }
 0x28e   : > { %4737 = vmatprep.subr.bf16.mxu0 %v6910_v19  ;;  %v6992_v30 = vld [vmem:[#allocation7 + $0x108] ss:$16 sps:$4 sm:$0xff]   ;;  %v7000_v19 = vld [vmem:[#allocation7 + $0x4ec] ss:$16 sps:$4 sm:$0xff]  }
 0x291   : > { %4738 = vmatpush1.bf16.msra.mxu0 %v6908_v11  ;;  %v6998_v11 = vld [vmem:[#allocation7 + $0x4e8] ss:$16 sps:$4 sm:$0xff]  }
 0x292   : > { %4739 = vmatprep.subr.bf16.mxu0 %v6916_v2  ;;  %v7006_v2 = vld [vmem:[#allocation7 + $0x4cc] ss:$16 sps:$4 sm:$0xff]  }
 0x295   : > { %4740 = vmatpush1.bf16.msra.mxu0 %v6914_v39 }
 0x296   : > { %v2908_v42 = vpop.f32.mrf.mxu1  ;;  %4741 = vmatprep.subr.bf16.mxu0 %v6922_v40  ;;  %v7001_v40 = vld [vmem:[#allocation7 + $0x2e8] ss:$16 sps:$4 sm:$0xff]  }
 0x297   : > { %v2909_v7 = vadd.f32 %v2908_v42, %v874_v3  ;;  %v7009_v42 = vld [vmem:[#allocation7 + $0x2cc] ss:$16 sps:$4 sm:$0xff]  }
 0x298   : > { %v2910_v44 = vpop.f32.mrf.mxu1  ;;  %v7042_v3 = vld [vmem:[#allocation7 + $0x40c] ss:$16 sps:$4 sm:$0xff]  }
 0x299   : > { %4742 = vmatpush1.bf16.msra.mxu0 %v6920_v41  ;;  %v2911_v13 = vadd.f32 %v2910_v44, %v878_v5  ;;  %v7004_v41 = vld [vmem:[#allocation7 + $0x4c8] ss:$16 sps:$4 sm:$0xff]   ;;  %v7012_v44 = vld [vmem:[#allocation7 + $0x4ac] ss:$16 sps:$4 sm:$0xff]  }
 0x29a   : > { %v2912_v53 = vpop.f32.mrf.mxu1  ;;  %4743 = vmatprep.subr.bf16.mxu0 %v6928_v43  ;;  %v7040_v5 = vld [vmem:[#allocation7 + $0x408] ss:$16 sps:$4 sm:$0xff]  }
 0x29b   : > { %v7015_v53 = vld [vmem:[#allocation7 + $0x2ac] ss:$16 sps:$4 sm:$0xff]  }
 0x29c   : > { %v2913_v34 = vpop.f32.mrf.mxu1 }
 0x29d   : > { %4744 = vmatpush1.bf16.msra.mxu0 %v6926_v45  ;;  %v7007_v45 = vld [vmem:[#allocation7 + $0x2c8] ss:$16 sps:$4 sm:$0xff]  }
 0x29e   : > { %4745 = vmatprep.subr.bf16.mxu0 %v6934_v47  ;;  %v7013_v47 = vld [vmem:[#allocation7 + $0x2a8] ss:$16 sps:$4 sm:$0xff]  }
 0x29f   : > { %v7016_v34 = vld [vmem:[#allocation7 + $0x488] ss:$16 sps:$4 sm:$0xff]  }
 0x2a1   : > { %4746 = vmatpush1.bf16.msra.mxu0 %v6932_v29  ;;  %v7021_v29 = vld [vmem:[#allocation7 + $0x28c] ss:$16 sps:$4 sm:$0xff]  }
 0x2a2   : > { %4747 = vmatprep.subr.bf16.mxu0 %v6940_v8  ;;  %v7024_v8 = vld [vmem:[#allocation7 + $0x46c] ss:$16 sps:$4 sm:$0xff]  }
 0x2a5   : > { %4748 = vmatpush1.bf16.msra.mxu0 %v6938_v50  ;;  %v7019_v50 = vld [vmem:[#allocation7 + $0x288] ss:$16 sps:$4 sm:$0xff]  }
 0x2a6   : > { %4749 = vmatprep.subr.bf16.mxu0 %v6946_v51  ;;  %v7027_v51 = vld [vmem:[#allocation7 + $0x26c] ss:$16 sps:$4 sm:$0xff]  }
 0x2a9   : > { %4750 = vmatpush1.bf16.msra.mxu0 %v6944_v52  ;;  %v7030_v52 = vld [vmem:[#allocation7 + $0x44c] ss:$16 sps:$4 sm:$0xff]  }
 0x2aa   : > { %4751 = vmatprep.subr.bf16.mxu0 %v6952_v55  ;;  %v7025_v55 = vld [vmem:[#allocation7 + $0x268] ss:$16 sps:$4 sm:$0xff]  }
 0x2ad   : > { %4752 = vmatpush2.bf16.msra.mxu0 %v6950_v18  ;;  %v7028_v18 = vld [vmem:[#allocation7 + $0x448] ss:$16 sps:$4 sm:$0xff]  }
 0x2ae   : > { %4753 = vmatprep.subr.bf16.mxu0 %v6958_v56  ;;  %v7033_v56 = vld [vmem:[#allocation7 + $0x24c] ss:$16 sps:$4 sm:$0xff]  }
 0x2b1   : > { %4754 = vmatpush2.bf16.msra.mxu0 %v6956_v62  ;;  %v7031_v62 = vld [vmem:[#allocation7 + $0x248] ss:$16 sps:$4 sm:$0xff]  }
 0x2b2   : > { %4755 = vmatprep.subr.bf16.mxu0 %v6964_v1  ;;  %v7039_v1 = vld [vmem:[#allocation7 + $0x22c] ss:$16 sps:$4 sm:$0xff]  }
 0x2b5   : > { %4756 = vmatpush2.bf16.msra.mxu0 %v6962_v4  ;;  %v2949_v9 = vpop.f32.mrf.mxu0  ;;  %v7037_v4 = vld [vmem:[#allocation7 + $0x228] ss:$16 sps:$4 sm:$0xff]  }
 0x2b6   : > { %v2950_v14 = vadd.f32 %v2949_v9, %v2909_v7  ;;  %v2990_v17 = vpop.f32.mrf.mxu1  ;;  %4757 = vmatprep.subr.bf16.mxu0 %v6970_v6  ;;  %v7045_v6 = vld [vmem:[#allocation7 + $0x20c] ss:$16 sps:$4 sm:$0xff]   ;;  %v7043_v9 = vld [vmem:[#allocation7 + $0x208] ss:$16 sps:$4 sm:$0xff]  }
 0x2b7   : > { %v2951_v21 = vpop.f32.mrf.mxu0  ;;  %v7048_v7 = vld [vmem:[#allocation7 + $0x5ec] ss:$16 sps:$4 sm:$0xff]  }
 0x2b8   : > { %v2991_v59 = vadd.f32 %v2990_v17, %v2950_v14  ;;  %v2952_v22 = vadd.f32 %v2951_v21, %v2911_v13  ;;  %v2992_v23 = vpop.f32.mrf.mxu1  ;;  %v7051_v13 = vld [vmem:[#allocation7 + $0x3ec] ss:$16 sps:$4 sm:$0xff]   ;;  %v7049_v17 = vld [vmem:[#allocation7 + $0x3e8] ss:$16 sps:$4 sm:$0xff]  }
 0x2b9   : > { %4758 = vmatpush2.bf16.msra.mxu0 %v6968_v10  ;;  %v2953_v24 = vpop.f32.mrf.mxu0  ;;  %v7046_v10 = vld [vmem:[#allocation7 + $0x5e8] ss:$16 sps:$4 sm:$0xff]   ;;  %v7054_v14 = vld [vmem:[#allocation7 + $0x5cc] ss:$16 sps:$4 sm:$0xff]  }
 0x2ba   : > { %v2993_v25 = vadd.f32 %v2992_v23, %v2952_v22  ;;  %v2994_v58 = vpop.f32.mrf.mxu1  ;;  %4759 = vmatprep.subr.bf16.mxu0 %v6976_v20  ;;  %v3003_v54 = vpack.c.bf16 %v2991_v59, %v2991_v59  ;;  %v7052_v20 = vld [vmem:[#allocation7 + $0x5c8] ss:$16 sps:$4 sm:$0xff]   ;;  %v7057_v21 = vld [vmem:[#allocation7 + $0x3cc] ss:$16 sps:$4 sm:$0xff]   ;;  %v8042_v22 = vld [vmem:[#allocation8] sm:$0xf] }
 0x2bb   : > { %v2954_v27 = vpop.f32.mrf.mxu0  ;;  %v7060_v59 = vld [vmem:[#allocation7 + $0x5ac] ss:$16 sps:$4 sm:$0xff]   ;;  %v7055_v23 = vld [vmem:[#allocation7 + $0x3c8] ss:$16 sps:$4 sm:$0xff]  }
 0x2bc   : > { %v3004_v28 = vpack.c.bf16 %v2993_v25, %v2993_v25  ;;  %v2995_v31 = vpop.f32.mrf.mxu1  ;;  %v7058_v24 = vld [vmem:[#allocation7 + $0x5a8] ss:$16 sps:$4 sm:$0xff]   ;;  %v3274_v25 = vrot.slane %v8042_v22, %v7945_v46  ;;  %v7066_v58 = vld [vmem:[#allocation7 + $0x58c] ss:$16 sps:$4 sm:$0xff]   ;;  %v3278_v27 = vrot.slane %v8042_v22, %v7963_v15 }
 0x2bd   : > { %4760 = vmatpush2.bf16.msra.mxu0 %v6974_v48  ;;  %v7063_v48 = vld [vmem:[#allocation7 + $0x3ac] ss:$16 sps:$4 sm:$0xff]  }
 0x2be   : > { %7274 = vtanh.bf16 %v3004_v28  ;;  %4761 = vmatprep.subr.bf16.mxu0 %v6982_v26  ;;  %v7061_v26 = vld [vmem:[#allocation7 + $0x3a8] ss:$16 sps:$4 sm:$0xff]   ;;  %v7069_v31 = vld [vmem:[#allocation7 + $0x38c] ss:$16 sps:$4 sm:$0xff]  }
 0x2bf   : > { %7276 = vtanh.bf16 %v3003_v54  ;;  %v7064_v28 = vld [vmem:[#allocation7 + $0x588] ss:$16 sps:$4 sm:$0xff]  }
 0x2c1   : > { %4762 = vmatpush2.bf16.msra.mxu0 %v6980_v32 }
 0x2c2   : > { %4763 = vmatprep.subr.bf16.mxu0 %v6988_v33 }
 0x2c5   : > { %4764 = vmatpush2.bf16.msra.mxu0 %v6986_v35  ;;  %v7072_v35 = vld [vmem:[#allocation7 + $0x56c] ss:$16 sps:$4 sm:$0xff]  }
 0x2c6   : > { %4765 = vmatprep.subr.bf16.mxu0 %v6994_v37 }
 0x2c9   : > { %4766 = vmatpush2.bf16.msra.mxu0 %v6992_v30 }
 0x2ca   : > { %4817 = vmatprep.subr.bf16.mxu0 %v7000_v19 }
 0x2cc   : > { %v8033_v39 = vpop.eup %7274  ;;  %4768 = vmatmul.mubr.bf16.vlgmr.msra.gmra.mxu0 %v7998_v61  ;;  %v7010_v61 = vld [vmem:[#allocation7 + $0x4a8] ss:$16 sps:$4 sm:$0xff]  }
 0x2cd   : > { %4818 = vmatpush1.bf16.msra.mxu0 %v6998_v11  ;;  %4849 = vmatprep.mubr.bf16.mxu0 %v8022_v38  ;;  %v8037_v43 = vpop.eup %7276  ;;  %v7018_v38 = vld [vmem:[#allocation7 + $0x48c] ss:$16 sps:$4 sm:$0xff]  }
 0x2ce   : > { %4726 = vmatprep.mubr.bf16.mxu1 %v8033_v39  ;;  %4819 = vmatprep.subr.bf16.mxu0 %v7006_v2  ;;  %v7067_v2 = vld [vmem:[#allocation7 + $0x388] ss:$16 sps:$4 sm:$0xff]  }
 0x2cf   : > { %4727 = vmatmul.mubr.bf16.vlgmr.msra.gmra.mxu1 %v8037_v43 }
 0x2d0   : > { %4777 = vmatpush1.bf16.msra.mxu1 %v7001_v40  ;;  %4808 = vmatprep.mubr.bf16.mxu1 %v7995_v49  ;;  %v7022_v49 = vld [vmem:[#allocation7 + $0x468] ss:$16 sps:$4 sm:$0xff]  }
 0x2d1   : > { %4820 = vmatpush1.bf16.msra.mxu0 %v7004_v41  ;;  %4778 = vmatprep.subr.bf16.mxu1 %v7009_v42  ;;  %v7070_v41 = vld [vmem:[#allocation7 + $0x568] ss:$16 sps:$4 sm:$0xff]   ;;  %v7075_v42 = vld [vmem:[#allocation7 + $0x36c] ss:$16 sps:$4 sm:$0xff]  }
 0x2d2   : > { %4821 = vmatprep.subr.bf16.mxu0 %v7012_v44 }
 0x2d4   : > { %4779 = vmatpush1.bf16.msra.mxu1 %v7007_v45 }
 0x2d5   : > { %4822 = vmatpush1.bf16.msra.mxu0 %v7010_v61  ;;  %4780 = vmatprep.subr.bf16.mxu1 %v7015_v53  ;;  %v7078_v61 = vld [vmem:[#allocation7 + $0x54c] ss:$16 sps:$4 sm:$0xff]  }
 0x2d6   : > { %4823 = vmatprep.subr.bf16.mxu0 %v7018_v38 }
 0x2d8   : > { %4781 = vmatpush1.bf16.msra.mxu1 %v7013_v47  ;;  %v7073_v47 = vld [vmem:[#allocation7 + $0x368] ss:$16 sps:$4 sm:$0xff]  }
 0x2d9   : > { %4824 = vmatpush1.bf16.msra.mxu0 %v7016_v34  ;;  %4782 = vmatprep.subr.bf16.mxu1 %v7021_v29  ;;  %v7076_v34 = vld [vmem:[#allocation7 + $0x548] ss:$16 sps:$4 sm:$0xff]   ;;  %v7081_v29 = vld [vmem:[#allocation7 + $0x34c] ss:$16 sps:$4 sm:$0xff]  }
 0x2da   : > { %4825 = vmatprep.subr.bf16.mxu0 %v7024_v8  ;;  %v7084_v8 = vld [vmem:[#allocation7 + $0x52c] ss:$16 sps:$4 sm:$0xff]  }
 0x2dc   : > { %4783 = vmatpush1.bf16.msra.mxu1 %v7019_v50  ;;  %v7079_v50 = vld [vmem:[#allocation7 + $0x348] ss:$16 sps:$4 sm:$0xff]  }
 0x2dd   : > { %4826 = vmatpush1.bf16.msra.mxu0 %v7022_v49  ;;  %4784 = vmatprep.subr.bf16.mxu1 %v7027_v51  ;;  %v7082_v49 = vld [vmem:[#allocation7 + $0x528] ss:$16 sps:$4 sm:$0xff]   ;;  %v7087_v51 = vld [vmem:[#allocation7 + $0x32c] ss:$16 sps:$4 sm:$0xff]  }
 0x2de   : > { %4827 = vmatprep.subr.bf16.mxu0 %v7030_v52  ;;  %v7090_v52 = vld [vmem:[#allocation7 + $0x50c] ss:$16 sps:$4 sm:$0xff]  }
 0x2e0   : > { %4785 = vmatpush1.bf16.msra.mxu1 %v7025_v55  ;;  %v7085_v55 = vld [vmem:[#allocation7 + $0x328] ss:$16 sps:$4 sm:$0xff]  }
 0x2e1   : > { %4828 = vmatpush1.bf16.msra.mxu0 %v7028_v18  ;;  %4786 = vmatprep.subr.bf16.mxu1 %v7033_v56  ;;  %v7088_v18 = vld [vmem:[#allocation7 + $0x508] ss:$16 sps:$4 sm:$0xff]   ;;  %v7093_v56 = vld [vmem:[#allocation7 + $0x30c] ss:$16 sps:$4 sm:$0xff]  }
 0x2e2   : > { %4829 = vmatprep.subr.bf16.mxu0 %v7036_v60  ;;  %v7144_v60 = vld [vmem:[#allocation10 + $0x74] ss:$8 sps:$4 sm:$0xff]  }
 0x2e4   : > { %4787 = vmatpush1.bf16.msra.mxu1 %v7031_v62  ;;  %v7091_v62 = vld [vmem:[#allocation7 + $0x308] ss:$16 sps:$4 sm:$0xff]  }
 0x2e5   : > { %4830 = vmatpush1.bf16.msra.mxu0 %v7034_v0  ;;  %4788 = vmatprep.subr.bf16.mxu1 %v7039_v1  ;;  %v7096_v0 = vld [vmem:[#allocation7 + $0x6ec] ss:$16 sps:$4 sm:$0xff]  }
 0x2e6   : > { %4831 = vmatprep.subr.bf16.mxu0 %v7042_v3  ;;  %v7142_v1 = vld [vmem:[#allocation10 + $0x70] ss:$8 sps:$4 sm:$0xff]   ;;  %v7147_v3 = vld [vmem:[#allocation10 + $0x64] ss:$8 sps:$4 sm:$0xff]  }
 0x2e8   : > { %4789 = vmatpush1.bf16.msra.mxu1 %v7037_v4  ;;  %v7094_v4 = vld [vmem:[#allocation7 + $0x6e8] ss:$16 sps:$4 sm:$0xff]  }
 0x2e9   : > { %4832 = vmatpush1.bf16.msra.mxu0 %v7040_v5  ;;  %4790 = vmatprep.subr.bf16.mxu1 %v7045_v6  ;;  %v7099_v5 = vld [vmem:[#allocation7 + $0x6cc] ss:$16 sps:$4 sm:$0xff]  }
 0x2ea   : > { %4833 = vmatprep.subr.bf16.mxu0 %v7048_v7  ;;  %v7145_v6 = vld [vmem:[#allocation10 + $0x60] ss:$8 sps:$4 sm:$0xff]   ;;  %v7150_v7 = vld [vmem:[#allocation10 + $0x54] ss:$8 sps:$4 sm:$0xff]  }
 0x2ec   : > { %4791 = vmatpush1.bf16.msra.mxu1 %v7043_v9  ;;  %v7097_v9 = vld [vmem:[#allocation7 + $0x6c8] ss:$16 sps:$4 sm:$0xff]  }
 0x2ed   : > { %4834 = vmatpush2.bf16.msra.mxu0 %v7046_v10  ;;  %4792 = vmatprep.subr.bf16.mxu1 %v7051_v13  ;;  %v7102_v10 = vld [vmem:[#allocation7 + $0x6ac] ss:$16 sps:$4 sm:$0xff]  }
 0x2ee   : > { %4835 = vmatprep.subr.bf16.mxu0 %v7054_v14  ;;  %v7148_v13 = vld [vmem:[#allocation10 + $0x50] ss:$8 sps:$4 sm:$0xff]   ;;  %v7153_v14 = vld [vmem:[#allocation10 + $0x44] ss:$8 sps:$4 sm:$0xff]  }
 0x2f0   : > { %4793 = vmatpush2.bf16.msra.mxu1 %v7049_v17  ;;  %v7105_v17 = vld [vmem:[#allocation7 + $0x68c] ss:$16 sps:$4 sm:$0xff]  }
 0x2f1   : > { %4836 = vmatpush2.bf16.msra.mxu0 %v7052_v20  ;;  %4794 = vmatprep.subr.bf16.mxu1 %v7057_v21  ;;  %v7151_v20 = vld [vmem:[#allocation10 + $0x40] ss:$8 sps:$4 sm:$0xff]   ;;  %v7156_v21 = vld [vmem:[#allocation10 + $0x34] ss:$8 sps:$4 sm:$0xff]  }
 0x2f2   : > { %4837 = vmatprep.subr.bf16.mxu0 %v7060_v59  ;;  %v7108_v59 = vld [vmem:[#allocation7 + $0x66c] ss:$16 sps:$4 sm:$0xff]  }
 0x2f4   : > { %4795 = vmatpush2.bf16.msra.mxu1 %v7055_v23  ;;  %v7159_v23 = vld [vmem:[#allocation10 + $0x24] ss:$8 sps:$4 sm:$0xff]  }
 0x2f5   : > { %4838 = vmatpush2.bf16.msra.mxu0 %v7058_v24  ;;  %v4605_v54 = vpop.f32.mrf.mxu0  ;;  %4796 = vmatprep.subr.bf16.mxu1 %v7063_v48  ;;  %v7106_v24 = vld [vmem:[#allocation7 + $0x668] ss:$16 sps:$4 sm:$0xff]   ;;  %v7111_v48 = vld [vmem:[#allocation7 + $0x64c] ss:$16 sps:$4 sm:$0xff]  }
 0x2f6   : > { %v4606_v32 = vadd.f32 %v4605_v54, %v3274_v25  ;;  %v4646_v33 = vpop.f32.mrf.mxu1  ;;  %4839 = vmatprep.subr.bf16.mxu0 %v7066_v58  ;;  %v7157_v25 = vld [vmem:[#allocation10 + $0x20] ss:$8 sps:$4 sm:$0xff]   ;;  %v7162_v58 = vld [vmem:[#allocation10 + $0x14] ss:$8 sps:$4 sm:$0xff]   ;;  %v7160_v54 = vld [vmem:[#allocation10 + $0x10] ss:$8 sps:$4 sm:$0xff]  }
 0x2f7   : > { %v4607_v37 = vpop.f32.mrf.mxu0 }
 0x2f8   : > { %v8048_v30 = vadd.f32 %v4646_v33, %v4606_v32  ;;  %4797 = vmatpush2.bf16.msra.mxu1 %v7061_v26  ;;  %v4608_v19 = vadd.f32 %v4607_v37, %v3278_v27  ;;  %v4648_v11 = vpop.f32.mrf.mxu1  ;;  %v7109_v26 = vld [vmem:[#allocation7 + $0x648] ss:$16 sps:$4 sm:$0xff]   ;;  %v7114_v27 = vld [vmem:[#allocation7 + $0x62c] ss:$16 sps:$4 sm:$0xff]  }
 0x2f9   : > { %4840 = vmatpush2.bf16.msra.mxu0 %v7064_v28  ;;  %v4609_v40 = vpop.f32.mrf.mxu0  ;;  %4798 = vmatprep.subr.bf16.mxu1 %v7069_v31  ;;  %v7165_v28 = vld [vmem:[#allocation10 + $0x4] ss:$8 sps:$4 sm:$0xff]   ;;  %v7117_v32 = vld [vmem:[#allocation7 + $0x60c] ss:$16 sps:$4 sm:$0xff]  }
 0x2fa   : > { %v8050_v44 = vadd.f32 %v4648_v11, %v4608_v19  ;;  %v4650_v45 = vpop.f32.mrf.mxu1  ;;  %4841 = vmatprep.subr.bf16.mxu0 %v7072_v35  ;;  %v7112_v31 = vld [vmem:[#allocation7 + $0x628] ss:$16 sps:$4 sm:$0xff]   ;;  %v7163_v33 = vld [vmem:[#allocation10] ss:$8 sps:$4 sm:$0xff]   ;;  %v7166_v11 = vld [vmem:[#allocation10 + $0xf0] ss:$8 sps:$4 sm:$0xff]  }
 0x2fb   : > { %v4610_v53 = vpop.f32.mrf.mxu0  ;;  %v7168_v35 = vld [vmem:[#allocation10 + $0xf4] ss:$8 sps:$4 sm:$0xff]   ;;  %v7120_v19 = vld [vmem:[#allocation7 + $0x7ec] ss:$16 sps:$4 sm:$0xff]  }
 0x2fc   : > { %4799 = vmatpush2.bf16.msra.mxu1 %v7067_v2  ;;  %v4651_v38 = vpop.f32.mrf.mxu1  ;;  %v7115_v37 = vld [vmem:[#allocation7 + $0x608] ss:$16 sps:$4 sm:$0xff]   ;;  %v7126_v53 = vld [vmem:[#allocation7 + $0x7ac] ss:$16 sps:$4 sm:$0xff]  }
 0x2fd   : > { %4842 = vmatpush2.bf16.msra.mxu0 %v7070_v41  ;;  %4800 = vmatprep.subr.bf16.mxu1 %v7075_v42  ;;  %v7171_v2 = vld [vmem:[#allocation10 + $0xe4] ss:$8 sps:$4 sm:$0xff]   ;;  %v7123_v41 = vld [vmem:[#allocation7 + $0x7cc] ss:$16 sps:$4 sm:$0xff]   ;;  %v7174_v45 = vld [vmem:[#allocation10 + $0xd4] ss:$8 sps:$4 sm:$0xff]  }
 0x2fe   : > { %4843 = vmatprep.subr.bf16.mxu0 %v7078_v61  ;;  %v7118_v40 = vld [vmem:[#allocation7 + $0x7e8] ss:$16 sps:$4 sm:$0xff]   ;;  %v7169_v42 = vld [vmem:[#allocation10 + $0xe0] ss:$8 sps:$4 sm:$0xff]   ;;  %v7172_v38 = vld [vmem:[#allocation10 + $0xd0] ss:$8 sps:$4 sm:$0xff]  }
 0x2ff   : > { %v7121_v61 = vld [vmem:[#allocation7 + $0x7c8] ss:$16 sps:$4 sm:$0xff]  }
 0x300   : > { %4801 = vmatpush2.bf16.msra.mxu1 %v7073_v47  ;;  %v7177_v47 = vld [vmem:[#allocation10 + $0xc4] ss:$8 sps:$4 sm:$0xff]  }
 0x301   : > { %4844 = vmatpush2.bf16.msra.mxu0 %v7076_v34  ;;  %4802 = vmatprep.subr.bf16.mxu1 %v7081_v29  ;;  %v7124_v34 = vld [vmem:[#allocation7 + $0x7a8] ss:$16 sps:$4 sm:$0xff]   ;;  %v7129_v29 = vld [vmem:[#allocation7 + $0x78c] ss:$16 sps:$4 sm:$0xff]  }
 0x302   : > { %4845 = vmatprep.subr.bf16.mxu0 %v7084_v8  ;;  %v7175_v8 = vld [vmem:[#allocation10 + $0xc0] ss:$8 sps:$4 sm:$0xff]  }
 0x304   : > { %4803 = vmatpush2.bf16.msra.mxu1 %v7079_v50  ;;  %v7180_v50 = vld [vmem:[#allocation10 + $0xb4] ss:$8 sps:$4 sm:$0xff]  }
 0x305   : > { %4846 = vmatpush2.bf16.msra.mxu0 %v7082_v49  ;;  %4804 = vmatprep.subr.bf16.mxu1 %v7087_v51  ;;  %v7127_v49 = vld [vmem:[#allocation7 + $0x788] ss:$16 sps:$4 sm:$0xff]   ;;  %v7132_v51 = vld [vmem:[#allocation7 + $0x76c] ss:$16 sps:$4 sm:$0xff]  }
 0x306   : > { %4847 = vmatprep.subr.bf16.mxu0 %v7090_v52  ;;  %v7178_v52 = vld [vmem:[#allocation10 + $0xb0] ss:$8 sps:$4 sm:$0xff]  }
 0x308   : > { %4805 = vmatpush2.bf16.msra.mxu1 %v7085_v55  ;;  %v7183_v55 = vld [vmem:[#allocation10 + $0xa4] ss:$8 sps:$4 sm:$0xff]  }
 0x309   : > { %4848 = vmatpush2.bf16.msra.mxu0 %v7088_v18  ;;  %4806 = vmatprep.subr.bf16.mxu1 %v7093_v56  ;;  %v7130_v18 = vld [vmem:[#allocation7 + $0x768] ss:$16 sps:$4 sm:$0xff]   ;;  %v7135_v56 = vld [vmem:[#allocation7 + $0x74c] ss:$16 sps:$4 sm:$0xff]  }
 0x30a   : > { %5303 = vmatprep.subr.bf16.mxu0 %v7144_v60  ;;  %v7181_v60 = vld [vmem:[#allocation10 + $0xa0] ss:$8 sps:$4 sm:$0xff]  }
 0x30c   : > { %4807 = vmatpush2.bf16.msra.mxu1 %v7091_v62  ;;  %4850 = vmatmul.mubr.bf16.vlgmr.msra.gmra.mxu0 %v8024_v16  ;;  %v7100_v16 = vld [vmem:[#allocation7 + $0x6a8] ss:$16 sps:$4 sm:$0xff]  }
 0x30d   : > { %4858 = vmatprep.subr.bf16.mxu1 %v7096_v0  ;;  %5304 = vmatpush1.bf16.msra.mxu0 %v7142_v1  ;;  %v7186_v62 = vld [vmem:[#allocation10 + $0x94] ss:$8 sps:$4 sm:$0xff]   ;;  %v7138_v1 = vld [vmem:[#allocation7 + $0x72c] ss:$16 sps:$4 sm:$0xff]  }
 0x30e   : > { %5305 = vmatprep.subr.bf16.mxu0 %v7147_v3  ;;  %v7133_v0 = vld [vmem:[#allocation7 + $0x748] ss:$16 sps:$4 sm:$0xff]   ;;  %v7184_v3 = vld [vmem:[#allocation10 + $0x90] ss:$8 sps:$4 sm:$0xff]  }
 0x30f   : > { %4809 = vmatmul.mubr.bf16.vlgmr.msra.gmra.mxu1 %v8000_v12  ;;  %v7103_v12 = vld [vmem:[#allocation7 + $0x688] ss:$16 sps:$4 sm:$0xff]  }
 0x310   : > { %4859 = vmatpush1.bf16.msra.mxu1 %v7094_v4  ;;  %4890 = vmatprep.mubr.bf16.mxu1 %v8033_v39  ;;  %v7154_v39 = vld [vmem:[#allocation10 + $0x30] ss:$8 sps:$4 sm:$0xff]   ;;  %v7189_v4 = vld [vmem:[#allocation10 + $0x84] ss:$8 sps:$4 sm:$0xff]  }
 0x311   : > { %4860 = vmatprep.subr.bf16.mxu1 %v7099_v5  ;;  %5306 = vmatpush1.bf16.msra.mxu0 %v7145_v6  ;;  %v7136_v5 = vld [vmem:[#allocation7 + $0x728] ss:$16 sps:$4 sm:$0xff]   ;;  %v7141_v6 = vld [vmem:[#allocation7 + $0x70c] ss:$16 sps:$4 sm:$0xff]  }
 0x312   : > { %5307 = vmatprep.subr.bf16.mxu0 %v7150_v7  ;;  %v7187_v7 = vld [vmem:[#allocation10 + $0x80] ss:$8 sps:$4 sm:$0xff]  }
 0x314   : > { %4861 = vmatpush1.bf16.msra.mxu1 %v7097_v9  ;;  %v7139_v9 = vld [vmem:[#allocation7 + $0x708] ss:$16 sps:$4 sm:$0xff]  }
 0x315   : > { %4862 = vmatprep.subr.bf16.mxu1 %v7102_v10  ;;  %5308 = vmatpush1.bf16.msra.mxu0 %v7148_v13 }
 0x316   : > { %5309 = vmatprep.subr.bf16.mxu0 %v7153_v14 }
 0x318   : > { %4863 = vmatpush1.bf16.msra.mxu1 %v7100_v16 }
 0x319   : > { %4864 = vmatprep.subr.bf16.mxu1 %v7105_v17  ;;  %5310 = vmatpush1.bf16.msra.mxu0 %v7151_v20 }
 0x31a   : > { %5311 = vmatprep.subr.bf16.mxu0 %v7156_v21  ;;  %v7190_v21 = vld [vmem:[#allocation10 + $0x170] ss:$8 sps:$4 sm:$0xff]  }
 0x31c   : > { %4865 = vmatpush1.bf16.msra.mxu1 %v7103_v12  ;;  %v7192_v12 = vld [vmem:[#allocation10 + $0x174] ss:$8 sps:$4 sm:$0xff]  }
 0x31d   : > { %4866 = vmatprep.subr.bf16.mxu1 %v7108_v59  ;;  %5312 = vmatpush1.bf16.msra.mxu0 %v7154_v39  ;;  %v7195_v59 = vld [vmem:[#allocation10 + $0x164] ss:$8 sps:$4 sm:$0xff]   ;;  %v7193_v39 = vld [vmem:[#allocation10 + $0x160] ss:$8 sps:$4 sm:$0xff]  }
 0x31e   : > { %5313 = vmatprep.subr.bf16.mxu0 %v7159_v23  ;;  %v7198_v23 = vld [vmem:[#allocation10 + $0x154] ss:$8 sps:$4 sm:$0xff]  }
 0x320   : > { %4867 = vmatpush1.bf16.msra.mxu1 %v7106_v24  ;;  %v7196_v24 = vld [vmem:[#allocation10 + $0x150] ss:$8 sps:$4 sm:$0xff]  }
 0x321   : > { %4868 = vmatprep.subr.bf16.mxu1 %v7111_v48  ;;  %5314 = vmatpush1.bf16.msra.mxu0 %v7157_v25  ;;  %v7201_v48 = vld [vmem:[#allocation10 + $0x144] ss:$8 sps:$4 sm:$0xff]  }
 0x322   : > { %5315 = vmatprep.subr.bf16.mxu0 %v7162_v58  ;;  %v7207_v25 = vld [vmem:[#allocation10 + $0x124] ss:$8 sps:$4 sm:$0xff]   ;;  %v7205_v58 = vld [vmem:[#allocation10 + $0x120] ss:$8 sps:$4 sm:$0xff]  }
 0x324   : > { %4869 = vmatpush1.bf16.msra.mxu1 %v7109_v26  ;;  %v7210_v26 = vld [vmem:[#allocation10 + $0x114] ss:$8 sps:$4 sm:$0xff]  }
 0x325   : > { %4870 = vmatprep.subr.bf16.mxu1 %v7114_v27  ;;  %5316 = vmatpush1.bf16.msra.mxu0 %v7160_v54  ;;  %v7208_v27 = vld [vmem:[#allocation10 + $0x110] ss:$8 sps:$4 sm:$0xff]   ;;  %v7213_v54 = vld [vmem:[#allocation10 + $0x104] ss:$8 sps:$4 sm:$0xff]  }
 0x326   : > { %5317 = vmatprep.subr.bf16.mxu0 %v7165_v28  ;;  %v7211_v28 = vld [vmem:[#allocation10 + $0x100] ss:$8 sps:$4 sm:$0xff]  }
 0x328   : > { %4871 = vmatpush1.bf16.msra.mxu1 %v7112_v31  ;;  %v7216_v31 = vld [vmem:[#allocation10 + $0x1f4] ss:$8 sps:$4 sm:$0xff]  }
 0x329   : > { %4872 = vmatprep.subr.bf16.mxu1 %v7117_v32  ;;  %5318 = vmatpush1.bf16.msra.mxu0 %v7163_v33  ;;  %v7214_v32 = vld [vmem:[#allocation10 + $0x1f0] ss:$8 sps:$4 sm:$0xff]   ;;  %v7219_v33 = vld [vmem:[#allocation10 + $0x1e4] ss:$8 sps:$4 sm:$0xff]  }
 0x32a   : > { %5319 = vmatprep.subr.bf16.mxu0 %v7168_v35  ;;  %v7217_v35 = vld [vmem:[#allocation10 + $0x1e0] ss:$8 sps:$4 sm:$0xff]  }
 0x32c   : > { %4873 = vmatpush1.bf16.msra.mxu1 %v7115_v37  ;;  %v7222_v37 = vld [vmem:[#allocation10 + $0x1d4] ss:$8 sps:$4 sm:$0xff]  }
 0x32d   : > { %4874 = vmatprep.subr.bf16.mxu1 %v7120_v19  ;;  %5320 = vmatpush2.bf16.msra.mxu0 %v7166_v11  ;;  %v7220_v19 = vld [vmem:[#allocation10 + $0x1d0] ss:$8 sps:$4 sm:$0xff]  }
 0x32e   : > { %5321 = vmatprep.subr.bf16.mxu0 %v7171_v2 }
 0x330   : > { %4875 = vmatpush2.bf16.msra.mxu1 %v7118_v40 }
 0x331   : > { %4876 = vmatprep.subr.bf16.mxu1 %v7123_v41  ;;  %5322 = vmatpush2.bf16.msra.mxu0 %v7169_v42 }
 0x332   : > { %5323 = vmatprep.subr.bf16.mxu0 %v7174_v45  ;;  %v7225_v45 = vld [vmem:[#allocation10 + $0x1c4] ss:$8 sps:$4 sm:$0xff]  }
 0x334   : > { %4877 = vmatpush2.bf16.msra.mxu1 %v7121_v61 }
 0x335   : > { %4878 = vmatprep.subr.bf16.mxu1 %v7126_v53  ;;  %5324 = vmatpush2.bf16.msra.mxu0 %v7172_v38  ;;  %v7223_v53 = vld [vmem:[#allocation10 + $0x1c0] ss:$8 sps:$4 sm:$0xff]  }
 0x336   : > { %5325 = vmatprep.subr.bf16.mxu0 %v7177_v47 }
 0x338   : > { %4879 = vmatpush2.bf16.msra.mxu1 %v7124_v34 }
 0x339   : > { %4880 = vmatprep.subr.bf16.mxu1 %v7129_v29  ;;  %5326 = vmatpush2.bf16.msra.mxu0 %v7175_v8 }
 0x33a   : > { %5327 = vmatprep.subr.bf16.mxu0 %v7180_v50  ;;  %v7228_v50 = vld [vmem:[#allocation10 + $0x1b4] ss:$8 sps:$4 sm:$0xff]  }
 0x33c   : > { %4881 = vmatpush2.bf16.msra.mxu1 %v7127_v49 }
 0x33d   : > { %4882 = vmatprep.subr.bf16.mxu1 %v7132_v51  ;;  %5328 = vmatpush2.bf16.msra.mxu0 %v7178_v52  ;;  %v7226_v51 = vld [vmem:[#allocation10 + $0x1b0] ss:$8 sps:$4 sm:$0xff]   ;;  %v7231_v52 = vld [vmem:[#allocation10 + $0x1a4] ss:$8 sps:$4 sm:$0xff]  }
 0x33e   : > { %5329 = vmatprep.subr.bf16.mxu0 %v7183_v55  ;;  %v7229_v55 = vld [vmem:[#allocation10 + $0x1a0] ss:$8 sps:$4 sm:$0xff]  }
 0x340   : > { %4883 = vmatpush2.bf16.msra.mxu1 %v7130_v18  ;;  %v7234_v18 = vld [vmem:[#allocation10 + $0x194] ss:$8 sps:$4 sm:$0xff]  }
 0x341   : > { %4884 = vmatprep.subr.bf16.mxu1 %v7135_v56  ;;  %5330 = vmatpush2.bf16.msra.mxu0 %v7181_v60  ;;  %v7232_v56 = vld [vmem:[#allocation10 + $0x190] ss:$8 sps:$4 sm:$0xff]   ;;  %v7237_v60 = vld [vmem:[#allocation10 + $0x184] ss:$8 sps:$4 sm:$0xff]  }
 0x342   : > { %5331 = vmatprep.subr.bf16.mxu0 %v7186_v62  ;;  %v7235_v62 = vld [vmem:[#allocation10 + $0x180] ss:$8 sps:$4 sm:$0xff]  }
 0x344   : > { %4885 = vmatpush2.bf16.msra.mxu1 %v7133_v0 }
 0x345   : > { %4886 = vmatprep.subr.bf16.mxu1 %v7138_v1  ;;  %5332 = vmatpush2.bf16.msra.mxu0 %v7184_v3  ;;  %v3282_v3 = vrot.slane %v8042_v22, %v857_v63  ;;  %v7239_v63 = vld [vmem:[#allocation13 + $0x38] sm:$0xff]  }
 0x346   : > { %5333 = vmatprep.subr.bf16.mxu0 %v7189_v4  ;;  %v3286_v4 = vrot.slane %v8042_v22, %v861_v57  ;;  %v7242_v57 = vld [vmem:[#allocation13 + $0x68] sm:$0xff]  }
 0x348   : > { %4887 = vmatpush2.bf16.msra.mxu1 %v7136_v5 }
 0x349   : > { %4888 = vmatprep.subr.bf16.mxu1 %v7141_v6  ;;  %5334 = vmatpush2.bf16.msra.mxu0 %v7187_v7 }
 0x34c   : > { %4889 = vmatpush2.bf16.msra.mxu1 %v7139_v9  ;;  %v4687_v10 = vpop.f32.mrf.mxu0 }
 0x34d   : > { %v4688_v13 = vadd.f32 %v4687_v10, %v8048_v30  ;;  %5344 = vmatprep.subr.bf16.mxu1 %v7192_v12  ;;  %v7199_v30 = vld [vmem:[#allocation10 + $0x140] ss:$8 sps:$4 sm:$0xff]  }
 0x34e   : > { %v4689_v14 = vpop.f32.mrf.mxu0 }
 0x34f   : > { %4891 = vmatmul.mubr.bf16.vlgmr.msra.gmra.mxu1 %v8037_v43  ;;  %v4690_v16 = vadd.f32 %v4689_v14, %v8050_v44  ;;  %v7204_v43 = vld [vmem:[#allocation10 + $0x134] ss:$8 sps:$4 sm:$0xff]   ;;  %v7202_v44 = vld [vmem:[#allocation10 + $0x130] ss:$8 sps:$4 sm:$0xff]  }
 0x350   : > { %v4691_v17 = vpop.f32.mrf.mxu0  ;;  %5345 = vmatpush1.bf16.msra.mxu1 %v7190_v21 }
 0x351   : > { %5346 = vmatprep.subr.bf16.mxu1 %v7195_v59 }
 0x352   : > { %v4692_v20 = vpop.f32.mrf.mxu0 }
 0x354   : > { %5347 = vmatpush1.bf16.msra.mxu1 %v7193_v39 }
 0x355   : > { %5348 = vmatprep.subr.bf16.mxu1 %v7198_v23  ;;  %v7238_v23 = vld [vmem:[#allocation13 + $0x78] sm:$0xff]  }
 0x356   : > { %6550 = vmatprep.subr.bf16.mxu0 %v7238_v23 }
 0x358   : > { %5349 = vmatpush1.bf16.msra.mxu1 %v7196_v24  ;;  %v7240_v24 = vld [vmem:[#allocation13 + $0x70] sm:$0xff]  }
 0x359   : > { %5350 = vmatprep.subr.bf16.mxu1 %v7201_v48 }
 0x35c   : > { %5351 = vmatpush1.bf16.msra.mxu1 %v7199_v30 }
 0x35d   : > { %5352 = vmatprep.subr.bf16.mxu1 %v7204_v43 }
 0x360   : > { %5353 = vmatpush1.bf16.msra.mxu1 %v7202_v44 }
 0x361   : > { %5354 = vmatprep.subr.bf16.mxu1 %v7207_v25 }
 0x364   : > { %5355 = vmatpush1.bf16.msra.mxu1 %v7205_v58 }
 0x365   : > { %5356 = vmatprep.subr.bf16.mxu1 %v7210_v26 }
 0x368   : > { %5357 = vmatpush1.bf16.msra.mxu1 %v7208_v27 }
 0x369   : > { %5358 = vmatprep.subr.bf16.mxu1 %v7213_v54 }
 0x36c   : > { %5359 = vmatpush1.bf16.msra.mxu1 %v7211_v28  ;;  %v7243_v28 = vld [vmem:[#allocation13 + $0x28] sm:$0xff]  }
 0x36d   : > { %5360 = vmatprep.subr.bf16.mxu1 %v7216_v31 }
 0x370   : > { %5361 = vmatpush2.bf16.msra.mxu1 %v7214_v32  ;;  %v7244_v32 = vld [vmem:[#allocation13 + $0x60] sm:$0xff]  }
 0x371   : > { %5362 = vmatprep.subr.bf16.mxu1 %v7219_v33 }
 0x374   : > { %5363 = vmatpush2.bf16.msra.mxu1 %v7217_v35  ;;  %v7245_v35 = vld [vmem:[#allocation13 + $0x20] sm:$0xff]  }
 0x375   : > { %5364 = vmatprep.subr.bf16.mxu1 %v7222_v37 }
 0x378   : > { %5365 = vmatpush2.bf16.msra.mxu1 %v7220_v19  ;;  %v7246_v19 = vld [vmem:[#allocation13 + $0x58] sm:$0xff]  }
 0x379   : > { %5366 = vmatprep.subr.bf16.mxu1 %v7225_v45  ;;  %v7251_v45 = vld [vmem:[#allocation13 + $0x8] sm:$0xff]  }
 0x37c   : > { %5367 = vmatpush2.bf16.msra.mxu1 %v7223_v53  ;;  %v7253_v53 = vld [vmem:[#allocation13] sm:$0xff]  }
 0x37d   : > { %5368 = vmatprep.subr.bf16.mxu1 %v7228_v50 }
 0x380   : > { %5369 = vmatpush2.bf16.msra.mxu1 %v7226_v51 }
 0x381   : > { %5370 = vmatprep.subr.bf16.mxu1 %v7231_v52 }
 0x384   : > { %5371 = vmatpush2.bf16.msra.mxu1 %v7229_v55 }
 0x385   : > { %5372 = vmatprep.subr.bf16.mxu1 %v7234_v18 }
 0x388   : > { %5373 = vmatpush2.bf16.msra.mxu1 %v7232_v56 }
 0x389   : > { %5374 = vmatprep.subr.bf16.mxu1 %v7237_v60 }
 0x38c   : > { %v4769_v11 = vpop.f32.mrf.mxu0  ;;  %5375 = vmatpush2.bf16.msra.mxu1 %v7235_v62 }
 0x38d   : > { %v4770_v6 = vadd.f32 %v4769_v11, %v3282_v3 }
 0x38e   : > { %v4771_v2 = vpop.f32.mrf.mxu0 }
 0x38f   : > { %v4728_v40 = vpop.f32.mrf.mxu1  ;;  %v4772_v10 = vadd.f32 %v4771_v2, %v3286_v4  ;;  %v7247_v2 = vld [vmem:[#allocation13 + $0x18] sm:$0xff]  }
 0x390   : > { %v4729_v41 = vadd.f32 %v4728_v40, %v4688_v13  ;;  %v4773_v42 = vpop.f32.mrf.mxu0  ;;  %v7248_v40 = vld [vmem:[#allocation13 + $0x50] sm:$0xff]  }
 0x391   : > { %v4730_v61 = vpop.f32.mrf.mxu1  ;;  %v7250_v42 = vld [vmem:[#allocation13 + $0x48] sm:$0xff]  }
 0x392   : > { %v4731_v38 = vadd.f32 %v4730_v61, %v4690_v16  ;;  %v4774_v47 = vpop.f32.mrf.mxu0  ;;  %v4899_v34 = vpack.c.bf16 %v4729_v41, %v4729_v41  ;;  %v7249_v41 = vld [vmem:[#allocation13 + $0x10] sm:$0xff]   ;;  %v7252_v61 = vld [vmem:[#allocation13 + $0x40] sm:$0xff]  }
 0x393   : > { %v4732_v29 = vpop.f32.mrf.mxu1  ;;  %v7659_v47 = vmov 0.0  }
 0x394   : > { %v4900_v8 = vpack.c.bf16 %v4731_v38, %v4731_v38  ;;  %v7254_v38 = vld [vmem:[#allocation16 + $0x38] sm:$0xff]   ;;  %6581 = vmatprep.subr.bf16.mxu1 %v7659_v47 }
 0x395   : > { %v4733_v49 = vpop.f32.mrf.mxu1  ;;  %v4971_v29 = vld [vmem:[#allocation11] sm:$0x3] }
 0x396   : > { %7278 = vtanh.bf16 %v4900_v8  ;;  %v4976_v8 = vrot.slane %v4971_v29, %v7945_v46  ;;  %v4980_v50 = vrot.slane %v4971_v29, %v7963_v15  ;;  %v7257_v46 = vld [vmem:[#allocation16 + $0x20] sm:$0xff]   ;;  %v7258_v15 = vld [vmem:[#allocation16 + $0x18] sm:$0xff]  }
 0x397   : > { %7280 = vtanh.bf16 %v4899_v34  ;;  %v7255_v34 = vld [vmem:[#allocation16 + $0x30] sm:$0xff]  }
 0x3a4   : > { %v7279_v0 = vpop.eup %7278 }
 0x3a5   : > { %v7281_v1 = vpop.eup %7280  ;;  %5335 = vmatprep.mubr.bf16.mxu0 %v7279_v0 }
 0x3a6   : > { %5336 = vmatmul.mubr.bf16.vlgmr.msra.gmra.mxu0 %v7281_v1 }
 0x3a7   : > { %6551 = vmatpush3.bf16.msra.mxu0 %v7239_v63 }
 0x3a8   : > { %6552 = vmatprep.subr.bf16.mxu0 %v7240_v24 }
 0x3ab   : > { %6553 = vmatpush3.bf16.msra.mxu0 %v7241_v36 }
 0x3ac   : > { %6554 = vmatprep.subr.bf16.mxu0 %v7242_v57 }
 0x3af   : > { %6555 = vmatpush3.bf16.msra.mxu0 %v7243_v28 }
 0x3b0   : > { %6556 = vmatprep.subr.bf16.mxu0 %v7244_v32 }
 0x3b3   : > { %6557 = vmatpush3.bf16.msra.mxu0 %v7245_v35 }
 0x3b4   : > { %6558 = vmatprep.subr.bf16.mxu0 %v7246_v19 }
 0x3b7   : > { %6559 = vmatpush3.bf16.msra.mxu0 %v7247_v2 }
 0x3b8   : > { %6560 = vmatprep.subr.bf16.mxu0 %v7248_v40 }
 0x3bb   : > { %6561 = vmatpush3.bf16.msra.mxu0 %v7249_v41 }
 0x3bc   : > { %6562 = vmatprep.subr.bf16.mxu0 %v7250_v42 }
 0x3bf   : > { %6563 = vmatpush3.bf16.msra.mxu0 %v7251_v45 }
 0x3c0   : > { %6564 = vmatprep.subr.bf16.mxu0 %v7252_v61 }
 0x3c3   : > { %6565 = vmatpush3.bf16.msra.mxu0 %v7253_v53 }
 0x3cc   : > { %v4851_v5 = vpop.f32.mrf.mxu0 }
 0x3ce   : > { %v4853_v7 = vpop.f32.mrf.mxu0 }
 0x3cf   : > { %v4810_v9 = vpop.f32.mrf.mxu1 }
 0x3d0   : > { %v4811_v13 = vadd.f32 %v4810_v9, %v4770_v6  ;;  %v4855_v14 = vpop.f32.mrf.mxu0  ;;  %v7259_v6 = vld [vmem:[#allocation16 + $0x10] sm:$0xff]   ;;  %v7261_v9 = vld [vmem:[#allocation16] sm:$0xff]  }
 0x3d1   : > { %v4812_v16 = vpop.f32.mrf.mxu1 }
 0x3d2   : > { %v4813_v17 = vadd.f32 %v4812_v16, %v4772_v10  ;;  %v4856_v20 = vpop.f32.mrf.mxu0  ;;  %v4852_v21 = vadd.f32 %v4851_v5, %v4811_v13  ;;  %v7256_v5 = vld [vmem:[#allocation16 + $0x28] sm:$0xff]   ;;  %v6520_v13 = vld [vmem:[#allocation14] ss:$0 sm:$0xff] }
 0x3d3   : > { %v4814_v12 = vpop.f32.mrf.mxu1 }
 0x3d4   : > { %v4854_v59 = vadd.f32 %v4853_v7, %v4813_v17  ;;  %v7260_v7 = vld [vmem:[#allocation16 + $0x8] sm:$0xff]  }
 0x3d5   : > { %v4815_v39 = vpop.f32.mrf.mxu1 }
 0x3d6   : > { %v6537_v39 = vld [vmem:[#allocation17] ss:$0 sm:$0xff] }
 0x40f   : > { %v4892_v22 = vpop.f32.mrf.mxu1 }
 0x410   : > { %v4893_v48 = vadd.f32 %v4892_v22, %v4852_v21 }
 0x411   : > { %v4894_v30 = vpop.f32.mrf.mxu1 }
 0x412   : > { %v4895_v43 = vadd.f32 %v4894_v30, %v4854_v59  ;;  %v4901_v44 = vpack.c.bf16 %v4893_v48, %v4893_v48 }
 0x413   : > { %v4896_v25 = vpop.f32.mrf.mxu1 }
 0x414   : > { %v4902_v58 = vpack.c.bf16 %v4895_v43, %v4895_v43 }
 0x415   : > { %v4897_v26 = vpop.f32.mrf.mxu1 }
 0x416   : > { %7282 = vtanh.bf16 %v4902_v58 }
 0x417   : > { %7284 = vtanh.bf16 %v4901_v44 }
 0x424   : > { %v7283_v27 = vpop.eup %7282 }
 0x425   : > { %v7285_v54 = vpop.eup %7284  ;;  %5376 = vmatprep.mubr.bf16.mxu1 %v7283_v27 }
 0x426   : > { %5377 = vmatmul.mubr.bf16.vlgmr.msra.gmra.mxu1 %v7285_v54 }
 0x427   : > { %6582 = vmatpush3.bf16.msra.mxu1 %v7254_v38  ;;  %6597 = vmatprep.mubr.msk.bf16.mxu1 %vm7660_vm0, %v7659_v47 }
 0x428   : > { %6583 = vmatprep.subr.bf16.mxu1 %v7659_v47 }
 0x42b   : > { %6584 = vmatpush3.bf16.msra.mxu1 %v7255_v34 }
 0x42c   : > { %6585 = vmatprep.subr.bf16.mxu1 %v7659_v47 }
 0x42f   : > { %6586 = vmatpush3.bf16.msra.mxu1 %v7256_v5 }
 0x430   : > { %6587 = vmatprep.subr.bf16.mxu1 %v7659_v47 }
 0x433   : > { %6588 = vmatpush3.bf16.msra.mxu1 %v7257_v46 }
 0x434   : > { %6589 = vmatprep.subr.bf16.mxu1 %v7659_v47 }
 0x437   : > { %6590 = vmatpush3.bf16.msra.mxu1 %v7258_v15 }
 0x438   : > { %6591 = vmatprep.subr.bf16.mxu1 %v7659_v47 }
 0x43b   : > { %6592 = vmatpush3.bf16.msra.mxu1 %v7259_v6 }
 0x43c   : > { %6593 = vmatprep.subr.bf16.mxu1 %v7659_v47 }
 0x43f   : > { %6594 = vmatpush3.bf16.msra.mxu1 %v7260_v7 }
 0x440   : > { %6595 = vmatprep.subr.bf16.mxu1 %v7659_v47 }
 0x443   : > { %6596 = vmatpush3.bf16.msra.mxu1 %v7261_v9 }
 0x466   : > { %v5337_v31 = vpop.f32.mrf.mxu0 }
 0x467   : > { %v5338_v49 = vadd.f32 %v5337_v31, %v4976_v8 }
 0x468   : > { %v5339_v33 = vpop.f32.mrf.mxu0 }
 0x469   : > { %v5340_v52 = vadd.f32 %v5339_v33, %v4980_v50 }
 0x46a   : > { %v5341_v37 = vpop.f32.mrf.mxu0 }
 0x46c   : > { %v5342_v11 = vpop.f32.mrf.mxu0 }
 0x4e6   : > { %v5378_v51 = vpop.f32.mrf.mxu1 }
 0x4e7   : > { %v5379_v55 = vadd.f32 %v5378_v51, %v5338_v49 }
 0x4e8   : > { %v5380_v18 = vpop.f32.mrf.mxu1 }
 0x4e9   : > { %v5381_v56 = vadd.f32 %v5380_v18, %v5340_v52  ;;  %v5385_v60 = vpack.c.bf16 %v5379_v55, %v5379_v55 }
 0x4ea   : > { %v5382_v62 = vpop.f32.mrf.mxu1 }
 0x4eb   : > { %v5386_v0 = vpack.c.bf16 %v5381_v56, %v5381_v56 }
 0x4ec   : > { %v5383_v1 = vpop.f32.mrf.mxu1 }
 0x4ed   : > { %7286 = vtanh.bf16 %v5386_v0 }
 0x4ee   : > { %7288 = vtanh.bf16 %v5385_v60 }
 0x4fb   : > { %v7287_v3 = vpop.eup %7286 }
 0x4fc   : > { %v7289_v4 = vpop.eup %7288  ;;  %5556 = vmatprep.mubr.bf16.mxu0 %v7287_v3 }
 0x4fd   : > { %5557 = vmatmul.mubr.bf16.vlgmr.msra.gmra.mxu0 %v7289_v4 }
 0x5bd   : > { %v6566_v10 = vpop.f32.mrf.mxu0 }
 0x5bf   : > { %v6567_v14 = vpop.f32.mrf.mxu0 }
 0x5c0   : > { %v6568_v16 = vadd.f32 %v6567_v14, %v6566_v10 }
 0x5c1   : > { %v6569_v17 = vpop.f32.mrf.mxu0 }
 0x5c2   : > { %v5559_v20 = vadd.f32 %v6568_v16, %v6520_v13 }
 0x5c3   : > { %v6570_v21 = vpop.f32.mrf.mxu0 }
 0x5c4   : > { %v5564_v12 = vpack.c.bf16 %v5559_v20, %v5559_v20 }
 0x5c6   : > { %7290 = vtanh.bf16 %v5564_v12 }
 0x5d4   : > { %v7291_v59 = vpop.eup %7290 }
 0x5d5   : > { %6598 = vmatmul.mubr.bf16.vlgmr.msra.gmra.mxu1 %v7291_v59 }
 0x695   : > { %v5671_v23 = vpop.f32.mrf.mxu1 }
 0x696   : > { %v5672_v63 = vadd.f32 %v6537_v39, %v5671_v23 }
 0x697   : > { %v6599_v24 = vpop.f32.mrf.mxu1 }
 0x698   : > { %5677 = vst [vmem:[%s515_s25] sm:$0xff] %v5672_v63 }
 0x699   : > { %v5674_v36 = vpop.f32.mrf.mxu1 }
 0x69a   : > { %7567 = shalt.err (!%p7564_p3)
}
 0x69b   : > { %s7568_s2 = scalar_lea.hbm %s8071_s1, 128  ;;  %s7572_s4 = scalar_lea.hbm %s8123_s11, 256 }
 0x69c   : > { %p7569_p9 = scmp.ne.s32.totalorder %s8071_s1, %s7568_s2  ;;  %p7573_p6 = scmp.lt.s32.totalorder %s8071_s1, %s8123_s11 }
 0x69d   : > { %p7574_p10 = scmp.lt.s32.totalorder %s7572_s4, %s7568_s2 }
 0x69e   : > { %p7570_p4 = pnand %p7569_p9, %p8152_p11 }
 0x69f   : > { %p7575_p7 = por %p7574_p10, %p7573_p6 }
 0x6a0   : > { %p7571_p5 = pneg %p7570_p4 }
 0x6a2   : > { %p7576_p8 = pnand %p7575_p7, %p7571_p5 }
 0x6a4   : > { %7579 = shalt.err (!%p7576_p8)
}
 0x6a5   : > { %6642 = dma.vmem_to_hbm [thread:$0]  (%p8152_p11), %s8073_s30, 128, %s8071_s1, %s5679_s13   ;;  %v6600_v57 = vpop.f32.mrf.mxu1 }
 0x6a6 PF: > { %p6699_p13 = scmp.ge.s32.totalorder %s7638_s20, 2  ;;  %s5704_s16 = sand.u32 1, %s7626_s17  }
 0x6a7   : > { %p8153_p0 = scmp.ne.s32.totalorder %s8132_s28, 0  ;;  %s5705_s14 = scalar_lea.sflag [#allocation4], %s5704_s16 }
 0x6a9   : > { %p6676_p1 = pnand %p6699_p13, %p8153_p0 }
 0x6ab   : > { %p6677_p2 = pneg %p6676_p1 }
 0x6ad   : > { %7621 = dma.done.wait (%p6677_p2), %s5705_s14, 128  }
 0x6ae   : > { %7623 = vsyncadd (%p6677_p2), %s5705_s14, 4294967168  ;;  %s8154_s27 = sld [smem:[#allocation27_spill]]  ;;  %p27_p12 = scmp.ge.s32.totalorder %s7747_s23, 4  }
 0x6af   : > { %s8155_s17 = smov %s7630_s18  ;;  %s8156_s18 = smov %s7634_s19 }
 0x6b0   : > { %s8158_s20 = smov %s7747_s23  ;;  %29 = sbr.rel (!%p27_p12) target bundleno = 13 (0xd), region = 140 }
 0x6b4   : > { %s8157_s19 = smov %s8154_s27 }
 0x6b5   :  { %5710 = vsyncpa [#allocation3], 1 }
 0x6b6   :  { %5712 = vsyncpa [#allocation3 + $0x1], 1 }
 0x6b7   :  { %5713 = vsyncpa [#allocation6], 1 }
 0x6b8   :  { %5714 = vsyncpa [#allocation9], 1 }
 0x6b9   :  { %5715 = vsyncpa [#allocation12], 1 }
 0x6ba   :  { %5716 = vsyncpa [#allocation15], 1 }
 0x6bb   :  { %5717 = vsyncpa [#allocation18], 1 }
 0x6bc   :  { %5718 = vsyncpa [#allocation4], 1 }
 0x6bd   :  { %5720 = vsyncpa [#allocation4 + $0x1], 1 }

</bundles_post_ra>
